<compile_context>
chip_gen: v5e
topology: v5e:2x2
jax: 0.10.0
libtpu: 0.0.40
codegen_flags: <defaults>
</compile_context>

<pallas_src>
import functools

import jax
import jax.numpy as jnp
from jax import lax
from jax.experimental import pallas as pl
from jax.experimental.pallas import tpu as pltpu


# ----------------------------- small helpers ---------------------------------
def _round_up(x, m):
    return (x + m - 1) // m * m


def _pad_axis(a, axis, target):
    pad = target - a.shape[axis]
    if pad <= 0:
        return a
    widths = [(0, 0)] * a.ndim
    widths[axis] = (0, pad)
    return jnp.pad(a, widths)


def _pad_gate_cols(w, nhid, nhid_p):
    """Pad the 4*nhid gate axis so each gate block [i, f, g, o] is nhid_p wide."""
    parts = jnp.split(w, 4, axis=-1)
    return jnp.concatenate([_pad_axis(p, -1, nhid_p) for p in parts], axis=-1)


def _pick_seq_tile(seq, max_ts=32):
    for ts in range(min(seq, max_ts), 0, -1):
        if seq % ts == 0:
            return ts
    return seq


# ----------------------------- LSTM layer kernel -----------------------------
def _lstm_layer_kernel(x_ref, w_ih_ref, w_hh_ref, b_ref, h0_ref, c0_ref,
                       y_ref, hn_ref, cn_ref,
                       h_sc, c_sc, gx_sc, *, ts, batch):
    nhid = w_hh_ref.shape[0]

    @pl.when(pl.program_id(0) == 0)
    def _():
        h_sc[...] = h0_ref[...]
        c_sc[...] = c0_ref[...]

    # Hoisted input projection + bias for the whole seq tile: one MXU-friendly
    # matmul with M = ts*batch (bias broadcast done once, not per timestep).
    gx_sc[...] = (jnp.dot(x_ref[...], w_ih_ref[...],
                          preferred_element_type=jnp.float32) + b_ref[...])

    w_hh = w_hh_ref[...]  # bf16, stays resident across timesteps

    def step(t, carry):
        r0 = pl.multiple_of(t * batch, 8)      # batch is padded to a multiple of 8
        h = h_sc[...]                          # bf16
        c = c_sc[...]                          # f32
        gates = (gx_sc[pl.ds(r0, batch), :]
                 + jnp.dot(h, w_hh, preferred_element_type=jnp.float32))
        # Gate slices are lane-aligned because nhid is padded to a 128 multiple.
        i = jax.nn.sigmoid(gates[:, 0 * nhid:1 * nhid])
        f = jax.nn.sigmoid(gates[:, 1 * nhid:2 * nhid])
        g = jnp.tanh(gates[:, 2 * nhid:3 * nhid])
        o = jax.nn.sigmoid(gates[:, 3 * nhid:4 * nhid])
        c_new = f * c + i * g
        h_new = o * jnp.tanh(c_new)
        h_sc[...] = h_new.astype(h_sc.dtype)
        c_sc[...] = c_new
        y_ref[pl.ds(r0, batch), :] = h_new.astype(y_ref.dtype)
        return carry

    # Short fixed trip count: unroll so the LLO scheduler can overlap the MXU
    # (h@W_hh), EUP (sigmoid/tanh) and stores across timesteps.
    lax.fori_loop(0, ts, step, 0, unroll=True)

    @pl.when(pl.program_id(0) == pl.num_programs(0) - 1)
    def _():
        hn_ref[...] = h_sc[...]
        cn_ref[...] = c_sc[...]


def lstm_layer(x2d, w_ih, w_hh, b, h0, c0, *, seq, batch, seq_tile=None):
    """One LSTM layer over time-major-flat activations x2d: (seq*batch, in_dim)."""
    in_dim = x2d.shape[1]
    nhid = w_hh.shape[0]
    ts = seq_tile or _pick_seq_tile(seq)
    rows = ts * batch
    kernel = functools.partial(_lstm_layer_kernel, ts=ts, batch=batch)
    return pl.pallas_call(
        kernel,
        out_shape=(jax.ShapeDtypeStruct((seq * batch, nhid), jnp.bfloat16),
                   jax.ShapeDtypeStruct((batch, nhid), jnp.bfloat16),
                   jax.ShapeDtypeStruct((batch, nhid), jnp.float32)),
        grid=(seq // ts,),
        in_specs=[pl.BlockSpec((rows, in_dim), lambda s: (s, 0)),     # x tile
                  pl.BlockSpec((in_dim, 4 * nhid), lambda s: (0, 0)),  # W_ih (resident)
                  pl.BlockSpec((nhid, 4 * nhid), lambda s: (0, 0)),    # W_hh (resident)
                  pl.BlockSpec((1, 4 * nhid), lambda s: (0, 0)),       # bias
                  pl.BlockSpec((batch, nhid), lambda s: (0, 0)),       # h0
                  pl.BlockSpec((batch, nhid), lambda s: (0, 0))],      # c0
        out_specs=(pl.BlockSpec((rows, nhid), lambda s: (s, 0)),       # y tile
                   pl.BlockSpec((batch, nhid), lambda s: (0, 0)),      # hn (resident)
                   pl.BlockSpec((batch, nhid), lambda s: (0, 0))),     # cn (resident)
        scratch_shapes=[pltpu.VMEM((batch, nhid), jnp.bfloat16),       # h carry
                        pltpu.VMEM((batch, nhid), jnp.float32),        # c carry
                        pltpu.VMEM((rows, 4 * nhid), jnp.float32)],    # hoisted gates_x
        compiler_params=pltpu.CompilerParams(
            dimension_semantics=("arbitrary",),   # recurrence is serial over seq
            vmem_limit_bytes=48 * 1024 * 1024),   # explicit budget (fits v7x 64 MiB)
    )(x2d, w_ih, w_hh, b, h0, c0)


# ----------------------------- Decoder (Linear) kernel ------------------------
def _decoder_kernel(x_ref, w_ref, b_ref, o_ref):
    o_ref[...] = (jnp.dot(x_ref[...], w_ref[...],
                          preferred_element_type=jnp.float32) + b_ref[...])


def decoder(x_flat, w, b, *, tn, tv):
    # x_flat: (N, nhid_p) bf16, w: (nhid_p, V_p) bf16, b: (1, V_p) f32 -> (N, V_p) f32
    n, nhid = x_flat.shape
    vocab = w.shape[1]
    assert n % tn == 0 and vocab % tv == 0
    return pl.pallas_call(
        _decoder_kernel,
        out_shape=jax.ShapeDtypeStruct((n, vocab), jnp.float32),
        grid=(n // tn, vocab // tv),
        in_specs=[pl.BlockSpec((tn, nhid), lambda i, j: (i, 0)),
                  pl.BlockSpec((nhid, tv), lambda i, j: (0, j)),
                  pl.BlockSpec((1, tv), lambda i, j: (0, j))],
        out_specs=pl.BlockSpec((tn, tv), lambda i, j: (i, j)),
        compiler_params=pltpu.CompilerParams(
            dimension_semantics=("parallel", "parallel")),
    )(x_flat, w, b)


# ----------------------------- Parameter init / packing -----------------------
def init_params(key, *, ntokens, emb_dim, nhid, nlayers):
    """Unpadded float32 parameters matching the torch module's init."""
    ks = jax.random.split(key, 2 + 3 * nlayers)
    initrange = 0.1
    params = {
        "encoder_w": jax.random.uniform(ks[0], (ntokens, emb_dim),
                                        jnp.float32, -initrange, initrange),
        "dec_w": jax.random.uniform(ks[1], (nhid, ntokens),
                                    jnp.float32, -initrange, initrange),
        "dec_b": jnp.zeros((1, ntokens), jnp.float32),
    }
    stdv = 1.0 / (nhid ** 0.5)
    for l in range(nlayers):
        in_dim = emb_dim if l == 0 else nhid
        params[f"w_ih_{l}"] = jax.random.uniform(
            ks[2 + 3 * l], (in_dim, 4 * nhid), jnp.float32, -stdv, stdv)
        params[f"w_hh_{l}"] = jax.random.uniform(
            ks[3 + 3 * l], (nhid, 4 * nhid), jnp.float32, -stdv, stdv)
        # b = b_ih + b_hh (combined, since the cell adds both)
        params[f"b_{l}"] = jax.random.uniform(
            ks[4 + 3 * l], (1, 4 * nhid), jnp.float32, -stdv, stdv)
    return params


def pack_params(params, *, ntokens, emb_dim, nhid, nlayers, lane=128):
    """Pad to lane-dense shapes and cast matmul operands to bf16 (biases stay f32)."""
    emb_p = _round_up(emb_dim, lane)
    nhid_p = _round_up(nhid, lane)
    v128 = _round_up(ntokens, lane)
    tv = min(512, v128)                    # large lane-dense vocab tile
    vocab_p = _round_up(ntokens, tv)

    packed = {
        "enc_w": _pad_axis(params["encoder_w"], 1, emb_p).astype(jnp.bfloat16),
        "dec_w": _pad_axis(_pad_axis(params["dec_w"], 0, nhid_p),
                           1, vocab_p).astype(jnp.bfloat16),
        "dec_b": _pad_axis(params["dec_b"], 1, vocab_p),          # f32
    }
    for l in range(nlayers):
        in_p = emb_p if l == 0 else nhid_p
        w_ih = _pad_axis(_pad_gate_cols(params[f"w_ih_{l}"], nhid, nhid_p), 0, in_p)
        w_hh = _pad_axis(_pad_gate_cols(params[f"w_hh_{l}"], nhid, nhid_p), 0, nhid_p)
        packed[f"w_ih_{l}"] = w_ih.astype(jnp.bfloat16)
        packed[f"w_hh_{l}"] = w_hh.astype(jnp.bfloat16)
        packed[f"b_{l}"] = _pad_gate_cols(params[f"b_{l}"], nhid, nhid_p)  # f32
    meta = dict(ntokens=ntokens, emb_dim=emb_dim, nhid=nhid, nlayers=nlayers,
                emb_p=emb_p, nhid_p=nhid_p, vocab_p=vocab_p, tv=tv)
    return packed, meta


# ----------------------------- Full forward -----------------------------------
def rnn_model_forward(tokens, packed, meta, hidden=None):
    seq, batch = tokens.shape
    ntokens = meta["ntokens"]
    nhid, nhid_p = meta["nhid"], meta["nhid_p"]
    nlayers = meta["nlayers"]
    batch_p = _round_up(batch, 8)

    # Embedding lookup (memory gather) kept as JAX glue.
    emb = jnp.take(packed["enc_w"], tokens, axis=0)       # (seq, batch, emb_p) bf16
    emb = _pad_axis(emb, 1, batch_p)                      # (seq, batch_p, emb_p)
    x = emb.reshape(seq * batch_p, -1)                    # time-major flat activations
    # Dropout layers are identity in eval.

    hs, cs = [], []
    for l in range(nlayers):
        if hidden is None:                                # matches torch init_hidden()
            h0 = jnp.zeros((batch_p, nhid_p), jnp.bfloat16)
            c0 = jnp.zeros((batch_p, nhid_p), jnp.float32)
        else:                                             # carried hidden state support
            h0 = _pad_axis(_pad_axis(hidden[0][l], 0, batch_p),
                           1, nhid_p).astype(jnp.bfloat16)
            c0 = _pad_axis(_pad_axis(hidden[1][l], 0, batch_p),
                           1, nhid_p).astype(jnp.float32)
        y, hn, cn = lstm_layer(x, packed[f"w_ih_{l}"], packed[f"w_hh_{l}"],
                               packed[f"b_{l}"], h0, c0,
                               seq=seq, batch=batch_p)
        hs.append(hn[:batch, :nhid].astype(jnp.float32))
        cs.append(cn[:batch, :nhid])
        x = y                                             # inter-layer dropout == identity

    # Decoder over the flat (seq*batch_p, nhid_p) activations, tiled over N and vocab.
    n = x.shape[0]
    tn = n if n <= 512 else 256
    n_p = _round_up(n, tn)
    flat = _pad_axis(x, 0, n_p)
    dec = decoder(flat, packed["dec_w"], packed["dec_b"], tn=tn, tv=meta["tv"])
    dec = dec[:n].reshape(seq, batch_p, -1)
    decoded = dec[:, :batch, :ntokens]                    # strip padding
    return decoded, (jnp.stack(hs), jnp.stack(cs))


# ----------------------------- Demo / self-test --------------------------------
if __name__ == "__main__":
    SEQ, BATCH = 8, 2
    NTOKENS, EMB_DIM, NHID, NLAYERS = 256, 32, 32, 2

    key = jax.random.PRNGKey(0)
    k_par, k_tok = jax.random.split(key)
    raw = init_params(k_par, ntokens=NTOKENS, emb_dim=EMB_DIM,
                      nhid=NHID, nlayers=NLAYERS)
    packed, meta = pack_params(raw, ntokens=NTOKENS, emb_dim=EMB_DIM,
                               nhid=NHID, nlayers=NLAYERS)
    tokens = jax.random.randint(k_tok, (SEQ, BATCH), 0, NTOKENS, dtype=jnp.int32)

    @jax.jit
    def fwd(tok, prm):
        return rnn_model_forward(tok, prm, meta)

    out, hidden = fwd(tokens, packed)
    out = jax.block_until_ready(out)
    assert out.shape == (SEQ, BATCH, NTOKENS), out.shape
    assert hidden[0].shape == (NLAYERS, BATCH, NHID)
    assert bool(jnp.all(jnp.isfinite(out)))
    print("KERNEL_OK")
</pallas_src>

<mosaic_0001>
module attributes {stable_mosaic.version = 11 : i64} {
  func.func @_decoder_kernel(%arg0: i32, %arg1: i32, %arg2: memref<64x128xbf16, #tpu.memory_space<vmem>>, %arg3: memref<128x256xbf16, #tpu.memory_space<vmem>>, %arg4: memref<1x256xf32, #tpu.memory_space<vmem>>, %arg5: memref<64x256xf32, #tpu.memory_space<vmem>>) attributes {dimension_semantics = [#tpu.dimension_semantics<parallel>, #tpu.dimension_semantics<parallel>], iteration_bounds = array<i64: 1, 1>, scalar_prefetch = 0 : i64, scratch_operands = 0 : i64, tpu.core_type = #tpu.core_type<tc>, window_params = [{transform_indices = @transform_0, window_bounds = array<i64: 64, 128>}, {transform_indices = @transform_1, window_bounds = array<i64: 128, 256>}, {transform_indices = @transform_2, window_bounds = array<i64: 1, 256>}, {transform_indices = @transform_3, window_bounds = array<i64: 64, 256>}]} {
    %c0 = arith.constant 0 : index
    %c0_0 = arith.constant 0 : index
    %0 = vector.load %arg2[%c0, %c0_0] : memref<64x128xbf16, #tpu.memory_space<vmem>>, vector<64x128xbf16>
    %c0_1 = arith.constant 0 : index
    %c0_2 = arith.constant 0 : index
    %1 = vector.load %arg3[%c0_1, %c0_2] : memref<128x256xbf16, #tpu.memory_space<vmem>>, vector<128x256xbf16>
    %cst = arith.constant dense<0.000000e+00> : vector<64x256xf32>
    %2 = tpu.matmul %0, %1, %cst {dimension_numbers = #tpu.dot_dimension_numbers<[1], [0], [0], [1], [0, 0, 1, 1], [], []>} : vector<64x128xbf16>, vector<128x256xbf16>, vector<64x256xf32> -> vector<64x256xf32>
    %c0_3 = arith.constant 0 : index
    %c0_4 = arith.constant 0 : index
    %3 = vector.load %arg4[%c0_3, %c0_4] : memref<1x256xf32, #tpu.memory_space<vmem>>, vector<1x256xf32>
    %4 = vector.broadcast %3 : vector<1x256xf32> to vector<64x256xf32>
    %5 = arith.addf %2, %4 : vector<64x256xf32>
    %c0_5 = arith.constant 0 : index
    %c0_6 = arith.constant 0 : index
    %6 = vector.load %arg5[%c0_5, %c0_6] : memref<64x256xf32, #tpu.memory_space<vmem>>, vector<64x256xf32>
    tpu.vector_store %arg5[%c0_5, %c0_6], %5 {strides = array<i32>} : memref<64x256xf32, #tpu.memory_space<vmem>>, vector<64x256xf32>,
    return
  }
  func.func @transform_0(%arg0: i32, %arg1: i32) -> (i32, i32) {
    %c0_i32 = arith.constant 0 : i32
    %c0_i32_0 = arith.constant 0 : i32
    return %arg0, %c0_i32 : i32, i32
  }
  func.func @transform_1(%arg0: i32, %arg1: i32) -> (i32, i32) {
    %c0_i32 = arith.constant 0 : i32
    %c0_i32_0 = arith.constant 0 : i32
    return %c0_i32, %arg1 : i32, i32
  }
  func.func @transform_2(%arg0: i32, %arg1: i32) -> (i32, i32) {
    %c0_i32 = arith.constant 0 : i32
    %c0_i32_0 = arith.constant 0 : i32
    return %c0_i32, %arg1 : i32, i32
  }
  func.func @transform_3(%arg0: i32, %arg1: i32) -> (i32, i32) {
    %c0_i32 = arith.constant 0 : i32
    return %arg0, %arg1 : i32, i32
  }
}

module attributes {stable_mosaic.version = 11 : i64} {
  func.func @_lstm_layer_kernel(%arg0: i32, %arg1: memref<64x128xbf16, #tpu.memory_space<vmem>>, %arg2: memref<128x512xbf16, #tpu.memory_space<vmem>>, %arg3: memref<128x512xbf16, #tpu.memory_space<vmem>>, %arg4: memref<1x512xf32, #tpu.memory_space<vmem>>, %arg5: memref<8x128xbf16, #tpu.memory_space<vmem>>, %arg6: memref<8x128xf32, #tpu.memory_space<vmem>>, %arg7: memref<64x128xbf16, #tpu.memory_space<vmem>>, %arg8: memref<8x128xbf16, #tpu.memory_space<vmem>>, %arg9: memref<8x128xf32, #tpu.memory_space<vmem>>, %arg10: memref<8x128xbf16, #tpu.memory_space<vmem>>, %arg11: memref<8x128xf32, #tpu.memory_space<vmem>>, %arg12: memref<64x512xf32, #tpu.memory_space<vmem>>) attributes {dimension_semantics = [#tpu.dimension_semantics<arbitrary>], iteration_bounds = array<i64: 1>, scalar_prefetch = 0 : i64, scratch_operands = 3 : i64, tpu.core_type = #tpu.core_type<tc>, window_params = [{transform_indices = @transform_0, window_bounds = array<i64: 64, 128>}, {pipeline_mode = #tpu.pipeline_mode<synchronous>, transform_indices = @transform_1, window_bounds = array<i64: 128, 512>}, {pipeline_mode = #tpu.pipeline_mode<synchronous>, transform_indices = @transform_2, window_bounds = array<i64: 128, 512>}, {pipeline_mode = #tpu.pipeline_mode<synchronous>, transform_indices = @transform_3, window_bounds = array<i64: 1, 512>}, {pipeline_mode = #tpu.pipeline_mode<synchronous>, transform_indices = @transform_4, window_bounds = array<i64: 8, 128>}, {pipeline_mode = #tpu.pipeline_mode<synchronous>, transform_indices = @transform_5, window_bounds = array<i64: 8, 128>}, {transform_indices = @transform_6, window_bounds = array<i64: 64, 128>}, {pipeline_mode = #tpu.pipeline_mode<synchronous>, transform_indices = @transform_7, window_bounds = array<i64: 8, 128>}, {pipeline_mode = #tpu.pipeline_mode<synchronous>, transform_indices = @transform_8, window_bounds = array<i64: 8, 128>}]} {
    %c0_i32 = arith.constant 0 : i32
    %0 = arith.cmpi eq, %arg0, %c0_i32 : i32
    %1 = arith.extui %0 : i1 to i32
    %c0_i32_0 = arith.constant 0 : i32
    %2 = arith.cmpi ne, %1, %c0_i32_0 : i32
    scf.if %2 {
      %c0_133 = arith.constant 0 : index
      %c0_134 = arith.constant 0 : index
      %326 = vector.load %arg5[%c0_133, %c0_134] : memref<8x128xbf16, #tpu.memory_space<vmem>>, vector<8x128xbf16>
      %c0_135 = arith.constant 0 : index
      %c0_136 = arith.constant 0 : index
      %327 = vector.load %arg10[%c0_135, %c0_136] : memref<8x128xbf16, #tpu.memory_space<vmem>>, vector<8x128xbf16>
      tpu.vector_store %arg10[%c0_135, %c0_136], %326 {strides = array<i32>} : memref<8x128xbf16, #tpu.memory_space<vmem>>, vector<8x128xbf16>,
      %c0_137 = arith.constant 0 : index
      %c0_138 = arith.constant 0 : index
      %328 = vector.load %arg6[%c0_137, %c0_138] : memref<8x128xf32, #tpu.memory_space<vmem>>, vector<8x128xf32>
      %c0_139 = arith.constant 0 : index
      %c0_140 = arith.constant 0 : index
      %329 = vector.load %arg11[%c0_139, %c0_140] : memref<8x128xf32, #tpu.memory_space<vmem>>, vector<8x128xf32>
      tpu.vector_store %arg11[%c0_139, %c0_140], %328 {strides = array<i32>} : memref<8x128xf32, #tpu.memory_space<vmem>>, vector<8x128xf32>,
    } else {
    }
    %c0 = arith.constant 0 : index
    %c0_1 = arith.constant 0 : index
    %3 = vector.load %arg1[%c0, %c0_1] : memref<64x128xbf16, #tpu.memory_space<vmem>>, vector<64x128xbf16>
    %c0_2 = arith.constant 0 : index
    %c0_3 = arith.constant 0 : index
    %4 = vector.load %arg2[%c0_2, %c0_3] : memref<128x512xbf16, #tpu.memory_space<vmem>>, vector<128x512xbf16>
    %cst = arith.constant dense<0.000000e+00> : vector<64x512xf32>
    %5 = tpu.matmul %3, %4, %cst {dimension_numbers = #tpu.dot_dimension_numbers<[1], [0], [0], [1], [0, 0, 1, 1], [], []>} : vector<64x128xbf16>, vector<128x512xbf16>, vector<64x512xf32> -> vector<64x512xf32>
    %c0_4 = arith.constant 0 : index
    %c0_5 = arith.constant 0 : index
    %6 = vector.load %arg4[%c0_4, %c0_5] : memref<1x512xf32, #tpu.memory_space<vmem>>, vector<1x512xf32>
    %7 = vector.broadcast %6 : vector<1x512xf32> to vector<64x512xf32>
    %8 = arith.addf %5, %7 : vector<64x512xf32>
    %c0_6 = arith.constant 0 : index
    %c0_7 = arith.constant 0 : index
    %9 = vector.load %arg12[%c0_6, %c0_7] : memref<64x512xf32, #tpu.memory_space<vmem>>, vector<64x512xf32>
    tpu.vector_store %arg12[%c0_6, %c0_7], %8 {strides = array<i32>} : memref<64x512xf32, #tpu.memory_space<vmem>>, vector<64x512xf32>,
    %c0_8 = arith.constant 0 : index
    %c0_9 = arith.constant 0 : index
    %10 = vector.load %arg3[%c0_8, %c0_9] : memref<128x512xbf16, #tpu.memory_space<vmem>>, vector<128x512xbf16>
    %c0_i32_10 = arith.constant 0 : i32
    %c8_i32 = arith.constant 8 : i32
    %11 = arith.muli %c0_i32_10, %c8_i32 : i32
    %12 = tpu.assume_multiple %11, 8 : i32
    %c0_11 = arith.constant 0 : index
    %c0_12 = arith.constant 0 : index
    %13 = vector.load %arg10[%c0_11, %c0_12] : memref<8x128xbf16, #tpu.memory_space<vmem>>, vector<8x128xbf16>
    %c0_13 = arith.constant 0 : index
    %c0_14 = arith.constant 0 : index
    %14 = vector.load %arg11[%c0_13, %c0_14] : memref<8x128xf32, #tpu.memory_space<vmem>>, vector<8x128xf32>
    %15 = arith.index_cast %12 : i32 to index
    %c0_15 = arith.constant 0 : index
    %16 = vector.load %arg12[%15, %c0_15] : memref<64x512xf32, #tpu.memory_space<vmem>>, vector<8x512xf32>
    %cst_16 = arith.constant dense<0.000000e+00> : vector<8x512xf32>
    %17 = tpu.matmul %13, %10, %cst_16 {dimension_numbers = #tpu.dot_dimension_numbers<[1], [0], [0], [1], [0, 0, 1, 1], [], []>} : vector<8x128xbf16>, vector<128x512xbf16>, vector<8x512xf32> -> vector<8x512xf32>
    %18 = arith.addf %16, %17 : vector<8x512xf32>
    %19 = vector.extract_strided_slice %18 {offsets = [0, 0], sizes = [8, 128], strides = [1, 1]} : vector<8x512xf32> to vector<8x128xf32>
    %20 = arith.negf %19 : vector<8x128xf32>
    %21 = math.exp %20 : vector<8x128xf32>
    %cst_17 = arith.constant 1.000000e+00 : f32
    %22 = vector.broadcast %cst_17 : f32 to vector<8x128xf32>
    %23 = arith.addf %22, %21 : vector<8x128xf32>
    %24 = arith.divf %22, %23 : vector<8x128xf32>
    %25 = vector.extract_strided_slice %18 {offsets = [0, 128], sizes = [8, 128], strides = [1, 1]} : vector<8x512xf32> to vector<8x128xf32>
    %26 = arith.negf %25 : vector<8x128xf32>
    %27 = math.exp %26 : vector<8x128xf32>
    %cst_18 = arith.constant 1.000000e+00 : f32
    %28 = vector.broadcast %cst_18 : f32 to vector<8x128xf32>
    %29 = arith.addf %28, %27 : vector<8x128xf32>
    %30 = arith.divf %28, %29 : vector<8x128xf32>
    %31 = vector.extract_strided_slice %18 {offsets = [0, 256], sizes = [8, 128], strides = [1, 1]} : vector<8x512xf32> to vector<8x128xf32>
    %32 = math.tanh %31 : vector<8x128xf32>
    %33 = vector.extract_strided_slice %18 {offsets = [0, 384], sizes = [8, 128], strides = [1, 1]} : vector<8x512xf32> to vector<8x128xf32>
    %34 = arith.negf %33 : vector<8x128xf32>
    %35 = math.exp %34 : vector<8x128xf32>
    %cst_19 = arith.constant 1.000000e+00 : f32
    %36 = vector.broadcast %cst_19 : f32 to vector<8x128xf32>
    %37 = arith.addf %36, %35 : vector<8x128xf32>
    %38 = arith.divf %36, %37 : vector<8x128xf32>
    %39 = arith.mulf %30, %14 : vector<8x128xf32>
    %40 = arith.mulf %24, %32 : vector<8x128xf32>
    %41 = arith.addf %39, %40 : vector<8x128xf32>
    %42 = math.tanh %41 : vector<8x128xf32>
    %43 = arith.mulf %38, %42 : vector<8x128xf32>
    %44 = arith.truncf %43 : vector<8x128xf32> to vector<8x128xbf16>
    %c0_20 = arith.constant 0 : index
    %c0_21 = arith.constant 0 : index
    %45 = vector.load %arg10[%c0_20, %c0_21] : memref<8x128xbf16, #tpu.memory_space<vmem>>, vector<8x128xbf16>
    tpu.vector_store %arg10[%c0_20, %c0_21], %44 {strides = array<i32>} : memref<8x128xbf16, #tpu.memory_space<vmem>>, vector<8x128xbf16>,
    %c0_22 = arith.constant 0 : index
    %c0_23 = arith.constant 0 : index
    %46 = vector.load %arg11[%c0_22, %c0_23] : memref<8x128xf32, #tpu.memory_space<vmem>>, vector<8x128xf32>
    tpu.vector_store %arg11[%c0_22, %c0_23], %41 {strides = array<i32>} : memref<8x128xf32, #tpu.memory_space<vmem>>, vector<8x128xf32>,
    %47 = arith.truncf %43 : vector<8x128xf32> to vector<8x128xbf16>
    %48 = arith.index_cast %12 : i32 to index
    %c0_24 = arith.constant 0 : index
    %49 = vector.load %arg7[%48, %c0_24] : memref<64x128xbf16, #tpu.memory_space<vmem>>, vector<8x128xbf16>
    tpu.vector_store %arg7[%48, %c0_24], %47 {strides = array<i32>} : memref<64x128xbf16, #tpu.memory_space<vmem>>, vector<8x128xbf16>,
    %c1_i32 = arith.constant 1 : i32
    %c8_i32_25 = arith.constant 8 : i32
    %50 = arith.muli %c1_i32, %c8_i32_25 : i32
    %51 = tpu.assume_multiple %50, 8 : i32
    %c0_26 = arith.constant 0 : index
    %c0_27 = arith.constant 0 : index
    %52 = vector.load %arg10[%c0_26, %c0_27] : memref<8x128xbf16, #tpu.memory_space<vmem>>, vector<8x128xbf16>
    %c0_28 = arith.constant 0 : index
    %c0_29 = arith.constant 0 : index
    %53 = vector.load %arg11[%c0_28, %c0_29] : memref<8x128xf32, #tpu.memory_space<vmem>>, vector<8x128xf32>
    %54 = arith.index_cast %51 : i32 to index
    %c0_30 = arith.constant 0 : index
    %55 = vector.load %arg12[%54, %c0_30] : memref<64x512xf32, #tpu.memory_space<vmem>>, vector<8x512xf32>
    %cst_31 = arith.constant dense<0.000000e+00> : vector<8x512xf32>
    %56 = tpu.matmul %52, %10, %cst_31 {dimension_numbers = #tpu.dot_dimension_numbers<[1], [0], [0], [1], [0, 0, 1, 1], [], []>} : vector<8x128xbf16>, vector<128x512xbf16>, vector<8x512xf32> -> vector<8x512xf32>
    %57 = arith.addf %55, %56 : vector<8x512xf32>
    %58 = vector.extract_strided_slice %57 {offsets = [0, 0], sizes = [8, 128], strides = [1, 1]} : vector<8x512xf32> to vector<8x128xf32>
    %59 = arith.negf %58 : vector<8x128xf32>
    %60 = math.exp %59 : vector<8x128xf32>
    %cst_32 = arith.constant 1.000000e+00 : f32
    %61 = vector.broadcast %cst_32 : f32 to vector<8x128xf32>
    %62 = arith.addf %61, %60 : vector<8x128xf32>
    %63 = arith.divf %61, %62 : vector<8x128xf32>
    %64 = vector.extract_strided_slice %57 {offsets = [0, 128], sizes = [8, 128], strides = [1, 1]} : vector<8x512xf32> to vector<8x128xf32>
    %65 = arith.negf %64 : vector<8x128xf32>
    %66 = math.exp %65 : vector<8x128xf32>
    %cst_33 = arith.constant 1.000000e+00 : f32
    %67 = vector.broadcast %cst_33 : f32 to vector<8x128xf32>
    %68 = arith.addf %67, %66 : vector<8x128xf32>
    %69 = arith.divf %67, %68 : vector<8x128xf32>
    %70 = vector.extract_strided_slice %57 {offsets = [0, 256], sizes = [8, 128], strides = [1, 1]} : vector<8x512xf32> to vector<8x128xf32>
    %71 = math.tanh %70 : vector<8x128xf32>
    %72 = vector.extract_strided_slice %57 {offsets = [0, 384], sizes = [8, 128], strides = [1, 1]} : vector<8x512xf32> to vector<8x128xf32>
    %73 = arith.negf %72 : vector<8x128xf32>
    %74 = math.exp %73 : vector<8x128xf32>
    %cst_34 = arith.constant 1.000000e+00 : f32
    %75 = vector.broadcast %cst_34 : f32 to vector<8x128xf32>
    %76 = arith.addf %75, %74 : vector<8x128xf32>
    %77 = arith.divf %75, %76 : vector<8x128xf32>
    %78 = arith.mulf %69, %53 : vector<8x128xf32>
    %79 = arith.mulf %63, %71 : vector<8x128xf32>
    %80 = arith.addf %78, %79 : vector<8x128xf32>
    %81 = math.tanh %80 : vector<8x128xf32>
    %82 = arith.mulf %77, %81 : vector<8x128xf32>
    %83 = arith.truncf %82 : vector<8x128xf32> to vector<8x128xbf16>
    %c0_35 = arith.constant 0 : index
    %c0_36 = arith.constant 0 : index
    %84 = vector.load %arg10[%c0_35, %c0_36] : memref<8x128xbf16, #tpu.memory_space<vmem>>, vector<8x128xbf16>
    tpu.vector_store %arg10[%c0_35, %c0_36], %83 {strides = array<i32>} : memref<8x128xbf16, #tpu.memory_space<vmem>>, vector<8x128xbf16>,
    %c0_37 = arith.constant 0 : index
    %c0_38 = arith.constant 0 : index
    %85 = vector.load %arg11[%c0_37, %c0_38] : memref<8x128xf32, #tpu.memory_space<vmem>>, vector<8x128xf32>
    tpu.vector_store %arg11[%c0_37, %c0_38], %80 {strides = array<i32>} : memref<8x128xf32, #tpu.memory_space<vmem>>, vector<8x128xf32>,
    %86 = arith.truncf %82 : vector<8x128xf32> to vector<8x128xbf16>
    %87 = arith.index_cast %51 : i32 to index
    %c0_39 = arith.constant 0 : index
    %88 = vector.load %arg7[%87, %c0_39] : memref<64x128xbf16, #tpu.memory_space<vmem>>, vector<8x128xbf16>
    tpu.vector_store %arg7[%87, %c0_39], %86 {strides = array<i32>} : memref<64x128xbf16, #tpu.memory_space<vmem>>, vector<8x128xbf16>,
    %c2_i32 = arith.constant 2 : i32
    %c8_i32_40 = arith.constant 8 : i32
    %89 = arith.muli %c2_i32, %c8_i32_40 : i32
    %90 = tpu.assume_multiple %89, 8 : i32
    %c0_41 = arith.constant 0 : index
    %c0_42 = arith.constant 0 : index
    %91 = vector.load %arg10[%c0_41, %c0_42] : memref<8x128xbf16, #tpu.memory_space<vmem>>, vector<8x128xbf16>
    %c0_43 = arith.constant 0 : index
    %c0_44 = arith.constant 0 : index
    %92 = vector.load %arg11[%c0_43, %c0_44] : memref<8x128xf32, #tpu.memory_space<vmem>>, vector<8x128xf32>
    %93 = arith.index_cast %90 : i32 to index
    %c0_45 = arith.constant 0 : index
    %94 = vector.load %arg12[%93, %c0_45] : memref<64x512xf32, #tpu.memory_space<vmem>>, vector<8x512xf32>
    %cst_46 = arith.constant dense<0.000000e+00> : vector<8x512xf32>
    %95 = tpu.matmul %91, %10, %cst_46 {dimension_numbers = #tpu.dot_dimension_numbers<[1], [0], [0], [1], [0, 0, 1, 1], [], []>} : vector<8x128xbf16>, vector<128x512xbf16>, vector<8x512xf32> -> vector<8x512xf32>
    %96 = arith.addf %94, %95 : vector<8x512xf32>
    %97 = vector.extract_strided_slice %96 {offsets = [0, 0], sizes = [8, 128], strides = [1, 1]} : vector<8x512xf32> to vector<8x128xf32>
    %98 = arith.negf %97 : vector<8x128xf32>
    %99 = math.exp %98 : vector<8x128xf32>
    %cst_47 = arith.constant 1.000000e+00 : f32
    %100 = vector.broadcast %cst_47 : f32 to vector<8x128xf32>
    %101 = arith.addf %100, %99 : vector<8x128xf32>
    %102 = arith.divf %100, %101 : vector<8x128xf32>
    %103 = vector.extract_strided_slice %96 {offsets = [0, 128], sizes = [8, 128], strides = [1, 1]} : vector<8x512xf32> to vector<8x128xf32>
    %104 = arith.negf %103 : vector<8x128xf32>
    %105 = math.exp %104 : vector<8x128xf32>
    %cst_48 = arith.constant 1.000000e+00 : f32
    %106 = vector.broadcast %cst_48 : f32 to vector<8x128xf32>
    %107 = arith.addf %106, %105 : vector<8x128xf32>
    %108 = arith.divf %106, %107 : vector<8x128xf32>
    %109 = vector.extract_strided_slice %96 {offsets = [0, 256], sizes = [8, 128], strides = [1, 1]} : vector<8x512xf32> to vector<8x128xf32>
    %110 = math.tanh %109 : vector<8x128xf32>
    %111 = vector.extract_strided_slice %96 {offsets = [0, 384], sizes = [8, 128], strides = [1, 1]} : vector<8x512xf32> to vector<8x128xf32>
    %112 = arith.negf %111 : vector<8x128xf32>
    %113 = math.exp %112 : vector<8x128xf32>
    %cst_49 = arith.constant 1.000000e+00 : f32
    %114 = vector.broadcast %cst_49 : f32 to vector<8x128xf32>
    %115 = arith.addf %114, %113 : vector<8x128xf32>
    %116 = arith.divf %114, %115 : vector<8x128xf32>
    %117 = arith.mulf %108, %92 : vector<8x128xf32>
    %118 = arith.mulf %102, %110 : vector<8x128xf32>
    %119 = arith.addf %117, %118 : vector<8x128xf32>
    %120 = math.tanh %119 : vector<8x128xf32>
    %121 = arith.mulf %116, %120 : vector<8x128xf32>
    %122 = arith.truncf %121 : vector<8x128xf32> to vector<8x128xbf16>
    %c0_50 = arith.constant 0 : index
    %c0_51 = arith.constant 0 : index
    %123 = vector.load %arg10[%c0_50, %c0_51] : memref<8x128xbf16, #tpu.memory_space<vmem>>, vector<8x128xbf16>
    tpu.vector_store %arg10[%c0_50, %c0_51], %122 {strides = array<i32>} : memref<8x128xbf16, #tpu.memory_space<vmem>>, vector<8x128xbf16>,
    %c0_52 = arith.constant 0 : index
    %c0_53 = arith.constant 0 : index
    %124 = vector.load %arg11[%c0_52, %c0_53] : memref<8x128xf32, #tpu.memory_space<vmem>>, vector<8x128xf32>
    tpu.vector_store %arg11[%c0_52, %c0_53], %119 {strides = array<i32>} : memref<8x128xf32, #tpu.memory_space<vmem>>, vector<8x128xf32>,
    %125 = arith.truncf %121 : vector<8x128xf32> to vector<8x128xbf16>
    %126 = arith.index_cast %90 : i32 to index
    %c0_54 = arith.constant 0 : index
    %127 = vector.load %arg7[%126, %c0_54] : memref<64x128xbf16, #tpu.memory_space<vmem>>, vector<8x128xbf16>
    tpu.vector_store %arg7[%126, %c0_54], %125 {strides = array<i32>} : memref<64x128xbf16, #tpu.memory_space<vmem>>, vector<8x128xbf16>,
    %c3_i32 = arith.constant 3 : i32
    %c8_i32_55 = arith.constant 8 : i32
    %128 = arith.muli %c3_i32, %c8_i32_55 : i32
    %129 = tpu.assume_multiple %128, 8 : i32
    %c0_56 = arith.constant 0 : index
    %c0_57 = arith.constant 0 : index
    %130 = vector.load %arg10[%c0_56, %c0_57] : memref<8x128xbf16, #tpu.memory_space<vmem>>, vector<8x128xbf16>
    %c0_58 = arith.constant 0 : index
    %c0_59 = arith.constant 0 : index
    %131 = vector.load %arg11[%c0_58, %c0_59] : memref<8x128xf32, #tpu.memory_space<vmem>>, vector<8x128xf32>
    %132 = arith.index_cast %129 : i32 to index
    %c0_60 = arith.constant 0 : index
    %133 = vector.load %arg12[%132, %c0_60] : memref<64x512xf32, #tpu.memory_space<vmem>>, vector<8x512xf32>
    %cst_61 = arith.constant dense<0.000000e+00> : vector<8x512xf32>
    %134 = tpu.matmul %130, %10, %cst_61 {dimension_numbers = #tpu.dot_dimension_numbers<[1], [0], [0], [1], [0, 0, 1, 1], [], []>} : vector<8x128xbf16>, vector<128x512xbf16>, vector<8x512xf32> -> vector<8x512xf32>
    %135 = arith.addf %133, %134 : vector<8x512xf32>
    %136 = vector.extract_strided_slice %135 {offsets = [0, 0], sizes = [8, 128], strides = [1, 1]} : vector<8x512xf32> to vector<8x128xf32>
    %137 = arith.negf %136 : vector<8x128xf32>
    %138 = math.exp %137 : vector<8x128xf32>
    %cst_62 = arith.constant 1.000000e+00 : f32
    %139 = vector.broadcast %cst_62 : f32 to vector<8x128xf32>
    %140 = arith.addf %139, %138 : vector<8x128xf32>
    %141 = arith.divf %139, %140 : vector<8x128xf32>
    %142 = vector.extract_strided_slice %135 {offsets = [0, 128], sizes = [8, 128], strides = [1, 1]} : vector<8x512xf32> to vector<8x128xf32>
    %143 = arith.negf %142 : vector<8x128xf32>
    %144 = math.exp %143 : vector<8x128xf32>
    %cst_63 = arith.constant 1.000000e+00 : f32
    %145 = vector.broadcast %cst_63 : f32 to vector<8x128xf32>
    %146 = arith.addf %145, %144 : vector<8x128xf32>
    %147 = arith.divf %145, %146 : vector<8x128xf32>
    %148 = vector.extract_strided_slice %135 {offsets = [0, 256], sizes = [8, 128], strides = [1, 1]} : vector<8x512xf32> to vector<8x128xf32>
    %149 = math.tanh %148 : vector<8x128xf32>
    %150 = vector.extract_strided_slice %135 {offsets = [0, 384], sizes = [8, 128], strides = [1, 1]} : vector<8x512xf32> to vector<8x128xf32>
    %151 = arith.negf %150 : vector<8x128xf32>
    %152 = math.exp %151 : vector<8x128xf32>
    %cst_64 = arith.constant 1.000000e+00 : f32
    %153 = vector.broadcast %cst_64 : f32 to vector<8x128xf32>
    %154 = arith.addf %153, %152 : vector<8x128xf32>
    %155 = arith.divf %153, %154 : vector<8x128xf32>
    %156 = arith.mulf %147, %131 : vector<8x128xf32>
    %157 = arith.mulf %141, %149 : vector<8x128xf32>
    %158 = arith.addf %156, %157 : vector<8x128xf32>
    %159 = math.tanh %158 : vector<8x128xf32>
    %160 = arith.mulf %155, %159 : vector<8x128xf32>
    %161 = arith.truncf %160 : vector<8x128xf32> to vector<8x128xbf16>
    %c0_65 = arith.constant 0 : index
    %c0_66 = arith.constant 0 : index
    %162 = vector.load %arg10[%c0_65, %c0_66] : memref<8x128xbf16, #tpu.memory_space<vmem>>, vector<8x128xbf16>
    tpu.vector_store %arg10[%c0_65, %c0_66], %161 {strides = array<i32>} : memref<8x128xbf16, #tpu.memory_space<vmem>>, vector<8x128xbf16>,
    %c0_67 = arith.constant 0 : index
    %c0_68 = arith.constant 0 : index
    %163 = vector.load %arg11[%c0_67, %c0_68] : memref<8x128xf32, #tpu.memory_space<vmem>>, vector<8x128xf32>
    tpu.vector_store %arg11[%c0_67, %c0_68], %158 {strides = array<i32>} : memref<8x128xf32, #tpu.memory_space<vmem>>, vector<8x128xf32>,
    %164 = arith.truncf %160 : vector<8x128xf32> to vector<8x128xbf16>
    %165 = arith.index_cast %129 : i32 to index
    %c0_69 = arith.constant 0 : index
    %166 = vector.load %arg7[%165, %c0_69] : memref<64x128xbf16, #tpu.memory_space<vmem>>, vector<8x128xbf16>
    tpu.vector_store %arg7[%165, %c0_69], %164 {strides = array<i32>} : memref<64x128xbf16, #tpu.memory_space<vmem>>, vector<8x128xbf16>,
    %c4_i32 = arith.constant 4 : i32
    %c8_i32_70 = arith.constant 8 : i32
    %167 = arith.muli %c4_i32, %c8_i32_70 : i32
    %168 = tpu.assume_multiple %167, 8 : i32
    %c0_71 = arith.constant 0 : index
    %c0_72 = arith.constant 0 : index
    %169 = vector.load %arg10[%c0_71, %c0_72] : memref<8x128xbf16, #tpu.memory_space<vmem>>, vector<8x128xbf16>
    %c0_73 = arith.constant 0 : index
    %c0_74 = arith.constant 0 : index
    %170 = vector.load %arg11[%c0_73, %c0_74] : memref<8x128xf32, #tpu.memory_space<vmem>>, vector<8x128xf32>
    %171 = arith.index_cast %168 : i32 to index
    %c0_75 = arith.constant 0 : index
    %172 = vector.load %arg12[%171, %c0_75] : memref<64x512xf32, #tpu.memory_space<vmem>>, vector<8x512xf32>
    %cst_76 = arith.constant dense<0.000000e+00> : vector<8x512xf32>
    %173 = tpu.matmul %169, %10, %cst_76 {dimension_numbers = #tpu.dot_dimension_numbers<[1], [0], [0], [1], [0, 0, 1, 1], [], []>} : vector<8x128xbf16>, vector<128x512xbf16>, vector<8x512xf32> -> vector<8x512xf32>
    %174 = arith.addf %172, %173 : vector<8x512xf32>
    %175 = vector.extract_strided_slice %174 {offsets = [0, 0], sizes = [8, 128], strides = [1, 1]} : vector<8x512xf32> to vector<8x128xf32>
    %176 = arith.negf %175 : vector<8x128xf32>
    %177 = math.exp %176 : vector<8x128xf32>
    %cst_77 = arith.constant 1.000000e+00 : f32
    %178 = vector.broadcast %cst_77 : f32 to vector<8x128xf32>
    %179 = arith.addf %178, %177 : vector<8x128xf32>
    %180 = arith.divf %178, %179 : vector<8x128xf32>
    %181 = vector.extract_strided_slice %174 {offsets = [0, 128], sizes = [8, 128], strides = [1, 1]} : vector<8x512xf32> to vector<8x128xf32>
    %182 = arith.negf %181 : vector<8x128xf32>
    %183 = math.exp %182 : vector<8x128xf32>
    %cst_78 = arith.constant 1.000000e+00 : f32
    %184 = vector.broadcast %cst_78 : f32 to vector<8x128xf32>
    %185 = arith.addf %184, %183 : vector<8x128xf32>
    %186 = arith.divf %184, %185 : vector<8x128xf32>
    %187 = vector.extract_strided_slice %174 {offsets = [0, 256], sizes = [8, 128], strides = [1, 1]} : vector<8x512xf32> to vector<8x128xf32>
    %188 = math.tanh %187 : vector<8x128xf32>
    %189 = vector.extract_strided_slice %174 {offsets = [0, 384], sizes = [8, 128], strides = [1, 1]} : vector<8x512xf32> to vector<8x128xf32>
    %190 = arith.negf %189 : vector<8x128xf32>
    %191 = math.exp %190 : vector<8x128xf32>
    %cst_79 = arith.constant 1.000000e+00 : f32
    %192 = vector.broadcast %cst_79 : f32 to vector<8x128xf32>
    %193 = arith.addf %192, %191 : vector<8x128xf32>
    %194 = arith.divf %192, %193 : vector<8x128xf32>
    %195 = arith.mulf %186, %170 : vector<8x128xf32>
    %196 = arith.mulf %180, %188 : vector<8x128xf32>
    %197 = arith.addf %195, %196 : vector<8x128xf32>
    %198 = math.tanh %197 : vector<8x128xf32>
    %199 = arith.mulf %194, %198 : vector<8x128xf32>
    %200 = arith.truncf %199 : vector<8x128xf32> to vector<8x128xbf16>
    %c0_80 = arith.constant 0 : index
    %c0_81 = arith.constant 0 : index
    %201 = vector.load %arg10[%c0_80, %c0_81] : memref<8x128xbf16, #tpu.memory_space<vmem>>, vector<8x128xbf16>
    tpu.vector_store %arg10[%c0_80, %c0_81], %200 {strides = array<i32>} : memref<8x128xbf16, #tpu.memory_space<vmem>>, vector<8x128xbf16>,
    %c0_82 = arith.constant 0 : index
    %c0_83 = arith.constant 0 : index
    %202 = vector.load %arg11[%c0_82, %c0_83] : memref<8x128xf32, #tpu.memory_space<vmem>>, vector<8x128xf32>
    tpu.vector_store %arg11[%c0_82, %c0_83], %197 {strides = array<i32>} : memref<8x128xf32, #tpu.memory_space<vmem>>, vector<8x128xf32>,
    %203 = arith.truncf %199 : vector<8x128xf32> to vector<8x128xbf16>
    %204 = arith.index_cast %168 : i32 to index
    %c0_84 = arith.constant 0 : index
    %205 = vector.load %arg7[%204, %c0_84] : memref<64x128xbf16, #tpu.memory_space<vmem>>, vector<8x128xbf16>
    tpu.vector_store %arg7[%204, %c0_84], %203 {strides = array<i32>} : memref<64x128xbf16, #tpu.memory_space<vmem>>, vector<8x128xbf16>,
    %c5_i32 = arith.constant 5 : i32
    %c8_i32_85 = arith.constant 8 : i32
    %206 = arith.muli %c5_i32, %c8_i32_85 : i32
    %207 = tpu.assume_multiple %206, 8 : i32
    %c0_86 = arith.constant 0 : index
    %c0_87 = arith.constant 0 : index
    %208 = vector.load %arg10[%c0_86, %c0_87] : memref<8x128xbf16, #tpu.memory_space<vmem>>, vector<8x128xbf16>
    %c0_88 = arith.constant 0 : index
    %c0_89 = arith.constant 0 : index
    %209 = vector.load %arg11[%c0_88, %c0_89] : memref<8x128xf32, #tpu.memory_space<vmem>>, vector<8x128xf32>
    %210 = arith.index_cast %207 : i32 to index
    %c0_90 = arith.constant 0 : index
    %211 = vector.load %arg12[%210, %c0_90] : memref<64x512xf32, #tpu.memory_space<vmem>>, vector<8x512xf32>
    %cst_91 = arith.constant dense<0.000000e+00> : vector<8x512xf32>
    %212 = tpu.matmul %208, %10, %cst_91 {dimension_numbers = #tpu.dot_dimension_numbers<[1], [0], [0], [1], [0, 0, 1, 1], [], []>} : vector<8x128xbf16>, vector<128x512xbf16>, vector<8x512xf32> -> vector<8x512xf32>
    %213 = arith.addf %211, %212 : vector<8x512xf32>
    %214 = vector.extract_strided_slice %213 {offsets = [0, 0], sizes = [8, 128], strides = [1, 1]} : vector<8x512xf32> to vector<8x128xf32>
    %215 = arith.negf %214 : vector<8x128xf32>
    %216 = math.exp %215 : vector<8x128xf32>
    %cst_92 = arith.constant 1.000000e+00 : f32
    %217 = vector.broadcast %cst_92 : f32 to vector<8x128xf32>
    %218 = arith.addf %217, %216 : vector<8x128xf32>
    %219 = arith.divf %217, %218 : vector<8x128xf32>
    %220 = vector.extract_strided_slice %213 {offsets = [0, 128], sizes = [8, 128], strides = [1, 1]} : vector<8x512xf32> to vector<8x128xf32>
    %221 = arith.negf %220 : vector<8x128xf32>
    %222 = math.exp %221 : vector<8x128xf32>
    %cst_93 = arith.constant 1.000000e+00 : f32
    %223 = vector.broadcast %cst_93 : f32 to vector<8x128xf32>
    %224 = arith.addf %223, %222 : vector<8x128xf32>
    %225 = arith.divf %223, %224 : vector<8x128xf32>
    %226 = vector.extract_strided_slice %213 {offsets = [0, 256], sizes = [8, 128], strides = [1, 1]} : vector<8x512xf32> to vector<8x128xf32>
    %227 = math.tanh %226 : vector<8x128xf32>
    %228 = vector.extract_strided_slice %213 {offsets = [0, 384], sizes = [8, 128], strides = [1, 1]} : vector<8x512xf32> to vector<8x128xf32>
    %229 = arith.negf %228 : vector<8x128xf32>
    %230 = math.exp %229 : vector<8x128xf32>
    %cst_94 = arith.constant 1.000000e+00 : f32
    %231 = vector.broadcast %cst_94 : f32 to vector<8x128xf32>
    %232 = arith.addf %231, %230 : vector<8x128xf32>
    %233 = arith.divf %231, %232 : vector<8x128xf32>
    %234 = arith.mulf %225, %209 : vector<8x128xf32>
    %235 = arith.mulf %219, %227 : vector<8x128xf32>
    %236 = arith.addf %234, %235 : vector<8x128xf32>
    %237 = math.tanh %236 : vector<8x128xf32>
    %238 = arith.mulf %233, %237 : vector<8x128xf32>
    %239 = arith.truncf %238 : vector<8x128xf32> to vector<8x128xbf16>
    %c0_95 = arith.constant 0 : index
    %c0_96 = arith.constant 0 : index
    %240 = vector.load %arg10[%c0_95, %c0_96] : memref<8x128xbf16, #tpu.memory_space<vmem>>, vector<8x128xbf16>
    tpu.vector_store %arg10[%c0_95, %c0_96], %239 {strides = array<i32>} : memref<8x128xbf16, #tpu.memory_space<vmem>>, vector<8x128xbf16>,
    %c0_97 = arith.constant 0 : index
    %c0_98 = arith.constant 0 : index
    %241 = vector.load %arg11[%c0_97, %c0_98] : memref<8x128xf32, #tpu.memory_space<vmem>>, vector<8x128xf32>
    tpu.vector_store %arg11[%c0_97, %c0_98], %236 {strides = array<i32>} : memref<8x128xf32, #tpu.memory_space<vmem>>, vector<8x128xf32>,
    %242 = arith.truncf %238 : vector<8x128xf32> to vector<8x128xbf16>
    %243 = arith.index_cast %207 : i32 to index
    %c0_99 = arith.constant 0 : index
    %244 = vector.load %arg7[%243, %c0_99] : memref<64x128xbf16, #tpu.memory_space<vmem>>, vector<8x128xbf16>
    tpu.vector_store %arg7[%243, %c0_99], %242 {strides = array<i32>} : memref<64x128xbf16, #tpu.memory_space<vmem>>, vector<8x128xbf16>,
    %c6_i32 = arith.constant 6 : i32
    %c8_i32_100 = arith.constant 8 : i32
    %245 = arith.muli %c6_i32, %c8_i32_100 : i32
    %246 = tpu.assume_multiple %245, 8 : i32
    %c0_101 = arith.constant 0 : index
    %c0_102 = arith.constant 0 : index
    %247 = vector.load %arg10[%c0_101, %c0_102] : memref<8x128xbf16, #tpu.memory_space<vmem>>, vector<8x128xbf16>
    %c0_103 = arith.constant 0 : index
    %c0_104 = arith.constant 0 : index
    %248 = vector.load %arg11[%c0_103, %c0_104] : memref<8x128xf32, #tpu.memory_space<vmem>>, vector<8x128xf32>
    %249 = arith.index_cast %246 : i32 to index
    %c0_105 = arith.constant 0 : index
    %250 = vector.load %arg12[%249, %c0_105] : memref<64x512xf32, #tpu.memory_space<vmem>>, vector<8x512xf32>
    %cst_106 = arith.constant dense<0.000000e+00> : vector<8x512xf32>
    %251 = tpu.matmul %247, %10, %cst_106 {dimension_numbers = #tpu.dot_dimension_numbers<[1], [0], [0], [1], [0, 0, 1, 1], [], []>} : vector<8x128xbf16>, vector<128x512xbf16>, vector<8x512xf32> -> vector<8x512xf32>
    %252 = arith.addf %250, %251 : vector<8x512xf32>
    %253 = vector.extract_strided_slice %252 {offsets = [0, 0], sizes = [8, 128], strides = [1, 1]} : vector<8x512xf32> to vector<8x128xf32>
    %254 = arith.negf %253 : vector<8x128xf32>
    %255 = math.exp %254 : vector<8x128xf32>
    %cst_107 = arith.constant 1.000000e+00 : f32
    %256 = vector.broadcast %cst_107 : f32 to vector<8x128xf32>
    %257 = arith.addf %256, %255 : vector<8x128xf32>
    %258 = arith.divf %256, %257 : vector<8x128xf32>
    %259 = vector.extract_strided_slice %252 {offsets = [0, 128], sizes = [8, 128], strides = [1, 1]} : vector<8x512xf32> to vector<8x128xf32>
    %260 = arith.negf %259 : vector<8x128xf32>
    %261 = math.exp %260 : vector<8x128xf32>
    %cst_108 = arith.constant 1.000000e+00 : f32
    %262 = vector.broadcast %cst_108 : f32 to vector<8x128xf32>
    %263 = arith.addf %262, %261 : vector<8x128xf32>
    %264 = arith.divf %262, %263 : vector<8x128xf32>
    %265 = vector.extract_strided_slice %252 {offsets = [0, 256], sizes = [8, 128], strides = [1, 1]} : vector<8x512xf32> to vector<8x128xf32>
    %266 = math.tanh %265 : vector<8x128xf32>
    %267 = vector.extract_strided_slice %252 {offsets = [0, 384], sizes = [8, 128], strides = [1, 1]} : vector<8x512xf32> to vector<8x128xf32>
    %268 = arith.negf %267 : vector<8x128xf32>
    %269 = math.exp %268 : vector<8x128xf32>
    %cst_109 = arith.constant 1.000000e+00 : f32
    %270 = vector.broadcast %cst_109 : f32 to vector<8x128xf32>
    %271 = arith.addf %270, %269 : vector<8x128xf32>
    %272 = arith.divf %270, %271 : vector<8x128xf32>
    %273 = arith.mulf %264, %248 : vector<8x128xf32>
    %274 = arith.mulf %258, %266 : vector<8x128xf32>
    %275 = arith.addf %273, %274 : vector<8x128xf32>
    %276 = math.tanh %275 : vector<8x128xf32>
    %277 = arith.mulf %272, %276 : vector<8x128xf32>
    %278 = arith.truncf %277 : vector<8x128xf32> to vector<8x128xbf16>
    %c0_110 = arith.constant 0 : index
    %c0_111 = arith.constant 0 : index
    %279 = vector.load %arg10[%c0_110, %c0_111] : memref<8x128xbf16, #tpu.memory_space<vmem>>, vector<8x128xbf16>
    tpu.vector_store %arg10[%c0_110, %c0_111], %278 {strides = array<i32>} : memref<8x128xbf16, #tpu.memory_space<vmem>>, vector<8x128xbf16>,
    %c0_112 = arith.constant 0 : index
    %c0_113 = arith.constant 0 : index
    %280 = vector.load %arg11[%c0_112, %c0_113] : memref<8x128xf32, #tpu.memory_space<vmem>>, vector<8x128xf32>
    tpu.vector_store %arg11[%c0_112, %c0_113], %275 {strides = array<i32>} : memref<8x128xf32, #tpu.memory_space<vmem>>, vector<8x128xf32>,
    %281 = arith.truncf %277 : vector<8x128xf32> to vector<8x128xbf16>
    %282 = arith.index_cast %246 : i32 to index
    %c0_114 = arith.constant 0 : index
    %283 = vector.load %arg7[%282, %c0_114] : memref<64x128xbf16, #tpu.memory_space<vmem>>, vector<8x128xbf16>
    tpu.vector_store %arg7[%282, %c0_114], %281 {strides = array<i32>} : memref<64x128xbf16, #tpu.memory_space<vmem>>, vector<8x128xbf16>,
    %c7_i32 = arith.constant 7 : i32
    %c8_i32_115 = arith.constant 8 : i32
    %284 = arith.muli %c7_i32, %c8_i32_115 : i32
    %285 = tpu.assume_multiple %284, 8 : i32
    %c0_116 = arith.constant 0 : index
    %c0_117 = arith.constant 0 : index
    %286 = vector.load %arg10[%c0_116, %c0_117] : memref<8x128xbf16, #tpu.memory_space<vmem>>, vector<8x128xbf16>
    %c0_118 = arith.constant 0 : index
    %c0_119 = arith.constant 0 : index
    %287 = vector.load %arg11[%c0_118, %c0_119] : memref<8x128xf32, #tpu.memory_space<vmem>>, vector<8x128xf32>
    %288 = arith.index_cast %285 : i32 to index
    %c0_120 = arith.constant 0 : index
    %289 = vector.load %arg12[%288, %c0_120] : memref<64x512xf32, #tpu.memory_space<vmem>>, vector<8x512xf32>
    %cst_121 = arith.constant dense<0.000000e+00> : vector<8x512xf32>
    %290 = tpu.matmul %286, %10, %cst_121 {dimension_numbers = #tpu.dot_dimension_numbers<[1], [0], [0], [1], [0, 0, 1, 1], [], []>} : vector<8x128xbf16>, vector<128x512xbf16>, vector<8x512xf32> -> vector<8x512xf32>
    %291 = arith.addf %289, %290 : vector<8x512xf32>
    %292 = vector.extract_strided_slice %291 {offsets = [0, 0], sizes = [8, 128], strides = [1, 1]} : vector<8x512xf32> to vector<8x128xf32>
    %293 = arith.negf %292 : vector<8x128xf32>
    %294 = math.exp %293 : vector<8x128xf32>
    %cst_122 = arith.constant 1.000000e+00 : f32
    %295 = vector.broadcast %cst_122 : f32 to vector<8x128xf32>
    %296 = arith.addf %295, %294 : vector<8x128xf32>
    %297 = arith.divf %295, %296 : vector<8x128xf32>
    %298 = vector.extract_strided_slice %291 {offsets = [0, 128], sizes = [8, 128], strides = [1, 1]} : vector<8x512xf32> to vector<8x128xf32>
    %299 = arith.negf %298 : vector<8x128xf32>
    %300 = math.exp %299 : vector<8x128xf32>
    %cst_123 = arith.constant 1.000000e+00 : f32
    %301 = vector.broadcast %cst_123 : f32 to vector<8x128xf32>
    %302 = arith.addf %301, %300 : vector<8x128xf32>
    %303 = arith.divf %301, %302 : vector<8x128xf32>
    %304 = vector.extract_strided_slice %291 {offsets = [0, 256], sizes = [8, 128], strides = [1, 1]} : vector<8x512xf32> to vector<8x128xf32>
    %305 = math.tanh %304 : vector<8x128xf32>
    %306 = vector.extract_strided_slice %291 {offsets = [0, 384], sizes = [8, 128], strides = [1, 1]} : vector<8x512xf32> to vector<8x128xf32>
    %307 = arith.negf %306 : vector<8x128xf32>
    %308 = math.exp %307 : vector<8x128xf32>
    %cst_124 = arith.constant 1.000000e+00 : f32
    %309 = vector.broadcast %cst_124 : f32 to vector<8x128xf32>
    %310 = arith.addf %309, %308 : vector<8x128xf32>
    %311 = arith.divf %309, %310 : vector<8x128xf32>
    %312 = arith.mulf %303, %287 : vector<8x128xf32>
    %313 = arith.mulf %297, %305 : vector<8x128xf32>
    %314 = arith.addf %312, %313 : vector<8x128xf32>
    %315 = math.tanh %314 : vector<8x128xf32>
    %316 = arith.mulf %311, %315 : vector<8x128xf32>
    %317 = arith.truncf %316 : vector<8x128xf32> to vector<8x128xbf16>
    %c0_125 = arith.constant 0 : index
    %c0_126 = arith.constant 0 : index
    %318 = vector.load %arg10[%c0_125, %c0_126] : memref<8x128xbf16, #tpu.memory_space<vmem>>, vector<8x128xbf16>
    tpu.vector_store %arg10[%c0_125, %c0_126], %317 {strides = array<i32>} : memref<8x128xbf16, #tpu.memory_space<vmem>>, vector<8x128xbf16>,
    %c0_127 = arith.constant 0 : index
    %c0_128 = arith.constant 0 : index
    %319 = vector.load %arg11[%c0_127, %c0_128] : memref<8x128xf32, #tpu.memory_space<vmem>>, vector<8x128xf32>
    tpu.vector_store %arg11[%c0_127, %c0_128], %314 {strides = array<i32>} : memref<8x128xf32, #tpu.memory_space<vmem>>, vector<8x128xf32>,
    %320 = arith.truncf %316 : vector<8x128xf32> to vector<8x128xbf16>
    %321 = arith.index_cast %285 : i32 to index
    %c0_129 = arith.constant 0 : index
    %322 = vector.load %arg7[%321, %c0_129] : memref<64x128xbf16, #tpu.memory_space<vmem>>, vector<8x128xbf16>
    tpu.vector_store %arg7[%321, %c0_129], %320 {strides = array<i32>} : memref<64x128xbf16, #tpu.memory_space<vmem>>, vector<8x128xbf16>,
    %c8_i32_130 = arith.constant 8 : i32
    %c0_i32_131 = arith.constant 0 : i32
    %323 = arith.cmpi eq, %arg0, %c0_i32_131 : i32
    %324 = arith.extui %323 : i1 to i32
    %c0_i32_132 = arith.constant 0 : i32
    %325 = arith.cmpi ne, %324, %c0_i32_132 : i32
    scf.if %325 {
      %c0_133 = arith.constant 0 : index
      %c0_134 = arith.constant 0 : index
      %326 = vector.load %arg10[%c0_133, %c0_134] : memref<8x128xbf16, #tpu.memory_space<vmem>>, vector<8x128xbf16>
      %c0_135 = arith.constant 0 : index
      %c0_136 = arith.constant 0 : index
      %327 = vector.load %arg8[%c0_135, %c0_136] : memref<8x128xbf16, #tpu.memory_space<vmem>>, vector<8x128xbf16>
      tpu.vector_store %arg8[%c0_135, %c0_136], %326 {strides = array<i32>} : memref<8x128xbf16, #tpu.memory_space<vmem>>, vector<8x128xbf16>,
      %c0_137 = arith.constant 0 : index
      %c0_138 = arith.constant 0 : index
      %328 = vector.load %arg11[%c0_137, %c0_138] : memref<8x128xf32, #tpu.memory_space<vmem>>, vector<8x128xf32>
      %c0_139 = arith.constant 0 : index
      %c0_140 = arith.constant 0 : index
      %329 = vector.load %arg9[%c0_139, %c0_140] : memref<8x128xf32, #tpu.memory_space<vmem>>, vector<8x128xf32>
      tpu.vector_store %arg9[%c0_139, %c0_140], %328 {strides = array<i32>} : memref<8x128xf32, #tpu.memory_space<vmem>>, vector<8x128xf32>,
    } else {
    }
    return
  }
  func.func @transform_0(%arg0: i32) -> (i32, i32) {
    %c0_i32 = arith.constant 0 : i32
    %c0_i32_0 = arith.constant 0 : i32
    return %arg0, %c0_i32 : i32, i32
  }
  func.func @transform_1(%arg0: i32) -> (i32, i32) {
    %c0_i32 = arith.constant 0 : i32
    %c0_i32_0 = arith.constant 0 : i32
    %c0_i32_1 = arith.constant 0 : i32
    return %c0_i32, %c0_i32_0 : i32, i32
  }
  func.func @transform_2(%arg0: i32) -> (i32, i32) {
    %c0_i32 = arith.constant 0 : i32
    %c0_i32_0 = arith.constant 0 : i32
    %c0_i32_1 = arith.constant 0 : i32
    return %c0_i32, %c0_i32_0 : i32, i32
  }
  func.func @transform_3(%arg0: i32) -> (i32, i32) {
    %c0_i32 = arith.constant 0 : i32
    %c0_i32_0 = arith.constant 0 : i32
    %c0_i32_1 = arith.constant 0 : i32
    return %c0_i32, %c0_i32_0 : i32, i32
  }
  func.func @transform_4(%arg0: i32) -> (i32, i32) {
    %c0_i32 = arith.constant 0 : i32
    %c0_i32_0 = arith.constant 0 : i32
    %c0_i32_1 = arith.constant 0 : i32
    return %c0_i32, %c0_i32_0 : i32, i32
  }
  func.func @transform_5(%arg0: i32) -> (i32, i32) {
    %c0_i32 = arith.constant 0 : i32
    %c0_i32_0 = arith.constant 0 : i32
    %c0_i32_1 = arith.constant 0 : i32
    return %c0_i32, %c0_i32_0 : i32, i32
  }
  func.func @transform_6(%arg0: i32) -> (i32, i32) {
    %c0_i32 = arith.constant 0 : i32
    %c0_i32_0 = arith.constant 0 : i32
    return %arg0, %c0_i32 : i32, i32
  }
  func.func @transform_7(%arg0: i32) -> (i32, i32) {
    %c0_i32 = arith.constant 0 : i32
    %c0_i32_0 = arith.constant 0 : i32
    %c0_i32_1 = arith.constant 0 : i32
    return %c0_i32, %c0_i32_0 : i32, i32
  }
  func.func @transform_8(%arg0: i32) -> (i32, i32) {
    %c0_i32 = arith.constant 0 : i32
    %c0_i32_0 = arith.constant 0 : i32
    %c0_i32_1 = arith.constant 0 : i32
    return %c0_i32, %c0_i32_0 : i32, i32
  }
}

</mosaic_0001>

<bundles_post_ra>
// kernel: fwd.5
= control target key start
LH: loop header
LB: loop body
LE: loop exit
PB: predicated region body
PF: predicated region fallthrough
CT: control target
= control target key end

     0   :  { %s521_s1 = inlined_call_operand.vmem [shape: bf16[128,256], index: 1, kind: input, shape index: {}]   ;;  %s522_s0 = inlined_call_operand.vmem [shape: bf16[64,128], index: 0, kind: input, shape index: {}]   ;;  %s523_s2 = inlined_call_operand.vmem [shape: f32[1,256], index: 2, kind: input, shape index: {}]   ;;  %s524_s3 = inlined_call_operand.vmem [shape: f32[64,256], index: 3, kind: output, shape index: {}]  }
   0x1   :  { %v300_v0 = vld [vmem:[%s521_s1 + $0x70] sm:$0xf]  ;;  %v325_v1 = vld [vmem:[%s521_s1 + $0x74] sm:$0xf0]  ;;  %v324_v2 = vld [vmem:[%s521_s1 + $0x74] sm:$0xf] }
   0x2   :  { %v301_v3 = vor.u32 %v325_v1, %v300_v0  ;;  %v302_v4 = vld [vmem:[%s521_s1 + $0x78] sm:$0xf0]  ;;  %v292_v5 = vld [vmem:[%s521_s1 + $0x60] sm:$0xf]  ;;  %v323_v6 = vld [vmem:[%s521_s1 + $0x64] sm:$0xf0] }
   0x3   :  { %v305_v7 = vor.u32 %v324_v2, %v302_v4  ;;  %v322_v8 = vld [vmem:[%s521_s1 + $0x64] sm:$0xf]  ;;  %v294_v9 = vld [vmem:[%s521_s1 + $0x68] sm:$0xf0]  ;;  %v293_v10 = vor.u32 %v323_v6, %v292_v5  ;;  %v284_v12 = vld [vmem:[%s521_s1 + $0x50] sm:$0xf] }
   0x4   :  { %148 = vmatpush.bf16.msra.mxu0 %v301_v3  ;;  %326 = vmatpush.bf16.msra.mxu2 %v301_v3  ;;  %v297_v11 = vor.u32 %v322_v8, %v294_v9  ;;  %v321_v13 = vld [vmem:[%s521_s1 + $0x54] sm:$0xf0]  ;;  %v320_v14 = vld [vmem:[%s521_s1 + $0x54] sm:$0xf]  ;;  %v286_v15 = vld [vmem:[%s521_s1 + $0x58] sm:$0xf0] }
   0x5   :  { %177 = vmatpush.bf16.msra.mxu1 %v305_v7  ;;  %334 = vmatpush.bf16.msra.mxu3 %v305_v7  ;;  %v285_v16 = vor.u32 %v321_v13, %v284_v12  ;;  %v289_v17 = vor.u32 %v320_v14, %v286_v15  ;;  %v276_v18 = vld [vmem:[%s521_s1 + $0x40] sm:$0xf]  ;;  %v319_v19 = vld [vmem:[%s521_s1 + $0x44] sm:$0xf0]  ;;  %v318_v20 = vld [vmem:[%s521_s1 + $0x44] sm:$0xf] }
   0x6   :  { %v278_v21 = vld [vmem:[%s521_s1 + $0x48] sm:$0xf0]  ;;  %v277_v22 = vor.u32 %v319_v19, %v276_v18  ;;  %v268_v24 = vld [vmem:[%s521_s1 + $0x30] sm:$0xf]  ;;  %v317_v25 = vld [vmem:[%s521_s1 + $0x34] sm:$0xf0] }
   0x7   :  { %v281_v23 = vor.u32 %v318_v20, %v278_v21  ;;  %v316_v26 = vld [vmem:[%s521_s1 + $0x34] sm:$0xf]  ;;  %v270_v27 = vld [vmem:[%s521_s1 + $0x38] sm:$0xf0]  ;;  %v269_v28 = vor.u32 %v317_v25, %v268_v24  ;;  %v260_v30 = vld [vmem:[%s521_s1 + $0x20] sm:$0xf] }
   0x8   :  { %149 = vmatpush.bf16.msra.mxu0 %v293_v10  ;;  %327 = vmatpush.bf16.msra.mxu2 %v293_v10  ;;  %v273_v29 = vor.u32 %v316_v26, %v270_v27  ;;  %v315_v31 = vld [vmem:[%s521_s1 + $0x24] sm:$0xf0]  ;;  %v314_v32 = vld [vmem:[%s521_s1 + $0x24] sm:$0xf]  ;;  %v262_v33 = vld [vmem:[%s521_s1 + $0x28] sm:$0xf0] }
   0x9   :  { %178 = vmatpush.bf16.msra.mxu1 %v297_v11  ;;  %335 = vmatpush.bf16.msra.mxu3 %v297_v11  ;;  %v261_v34 = vor.u32 %v315_v31, %v260_v30  ;;  %v265_v35 = vor.u32 %v314_v32, %v262_v33  ;;  %v252_v36 = vld [vmem:[%s521_s1 + $0x10] sm:$0xf]  ;;  %v313_v37 = vld [vmem:[%s521_s1 + $0x14] sm:$0xf0]  ;;  %v312_v38 = vld [vmem:[%s521_s1 + $0x14] sm:$0xf] }
   0xa   :  { %v254_v39 = vld [vmem:[%s521_s1 + $0x18] sm:$0xf0]  ;;  %v253_v40 = vor.u32 %v313_v37, %v252_v36  ;;  %v244_v42 = vld [vmem:[%s521_s1] sm:$0xf]  ;;  %v311_v43 = vld [vmem:[%s521_s1 + $0x4] sm:$0xf0] }
   0xb   :  { %v257_v41 = vor.u32 %v312_v38, %v254_v39  ;;  %v310_v44 = vld [vmem:[%s521_s1 + $0x4] sm:$0xf]  ;;  %v246_v45 = vld [vmem:[%s521_s1 + $0x8] sm:$0xf0]  ;;  %v245_v46 = vor.u32 %v311_v43, %v244_v42  ;;  %v308_v49 = vld [vmem:[%s522_s0 + $0x10] sm:$0xff] }
   0xc   :  { %150 = vmatpush.bf16.msra.mxu0 %v285_v16  ;;  %328 = vmatpush.bf16.msra.mxu2 %v285_v16  ;;  %v249_v47 = vor.u32 %v310_v44, %v246_v45  ;;  %v306_v48 = vld [vmem:[%s522_s0] sm:$0xff]  ;;  %v307_v50 = vld [vmem:[%s522_s0 + $0x8] sm:$0xff]  ;;  %v309_v51 = vld [vmem:[%s522_s0 + $0x18] sm:$0xff] }
   0xd   :  { %179 = vmatpush.bf16.msra.mxu1 %v289_v17  ;;  %336 = vmatpush.bf16.msra.mxu3 %v289_v17  ;;  %v38_v52 = vld [vmem:[%s523_s2] sm:$0x3] }
   0xe   :  { %v40_v53 = vperm.slane %v38_v52, 0  ;;  %v41_v54 = vperm.slane %v38_v52, 1 }
  0x10   :  { %151 = vmatpush.bf16.msra.mxu0 %v277_v22  ;;  %329 = vmatpush.bf16.msra.mxu2 %v277_v22 }
  0x11   :  { %180 = vmatpush.bf16.msra.mxu1 %v281_v23  ;;  %337 = vmatpush.bf16.msra.mxu3 %v281_v23 }
  0x14   :  { %152 = vmatpush.bf16.msra.mxu0 %v269_v28  ;;  %330 = vmatpush.bf16.msra.mxu2 %v269_v28 }
  0x15   :  { %181 = vmatpush.bf16.msra.mxu1 %v273_v29  ;;  %338 = vmatpush.bf16.msra.mxu3 %v273_v29 }
  0x18   :  { %153 = vmatpush.bf16.msra.mxu0 %v261_v34  ;;  %331 = vmatpush.bf16.msra.mxu2 %v261_v34 }
  0x19   :  { %182 = vmatpush.bf16.msra.mxu1 %v265_v35  ;;  %339 = vmatpush.bf16.msra.mxu3 %v265_v35 }
  0x1c   :  { %154 = vmatpush.bf16.msra.mxu0 %v253_v40  ;;  %332 = vmatpush.bf16.msra.mxu2 %v253_v40 }
  0x1d   :  { %183 = vmatpush.bf16.msra.mxu1 %v257_v41  ;;  %340 = vmatpush.bf16.msra.mxu3 %v257_v41 }
  0x20   :  { %155 = vmatpush.bf16.msra.mxu0 %v245_v46  ;;  %333 = vmatpush.bf16.msra.mxu2 %v245_v46 }
  0x21   :  { %184 = vmatpush.bf16.msra.mxu1 %v249_v47  ;;  %341 = vmatpush.bf16.msra.mxu3 %v249_v47 }
  0x23   :  { %156 = vmatmul.bf16.vlgmr.msra.gmra.mxu0 %v306_v48  ;;  %166 = vmatmul.bf16.vlgmr.msra.gmra.mxu2 %v308_v49 }
  0x24   :  { %185 = vmatmul.bf16.vlgmr.msra.gmra.mxu1 %v306_v48  ;;  %195 = vmatmul.bf16.vlgmr.msra.gmra.mxu3 %v308_v49 }
  0x33   :  { %161 = vmatmul.bf16.gmra.mxu0 %v307_v50  ;;  %171 = vmatmul.bf16.gmra.mxu2 %v309_v51 }
  0x34   :  { %190 = vmatmul.bf16.gmra.mxu1 %v307_v50  ;;  %200 = vmatmul.bf16.gmra.mxu3 %v309_v51 }
  0xa0   :  { %v157_v55 = vpop.f32.mrf.mxu0 }
  0xa1   :  { %v158_v56 = vadd.f32 %v157_v55, %v40_v53  ;;  %v186_v57 = vpop.f32.mrf.mxu1 }
  0xa2   :  { %v187_v58 = vadd.f32 %v186_v57, %v41_v54 }
  0xa3   :  { %206 = vst [vmem:[%s524_s3] sm:$0xff] %v158_v56 }
  0xa4   :  { %207 = vst [vmem:[%s524_s3 + $0x8] sm:$0xff] %v187_v58 }
  0xa6   :  { %v167_v59 = vpop.f32.mrf.mxu2 }
  0xa7   :  { %v168_v60 = vadd.f32 %v167_v59, %v40_v53  ;;  %v196_v61 = vpop.f32.mrf.mxu3 }
  0xa8   :  { %v197_v62 = vadd.f32 %v196_v61, %v41_v54  ;;  %v159_v63 = vpop.f32.mrf.mxu0 }
  0xa9   :  { %214 = vst [vmem:[%s524_s3 + $0x40] sm:$0xff] %v168_v60  ;;  %v160_v0 = vadd.f32 %v159_v63, %v40_v53  ;;  %v188_v1 = vpop.f32.mrf.mxu1 }
  0xaa   :  { %215 = vst [vmem:[%s524_s3 + $0x48] sm:$0xff] %v197_v62  ;;  %v189_v2 = vadd.f32 %v188_v1, %v41_v54 }
  0xab   :  { %208 = vst [vmem:[%s524_s3 + $0x10] sm:$0xff] %v160_v0 }
  0xac   :  { %209 = vst [vmem:[%s524_s3 + $0x18] sm:$0xff] %v189_v2 }
  0xae   :  { %v169_v3 = vpop.f32.mrf.mxu2 }
  0xaf   :  { %v170_v4 = vadd.f32 %v169_v3, %v40_v53  ;;  %v198_v5 = vpop.f32.mrf.mxu3 }
  0xb0   :  { %v199_v6 = vadd.f32 %v198_v5, %v41_v54  ;;  %v162_v7 = vpop.f32.mrf.mxu0 }
  0xb1   :  { %216 = vst [vmem:[%s524_s3 + $0x50] sm:$0xff] %v170_v4  ;;  %v163_v8 = vadd.f32 %v162_v7, %v40_v53  ;;  %v191_v9 = vpop.f32.mrf.mxu1 }
  0xb2   :  { %217 = vst [vmem:[%s524_s3 + $0x58] sm:$0xff] %v199_v6  ;;  %v192_v10 = vadd.f32 %v191_v9, %v41_v54 }
  0xb3   :  { %210 = vst [vmem:[%s524_s3 + $0x20] sm:$0xff] %v163_v8 }
  0xb4   :  { %211 = vst [vmem:[%s524_s3 + $0x28] sm:$0xff] %v192_v10 }
  0xb6   :  { %v172_v11 = vpop.f32.mrf.mxu2 }
  0xb7   :  { %v173_v12 = vadd.f32 %v172_v11, %v40_v53  ;;  %v201_v13 = vpop.f32.mrf.mxu3 }
  0xb8   :  { %v202_v14 = vadd.f32 %v201_v13, %v41_v54  ;;  %v164_v15 = vpop.f32.mrf.mxu0 }
  0xb9   :  { %218 = vst [vmem:[%s524_s3 + $0x60] sm:$0xff] %v173_v12  ;;  %v165_v16 = vadd.f32 %v164_v15, %v40_v53  ;;  %v193_v17 = vpop.f32.mrf.mxu1 }
  0xba   :  { %219 = vst [vmem:[%s524_s3 + $0x68] sm:$0xff] %v202_v14  ;;  %v194_v18 = vadd.f32 %v193_v17, %v41_v54 }
  0xbb   :  { %212 = vst [vmem:[%s524_s3 + $0x30] sm:$0xff] %v165_v16 }
  0xbc   :  { %213 = vst [vmem:[%s524_s3 + $0x38] sm:$0xff] %v194_v18 }
  0xbe   :  { %v174_v19 = vpop.f32.mrf.mxu2 }
  0xbf   :  { %v175_v20 = vadd.f32 %v174_v19, %v40_v53  ;;  %v203_v21 = vpop.f32.mrf.mxu3 }
  0xc0   :  { %v204_v22 = vadd.f32 %v203_v21, %v41_v54 }
  0xc1   :  { %220 = vst [vmem:[%s524_s3 + $0x70] sm:$0xff] %v175_v20 }
  0xc2   :  { %221 = vst [vmem:[%s524_s3 + $0x78] sm:$0xff] %v204_v22 }

// kernel: fwd.3
= control target key start
LH: loop header
LB: loop body
LE: loop exit
PB: predicated region body
PF: predicated region fallthrough
CT: control target
= control target key end

     0   :  { %14 = vsyncpa [#allocation6], 0  ;;  %s2850_s0 = inlined_call_operand.vmem [shape: bf16[64,128], index: 0, kind: input, shape index: {}]   ;;  %s2851_s1 = inlined_call_operand.hbm [shape: bf16[128,512], index: 1, kind: input, shape index: {}]   ;;  %s2852_s2 = inlined_call_operand.hbm [shape: bf16[128,512], index: 2, kind: input, shape index: {}]   ;;  %s2853_s3 = inlined_call_operand.vmem [shape: f32[1,512], index: 3, kind: input, shape index: {}]   ;;  %s2854_s4 = inlined_call_operand.vmem [shape: bf16[8,128], index: 4, kind: input, shape index: {}]   ;;  %s2855_s5 = inlined_call_operand.vmem [shape: f32[8,128], index: 5, kind: input, shape index: {}]   ;;  %s2856_s6 = inlined_call_operand.vmem [shape: bf16[64,128], index: 6, kind: output, shape index: {0}]   ;;  %s2857_s7 = inlined_call_operand.vmem [shape: bf16[8,128], index: 7, kind: output, shape index: {1}]   ;;  %s2858_s8 = inlined_call_operand.vmem [shape: f32[8,128], index: 8, kind: output, shape index: {2}]  }
   0x1   :  { %s22_s29 = sshll.u32 %s2851_s1, 4  ;;  %s23_s29 = int_to_ptr.hbm [resolvable:$true] %s22_s29 }
   0x2   :  { %15 = vsyncpa [#allocation8], 0  ;;  %s2286_s30 = smov [#allocation5]   ;;  %s35_s12 = sshll.u32 %s2852_s2, 4  ;;  %s36_s12 = int_to_ptr.hbm [resolvable:$true] %s35_s12 }
   0x3   :  { %s24_s9 = sshll.u32 %s2286_s30, 4  ;;  %s2287_s13 = smov 256   ;;  %s25_s9 = int_to_ptr.vmem [resolvable:$true] %s24_s9 }
   0x4   :  { %s2288_s14 = smov 16   ;;  %s2289_s15 = smov [#allocation7]  }
   0x5   :  { %30 = dma.hbm_to_vmem [thread:$0]  %s23_s29, 4096, %s25_s9, [#allocation6], %s2287_s13, %s2287_s13, %s2288_s14  }
   0x6   :  { %s37_s16 = sshll.u32 %s2289_s15, 4  ;;  %s38_s16 = int_to_ptr.vmem [resolvable:$true] %s37_s16 }
   0x7   :  { %43 = dma.hbm_to_vmem [thread:$0]  %s36_s12, 4096, %s38_s16, [#allocation8], %s2287_s13, %s2287_s13, %s2288_s14  }
   0x8   :  { %2282 = dma.done.wait [#allocation6], 4096  }
   0x9   :  { %2283 = vsyncadd [#allocation6], 4294963200 }
   0xa   :  { %2284 = dma.done.wait [#allocation8], 4096  }
   0xb   :  { %2285 = vsyncadd [#allocation8], 4294963200  ;;  %v1861_v0 = vld [vmem:[#allocation5 + $0xe0] sm:$0xf]  ;;  %v2068_v1 = vld [vmem:[#allocation5 + $0xec] sm:$0xf0] }
   0xc   :  { %v2066_v2 = vld [vmem:[#allocation5 + $0xe4] sm:$0xf]  ;;  %v1862_v3 = vor.u32 %v2068_v1, %v1861_v0  ;;  %v1863_v4 = vld [vmem:[#allocation5 + $0xf0] sm:$0xf0]  ;;  %v1869_v5 = vld [vmem:[#allocation5 + $0xe8] sm:$0xf] }
   0xd   :  { %v2069_v6 = vld [vmem:[#allocation5 + $0xf4] sm:$0xf0]  ;;  %v1866_v7 = vor.u32 %v2066_v2, %v1863_v4  ;;  %v2067_v9 = vld [vmem:[#allocation5 + $0xec] sm:$0xf]  ;;  %v1871_v10 = vld [vmem:[#allocation5 + $0xf8] sm:$0xf0] }
   0xe   :  { %v1870_v8 = vor.u32 %v2069_v6, %v1869_v5  ;;  %v1845_v11 = vld [vmem:[#allocation5 + $0xc0] sm:$0xf]  ;;  %300 = vmatpush.bf16.msra.mxu0 %v1862_v3  ;;  %v1874_v12 = vor.u32 %v2067_v9, %v1871_v10  ;;  %v2064_v13 = vld [vmem:[#allocation5 + $0xcc] sm:$0xf0]  ;;  %v2062_v14 = vld [vmem:[#allocation5 + $0xc4] sm:$0xf] }
   0xf   :  { %v1847_v15 = vld [vmem:[#allocation5 + $0xd0] sm:$0xf0]  ;;  %329 = vmatpush.bf16.msra.mxu1 %v1866_v7  ;;  %v1846_v16 = vor.u32 %v2064_v13, %v1845_v11  ;;  %v1853_v18 = vld [vmem:[#allocation5 + $0xc8] sm:$0xf]  ;;  %v2065_v19 = vld [vmem:[#allocation5 + $0xd4] sm:$0xf0] }
  0x10   :  { %358 = vmatpush.bf16.msra.mxu2 %v1870_v8  ;;  %v1850_v17 = vor.u32 %v2062_v14, %v1847_v15  ;;  %v2063_v20 = vld [vmem:[#allocation5 + $0xcc] sm:$0xf]  ;;  %387 = vmatpush.bf16.msra.mxu3 %v1874_v12  ;;  %v1854_v21 = vor.u32 %v2065_v19, %v1853_v18  ;;  %v1855_v22 = vld [vmem:[#allocation5 + $0xd8] sm:$0xf0]  ;;  %v1829_v23 = vld [vmem:[#allocation5 + $0xa0] sm:$0xf] }
  0x11   :  { %v2060_v24 = vld [vmem:[#allocation5 + $0xac] sm:$0xf0]  ;;  %v1858_v25 = vor.u32 %v2063_v20, %v1855_v22  ;;  %v2058_v26 = vld [vmem:[#allocation5 + $0xa4] sm:$0xf]  ;;  %v1831_v27 = vld [vmem:[#allocation5 + $0xb0] sm:$0xf0] }
  0x12   :  { %v1837_v28 = vld [vmem:[#allocation5 + $0xa8] sm:$0xf]  ;;  %301 = vmatpush.bf16.msra.mxu0 %v1846_v16  ;;  %v1830_v29 = vor.u32 %v2060_v24, %v1829_v23  ;;  %v2061_v30 = vld [vmem:[#allocation5 + $0xb4] sm:$0xf0]  ;;  %v2059_v31 = vld [vmem:[#allocation5 + $0xac] sm:$0xf]  ;;  %v1834_v33 = vor.u32 %v2058_v26, %v1831_v27 }
  0x13   :  { %v1839_v32 = vld [vmem:[#allocation5 + $0xb8] sm:$0xf0]  ;;  %330 = vmatpush.bf16.msra.mxu1 %v1850_v17  ;;  %v1838_v34 = vor.u32 %v2061_v30, %v1837_v28  ;;  %v1813_v35 = vld [vmem:[#allocation5 + $0x80] sm:$0xf]  ;;  %v2056_v36 = vld [vmem:[#allocation5 + $0x8c] sm:$0xf0] }
  0x14   :  { %359 = vmatpush.bf16.msra.mxu2 %v1854_v21  ;;  %v2054_v37 = vld [vmem:[#allocation5 + $0x84] sm:$0xf]  ;;  %388 = vmatpush.bf16.msra.mxu3 %v1858_v25  ;;  %v1842_v38 = vor.u32 %v2059_v31, %v1839_v32  ;;  %v1815_v39 = vld [vmem:[#allocation5 + $0x90] sm:$0xf0]  ;;  %v1821_v40 = vld [vmem:[#allocation5 + $0x88] sm:$0xf]  ;;  %v1814_v44 = vor.u32 %v2056_v36, %v1813_v35 }
  0x15   :  { %v2057_v41 = vld [vmem:[#allocation5 + $0x94] sm:$0xf0]  ;;  %v2055_v42 = vld [vmem:[#allocation5 + $0x8c] sm:$0xf]  ;;  %v1823_v43 = vld [vmem:[#allocation5 + $0x98] sm:$0xf0]  ;;  %v1818_v45 = vor.u32 %v2054_v37, %v1815_v39 }
  0x16   :  { %302 = vmatpush.bf16.msra.mxu0 %v1830_v29  ;;  %v1822_v46 = vor.u32 %v2057_v41, %v1821_v40  ;;  %v1797_v47 = vld [vmem:[#allocation5 + $0x60] sm:$0xf]  ;;  %v2052_v48 = vld [vmem:[#allocation5 + $0x6c] sm:$0xf0]  ;;  %v2050_v49 = vld [vmem:[#allocation5 + $0x64] sm:$0xf]  ;;  %v1826_v50 = vor.u32 %v2055_v42, %v1823_v43 }
  0x17   :  { %331 = vmatpush.bf16.msra.mxu1 %v1834_v33  ;;  %v1799_v51 = vld [vmem:[#allocation5 + $0x70] sm:$0xf0]  ;;  %v1805_v52 = vld [vmem:[#allocation5 + $0x68] sm:$0xf]  ;;  %v2053_v53 = vld [vmem:[#allocation5 + $0x74] sm:$0xf0]  ;;  %v1798_v56 = vor.u32 %v2052_v48, %v1797_v47 }
  0x18   :  { %360 = vmatpush.bf16.msra.mxu2 %v1838_v34  ;;  %389 = vmatpush.bf16.msra.mxu3 %v1842_v38  ;;  %v2051_v54 = vld [vmem:[#allocation5 + $0x6c] sm:$0xf]  ;;  %v1807_v55 = vld [vmem:[#allocation5 + $0x78] sm:$0xf0]  ;;  %v1802_v57 = vor.u32 %v2050_v49, %v1799_v51  ;;  %v1806_v58 = vor.u32 %v2053_v53, %v1805_v52  ;;  %v1781_v59 = vld [vmem:[#allocation5 + $0x40] sm:$0xf] }
  0x19   :  { %v2048_v60 = vld [vmem:[#allocation5 + $0x4c] sm:$0xf0]  ;;  %v2046_v61 = vld [vmem:[#allocation5 + $0x44] sm:$0xf]  ;;  %v1810_v62 = vor.u32 %v2051_v54, %v1807_v55  ;;  %v1783_v63 = vld [vmem:[#allocation5 + $0x50] sm:$0xf0] }
  0x1a   :  { %303 = vmatpush.bf16.msra.mxu0 %v1814_v44  ;;  %v1789_v0 = vld [vmem:[#allocation5 + $0x48] sm:$0xf]  ;;  %v2049_v1 = vld [vmem:[#allocation5 + $0x54] sm:$0xf0]  ;;  %v2047_v2 = vld [vmem:[#allocation5 + $0x4c] sm:$0xf]  ;;  %v1782_v4 = vor.u32 %v2048_v60, %v1781_v59  ;;  %v1786_v5 = vor.u32 %v2046_v61, %v1783_v63 }
  0x1b   :  { %332 = vmatpush.bf16.msra.mxu1 %v1818_v45  ;;  %v1791_v3 = vld [vmem:[#allocation5 + $0x58] sm:$0xf0]  ;;  %v1790_v6 = vor.u32 %v2049_v1, %v1789_v0  ;;  %v1765_v7 = vld [vmem:[#allocation5 + $0x20] sm:$0xf]  ;;  %v2044_v8 = vld [vmem:[#allocation5 + $0x2c] sm:$0xf0] }
  0x1c   :  { %361 = vmatpush.bf16.msra.mxu2 %v1822_v46  ;;  %390 = vmatpush.bf16.msra.mxu3 %v1826_v50  ;;  %v2042_v9 = vld [vmem:[#allocation5 + $0x24] sm:$0xf]  ;;  %v1794_v10 = vor.u32 %v2047_v2, %v1791_v3  ;;  %v1767_v11 = vld [vmem:[#allocation5 + $0x30] sm:$0xf0]  ;;  %v1773_v12 = vld [vmem:[#allocation5 + $0x28] sm:$0xf]  ;;  %v1766_v16 = vor.u32 %v2044_v8, %v1765_v7 }
  0x1d   :  { %v2045_v13 = vld [vmem:[#allocation5 + $0x34] sm:$0xf0]  ;;  %v2043_v14 = vld [vmem:[#allocation5 + $0x2c] sm:$0xf]  ;;  %v1775_v15 = vld [vmem:[#allocation5 + $0x38] sm:$0xf0]  ;;  %v1770_v18 = vor.u32 %v2042_v9, %v1767_v11 }
  0x1e   :  { %304 = vmatpush.bf16.msra.mxu0 %v1798_v56  ;;  %v1749_v17 = vld [vmem:[#allocation5] sm:$0xf]  ;;  %v1774_v19 = vor.u32 %v2045_v13, %v1773_v12  ;;  %v2040_v20 = vld [vmem:[#allocation5 + $0xc] sm:$0xf0]  ;;  %v2038_v21 = vld [vmem:[#allocation5 + $0x4] sm:$0xf]  ;;  %v1778_v23 = vor.u32 %v2043_v14, %v1775_v15 }
  0x1f   :  { %333 = vmatpush.bf16.msra.mxu1 %v1802_v57  ;;  %v1751_v22 = vld [vmem:[#allocation5 + $0x10] sm:$0xf0]  ;;  %v1757_v24 = vld [vmem:[#allocation5 + $0x8] sm:$0xf]  ;;  %v2041_v25 = vld [vmem:[#allocation5 + $0x14] sm:$0xf0]  ;;  %v1750_v30 = vor.u32 %v2040_v20, %v1749_v17 }
  0x20   :  { %362 = vmatpush.bf16.msra.mxu2 %v1806_v58  ;;  %391 = vmatpush.bf16.msra.mxu3 %v1810_v62  ;;  %v2039_v26 = vld [vmem:[#allocation5 + $0xc] sm:$0xf]  ;;  %v1759_v27 = vld [vmem:[#allocation5 + $0x18] sm:$0xf0]  ;;  %v1989_v28 = vld [vmem:[#allocation7 + $0xe0] sm:$0xf]  ;;  %v1754_v33 = vor.u32 %v2038_v21, %v1751_v22  ;;  %v1758_v34 = vor.u32 %v2041_v25, %v1757_v24 }
  0x21   :  { %v2100_v29 = vld [vmem:[#allocation7 + $0xec] sm:$0xf0]  ;;  %v2098_v31 = vld [vmem:[#allocation7 + $0xe4] sm:$0xf]  ;;  %v1991_v32 = vld [vmem:[#allocation7 + $0xf0] sm:$0xf0]  ;;  %v1762_v36 = vor.u32 %v2039_v26, %v1759_v27 }
  0x22   :  { %305 = vmatpush.bf16.msra.mxu0 %v1782_v4  ;;  %v2034_v35 = vld [vmem:[%s2850_s0] sm:$0xff]  ;;  %v2344_v37 = vor.u32 %v2100_v29, %v1989_v28  ;;  %v2099_v38 = vld [vmem:[#allocation7 + $0xec] sm:$0xf]  ;;  %v1997_v39 = vld [vmem:[#allocation7 + $0xe8] sm:$0xf]  ;;  %v2346_v41 = vor.u32 %v2098_v31, %v1991_v32 }
  0x23   :  { %334 = vmatpush.bf16.msra.mxu1 %v1786_v5  ;;  %v2101_v40 = vld [vmem:[#allocation7 + $0xf4] sm:$0xf0]  ;;  %v1999_v42 = vld [vmem:[#allocation7 + $0xf8] sm:$0xf0]  ;;  %v1973_v43 = vld [vmem:[#allocation7 + $0xc0] sm:$0xf] }
  0x24   :  { %363 = vmatpush.bf16.msra.mxu2 %v1790_v6  ;;  %392 = vmatpush.bf16.msra.mxu3 %v1794_v10  ;;  %v2096_v44 = vld [vmem:[#allocation7 + $0xcc] sm:$0xf0]  ;;  %v2094_v45 = vld [vmem:[#allocation7 + $0xc4] sm:$0xf]  ;;  %v1975_v46 = vld [vmem:[#allocation7 + $0xd0] sm:$0xf0]  ;;  %v2348_v47 = vor.u32 %v2101_v40, %v1997_v39  ;;  %v2351_v48 = vor.u32 %v2099_v38, %v1999_v42 }
  0x25   :  { %v2353_v49 = vor.u32 %v2096_v44, %v1973_v43  ;;  %v2095_v50 = vld [vmem:[#allocation7 + $0xcc] sm:$0xf]  ;;  %v1981_v51 = vld [vmem:[#allocation7 + $0xc8] sm:$0xf]  ;;  %v2097_v52 = vld [vmem:[#allocation7 + $0xd4] sm:$0xf0]  ;;  %v2356_v53 = vor.u32 %v2094_v45, %v1975_v46 }
  0x26   :  { %306 = vmatpush.bf16.msra.mxu0 %v1766_v16  ;;  %v1983_v54 = vld [vmem:[#allocation7 + $0xd8] sm:$0xf0]  ;;  %v1957_v55 = vld [vmem:[#allocation7 + $0xa0] sm:$0xf]  ;;  %v2092_v56 = vld [vmem:[#allocation7 + $0xac] sm:$0xf0]  ;;  %v2359_v59 = vor.u32 %v2097_v52, %v1981_v51 }
  0x27   :  { %335 = vmatpush.bf16.msra.mxu1 %v1770_v18  ;;  %v2090_v57 = vld [vmem:[#allocation7 + $0xa4] sm:$0xf]  ;;  %v1959_v58 = vld [vmem:[#allocation7 + $0xb0] sm:$0xf0]  ;;  %v2363_v60 = vor.u32 %v2095_v50, %v1983_v54  ;;  %v2365_v61 = vor.u32 %v2092_v56, %v1957_v55  ;;  %v2091_v62 = vld [vmem:[#allocation7 + $0xac] sm:$0xf] }
  0x28   :  { %364 = vmatpush.bf16.msra.mxu2 %v1774_v19  ;;  %393 = vmatpush.bf16.msra.mxu3 %v1778_v23  ;;  %v1965_v63 = vld [vmem:[#allocation7 + $0xa8] sm:$0xf]  ;;  %v2093_v0 = vld [vmem:[#allocation7 + $0xb4] sm:$0xf0]  ;;  %v2368_v1 = vor.u32 %v2090_v57, %v1959_v58  ;;  %v1967_v2 = vld [vmem:[#allocation7 + $0xb8] sm:$0xf0] }
  0x29   :  { %v1941_v3 = vld [vmem:[#allocation7 + $0x80] sm:$0xf]  ;;  %v2088_v4 = vld [vmem:[#allocation7 + $0x8c] sm:$0xf0]  ;;  %v2086_v5 = vld [vmem:[#allocation7 + $0x84] sm:$0xf]  ;;  %v2371_v7 = vor.u32 %v2093_v0, %v1965_v63  ;;  %v2375_v8 = vor.u32 %v2091_v62, %v1967_v2 }
  0x2a   :  { %307 = vmatpush.bf16.msra.mxu0 %v1750_v30  ;;  %v1943_v6 = vld [vmem:[#allocation7 + $0x90] sm:$0xf0]  ;;  %v2377_v9 = vor.u32 %v2088_v4, %v1941_v3  ;;  %v2087_v10 = vld [vmem:[#allocation7 + $0x8c] sm:$0xf]  ;;  %v1949_v11 = vld [vmem:[#allocation7 + $0x88] sm:$0xf] }
  0x2b   :  { %336 = vmatpush.bf16.msra.mxu1 %v1754_v33  ;;  %v2089_v12 = vld [vmem:[#allocation7 + $0x94] sm:$0xf0]  ;;  %v2380_v13 = vor.u32 %v2086_v5, %v1943_v6  ;;  %v1951_v14 = vld [vmem:[#allocation7 + $0x98] sm:$0xf0]  ;;  %v1925_v15 = vld [vmem:[#allocation7 + $0x60] sm:$0xf] }
  0x2c   :  { %365 = vmatpush.bf16.msra.mxu2 %v1758_v34  ;;  %394 = vmatpush.bf16.msra.mxu3 %v1762_v36  ;;  %v2084_v16 = vld [vmem:[#allocation7 + $0x6c] sm:$0xf0]  ;;  %v2082_v17 = vld [vmem:[#allocation7 + $0x64] sm:$0xf]  ;;  %v1927_v18 = vld [vmem:[#allocation7 + $0x70] sm:$0xf0]  ;;  %v2386_v20 = vor.u32 %v2089_v12, %v1949_v11  ;;  %v2390_v21 = vor.u32 %v2087_v10, %v1951_v14 }
  0x2d   :  { %308 = vmatmul.bf16.vlgmr.msra.gmra.mxu0 %v2034_v35  ;;  %v2035_v19 = vld [vmem:[%s2850_s0 + $0x8] sm:$0xff]  ;;  %v2392_v22 = vor.u32 %v2084_v16, %v1925_v15  ;;  %v2083_v23 = vld [vmem:[#allocation7 + $0x6c] sm:$0xf]  ;;  %v2085_v25 = vld [vmem:[#allocation7 + $0x74] sm:$0xf0]  ;;  %v2395_v26 = vor.u32 %v2082_v17, %v1927_v18 }
  0x2e   :  { %649 = vmatpush.bf16.msrb.mxu0 %v2344_v37  ;;  %337 = vmatmul.bf16.vlgmr.msra.gmra.mxu1 %v2034_v35  ;;  %v1933_v24 = vld [vmem:[#allocation7 + $0x68] sm:$0xf]  ;;  %v1935_v27 = vld [vmem:[#allocation7 + $0x78] sm:$0xf0]  ;;  %v1909_v28 = vld [vmem:[#allocation7 + $0x40] sm:$0xf] }
  0x2f   :  { %662 = vmatpush.bf16.msrb.mxu1 %v2346_v41  ;;  %366 = vmatmul.bf16.vlgmr.msra.gmra.mxu2 %v2034_v35  ;;  %v2080_v29 = vld [vmem:[#allocation7 + $0x4c] sm:$0xf0]  ;;  %v2078_v30 = vld [vmem:[#allocation7 + $0x44] sm:$0xf]  ;;  %v1911_v31 = vld [vmem:[#allocation7 + $0x50] sm:$0xf0]  ;;  %v2398_v32 = vor.u32 %v2085_v25, %v1933_v24  ;;  %v2402_v33 = vor.u32 %v2083_v23, %v1935_v27 }
  0x30   :  { %395 = vmatmul.bf16.vlgmr.msra.gmra.mxu3 %v2034_v35  ;;  %675 = vmatpush.bf16.msrb.mxu2 %v2348_v47  ;;  %v2404_v34 = vor.u32 %v2080_v29, %v1909_v28  ;;  %v2407_v35 = vor.u32 %v2078_v30, %v1911_v31  ;;  %v2079_v36 = vld [vmem:[#allocation7 + $0x4c] sm:$0xf]  ;;  %v1919_v38 = vld [vmem:[#allocation7 + $0x58] sm:$0xf0]  ;;  %v1893_v39 = vld [vmem:[#allocation7 + $0x20] sm:$0xf] }
  0x31   :  { %688 = vmatpush.bf16.msrb.mxu3 %v2351_v48  ;;  %v2076_v40 = vld [vmem:[#allocation7 + $0x2c] sm:$0xf0]  ;;  %v2074_v42 = vld [vmem:[#allocation7 + $0x24] sm:$0xf]  ;;  %v2412_v43 = vor.u32 %v2079_v36, %v1919_v38  ;;  %v1895_v45 = vld [vmem:[#allocation7 + $0x30] sm:$0xf0] }
  0x32   :  { %650 = vmatpush.bf16.msrb.mxu0 %v2353_v49  ;;  %v2414_v44 = vor.u32 %v2076_v40, %v1893_v39  ;;  %v1917_v46 = vld [vmem:[#allocation7 + $0x48] sm:$0xf]  ;;  %v2081_v50 = vld [vmem:[#allocation7 + $0x54] sm:$0xf0]  ;;  %v2417_v51 = vor.u32 %v2074_v42, %v1895_v45  ;;  %v2075_v54 = vld [vmem:[#allocation7 + $0x2c] sm:$0xf] }
  0x33   :  { %663 = vmatpush.bf16.msrb.mxu1 %v2356_v53  ;;  %v2419_v52 = vor.u32 %v2081_v50, %v1917_v46  ;;  %v1903_v55 = vld [vmem:[#allocation7 + $0x38] sm:$0xf0]  ;;  %v1877_v56 = vld [vmem:[#allocation7] sm:$0xf]  ;;  %v2072_v57 = vld [vmem:[#allocation7 + $0xc] sm:$0xf0] }
  0x34   :  { %676 = vmatpush.bf16.msrb.mxu2 %v2359_v59  ;;  %v2070_v58 = vld [vmem:[#allocation7 + $0x4] sm:$0xf]  ;;  %v1879_v62 = vld [vmem:[#allocation7 + $0x10] sm:$0xf0]  ;;  %v1901_v63 = vld [vmem:[#allocation7 + $0x28] sm:$0xf]  ;;  %v2424_v2 = vor.u32 %v2075_v54, %v1903_v55  ;;  %v2426_v3 = vor.u32 %v2072_v57, %v1877_v56 }
  0x35   :  { %689 = vmatpush.bf16.msrb.mxu3 %v2363_v60  ;;  %v2077_v0 = vld [vmem:[#allocation7 + $0x34] sm:$0xf0]  ;;  %v1885_v5 = vld [vmem:[#allocation7 + $0x8] sm:$0xf]  ;;  %v2431_v10 = vor.u32 %v2070_v58, %v1879_v62  ;;  %v2071_v11 = vld [vmem:[#allocation7 + $0xc] sm:$0xf] }
  0x36   :  { %651 = vmatpush.bf16.msrb.mxu0 %v2365_v61  ;;  %v2428_v4 = vor.u32 %v2077_v0, %v1901_v63  ;;  %v2073_v6 = vld [vmem:[#allocation7 + $0x14] sm:$0xf0]  ;;  %v1887_v12 = vld [vmem:[#allocation7 + $0x18] sm:$0xf0]  ;;  %v2036_v17 = vld [vmem:[%s2850_s0 + $0x10] sm:$0xff] }
  0x37   :  { %664 = vmatpush.bf16.msrb.mxu1 %v2368_v1  ;;  %v62_v14 = vld [vmem:[%s2854_s4] sm:$0xf]  ;;  %v2437_v15 = vor.u32 %v2073_v6, %v1885_v5  ;;  %v2441_v16 = vor.u32 %v2071_v11, %v1887_v12  ;;  %v2037_v18 = vld [vmem:[%s2850_s0 + $0x18] sm:$0xff] }
  0x38   :  { %677 = vmatpush.bf16.msrb.mxu2 %v2371_v7  ;;  %63 = vst [vmem:[#allocation2] sm:$0xf] %v62_v14  ;;  %v106_v25 = vld [vmem:[%s2853_s3] sm:$0xf] }
  0x39   :  { %690 = vmatpush.bf16.msrb.mxu3 %v2375_v8  ;;  %v108_v27 = vperm.slane %v106_v25, 0  ;;  %v109_v29 = vperm.slane %v106_v25, 1  ;;  %v2527_v40 = vperm.slane %v106_v25, 2  ;;  %v2529_v42 = vperm.slane %v106_v25, 3 }
  0x3a   :  { %652 = vmatpush.bf16.msrb.mxu0 %v2377_v9 }
  0x3b   :  { %665 = vmatpush.bf16.msrb.mxu1 %v2380_v13 }
  0x3c   :  { %678 = vmatpush.bf16.msrb.mxu2 %v2386_v20 }
  0x3d   :  { %691 = vmatpush.bf16.msrb.mxu3 %v2390_v21  ;;  %313 = vmatmul.bf16.gmra.mxu0 %v2035_v19 }
  0x3e   :  { %653 = vmatpush.bf16.msrb.mxu0 %v2392_v22  ;;  %342 = vmatmul.bf16.gmra.mxu1 %v2035_v19 }
  0x3f   :  { %666 = vmatpush.bf16.msrb.mxu1 %v2395_v26  ;;  %371 = vmatmul.bf16.gmra.mxu2 %v2035_v19 }
  0x40   :  { %400 = vmatmul.bf16.gmra.mxu3 %v2035_v19  ;;  %679 = vmatpush.bf16.msrb.mxu2 %v2398_v32  ;;  %v480_v19 = vld [vmem:[#allocation2] sm:$0xf] }
  0x41   :  { %692 = vmatpush.bf16.msrb.mxu3 %v2402_v33 }
  0x42   :  { %654 = vmatpush.bf16.msrb.mxu0 %v2404_v34 }
  0x43   :  { %667 = vmatpush.bf16.msrb.mxu1 %v2407_v35 }
  0x44   :  { %680 = vmatpush.bf16.msrb.mxu2 %v2419_v52 }
  0x45   :  { %693 = vmatpush.bf16.msrb.mxu3 %v2412_v43 }
  0x46   :  { %655 = vmatpush.bf16.msrb.mxu0 %v2414_v44 }
  0x47   :  { %668 = vmatpush.bf16.msrb.mxu1 %v2417_v51 }
  0x48   :  { %681 = vmatpush.bf16.msrb.mxu2 %v2428_v4 }
  0x49   :  { %694 = vmatpush.bf16.msrb.mxu3 %v2424_v2 }
  0x4a   :  { %656 = vmatpush.bf16.msrb.mxu0 %v2426_v3 }
  0x4b   :  { %669 = vmatpush.bf16.msrb.mxu1 %v2431_v10 }
  0x4c   :  { %682 = vmatpush.bf16.msrb.mxu2 %v2437_v15 }
  0x4d   :  { %695 = vmatpush.bf16.msrb.mxu3 %v2441_v16  ;;  %318 = vmatmul.bf16.gmra.mxu0 %v2036_v17 }
  0x4e   :  { %781 = vmatpush.bf16.msra.mxu0 %v2344_v37  ;;  %347 = vmatmul.bf16.gmra.mxu1 %v2036_v17 }
  0x4f   :  { %794 = vmatpush.bf16.msra.mxu1 %v2346_v41  ;;  %376 = vmatmul.bf16.gmra.mxu2 %v2036_v17 }
  0x50   :  { %807 = vmatpush.bf16.msra.mxu2 %v2348_v47  ;;  %405 = vmatmul.bf16.gmra.mxu3 %v2036_v17 }
  0x51   :  { %820 = vmatpush.bf16.msra.mxu3 %v2351_v48 }
  0x52   :  { %782 = vmatpush.bf16.msra.mxu0 %v2353_v49 }
  0x53   :  { %795 = vmatpush.bf16.msra.mxu1 %v2356_v53 }
  0x54   :  { %808 = vmatpush.bf16.msra.mxu2 %v2359_v59 }
  0x55   :  { %821 = vmatpush.bf16.msra.mxu3 %v2363_v60 }
  0x56   :  { %783 = vmatpush.bf16.msra.mxu0 %v2365_v61 }
  0x57   :  { %796 = vmatpush.bf16.msra.mxu1 %v2368_v1 }
  0x58   :  { %809 = vmatpush.bf16.msra.mxu2 %v2371_v7 }
  0x59   :  { %822 = vmatpush.bf16.msra.mxu3 %v2375_v8 }
  0x5a   :  { %784 = vmatpush.bf16.msra.mxu0 %v2377_v9 }
  0x5b   :  { %797 = vmatpush.bf16.msra.mxu1 %v2380_v13 }
  0x5c   :  { %810 = vmatpush.bf16.msra.mxu2 %v2386_v20 }
  0x5d   :  { %823 = vmatpush.bf16.msra.mxu3 %v2390_v21  ;;  %323 = vmatmul.bf16.gmra.mxu0 %v2037_v18 }
  0x5e   :  { %785 = vmatpush.bf16.msra.mxu0 %v2392_v22  ;;  %352 = vmatmul.bf16.gmra.mxu1 %v2037_v18 }
  0x5f   :  { %798 = vmatpush.bf16.msra.mxu1 %v2395_v26  ;;  %381 = vmatmul.bf16.gmra.mxu2 %v2037_v18 }
  0x60   :  { %811 = vmatpush.bf16.msra.mxu2 %v2398_v32  ;;  %410 = vmatmul.bf16.gmra.mxu3 %v2037_v18 }
  0x61   :  { %824 = vmatpush.bf16.msra.mxu3 %v2402_v33 }
  0x62   :  { %786 = vmatpush.bf16.msra.mxu0 %v2404_v34 }
  0x63   :  { %799 = vmatpush.bf16.msra.mxu1 %v2407_v35 }
  0x64   :  { %812 = vmatpush.bf16.msra.mxu2 %v2419_v52 }
  0x65   :  { %825 = vmatpush.bf16.msra.mxu3 %v2412_v43 }
  0x66   :  { %787 = vmatpush.bf16.msra.mxu0 %v2414_v44 }
  0x67   :  { %800 = vmatpush.bf16.msra.mxu1 %v2417_v51 }
  0x68   :  { %813 = vmatpush.bf16.msra.mxu2 %v2428_v4 }
  0x69   :  { %826 = vmatpush.bf16.msra.mxu3 %v2424_v2 }
  0x6a   :  { %788 = vmatpush.bf16.msra.mxu0 %v2426_v3 }
  0x6b   :  { %801 = vmatpush.bf16.msra.mxu1 %v2431_v10 }
  0x6c   :  { %814 = vmatpush.bf16.msra.mxu2 %v2437_v15 }
  0x6d   :  { %827 = vmatpush.bf16.msra.mxu3 %v2441_v16  ;;  %657 = vmatmul.bf16.vlgmr.msrb.gmra.mxu0 %v480_v19 }
  0x6e   :  { %670 = vmatmul.bf16.vlgmr.msrb.gmra.mxu1 %v480_v19  ;;  %914 = vmatpush.bf16.msrb.mxu0 %v2344_v37 }
  0x6f   :  { %683 = vmatmul.bf16.vlgmr.msrb.gmra.mxu2 %v480_v19  ;;  %927 = vmatpush.bf16.msrb.mxu1 %v2346_v41 }
  0x70   :  { %696 = vmatmul.bf16.vlgmr.msrb.gmra.mxu3 %v480_v19  ;;  %940 = vmatpush.bf16.msrb.mxu2 %v2348_v47 }
  0x71   :  { %953 = vmatpush.bf16.msrb.mxu3 %v2351_v48 }
  0x72   :  { %915 = vmatpush.bf16.msrb.mxu0 %v2353_v49 }
  0x73   :  { %928 = vmatpush.bf16.msrb.mxu1 %v2356_v53 }
  0x74   :  { %941 = vmatpush.bf16.msrb.mxu2 %v2359_v59 }
  0x75   :  { %954 = vmatpush.bf16.msrb.mxu3 %v2363_v60 }
  0x76   :  { %916 = vmatpush.bf16.msrb.mxu0 %v2365_v61 }
  0x77   :  { %929 = vmatpush.bf16.msrb.mxu1 %v2368_v1 }
  0x78   :  { %942 = vmatpush.bf16.msrb.mxu2 %v2371_v7 }
  0x79   :  { %955 = vmatpush.bf16.msrb.mxu3 %v2375_v8 }
  0x7a   :  { %917 = vmatpush.bf16.msrb.mxu0 %v2377_v9 }
  0x7b   :  { %930 = vmatpush.bf16.msrb.mxu1 %v2380_v13 }
  0x7c   :  { %943 = vmatpush.bf16.msrb.mxu2 %v2386_v20 }
  0x7d   :  { %956 = vmatpush.bf16.msrb.mxu3 %v2390_v21 }
  0x7e   :  { %918 = vmatpush.bf16.msrb.mxu0 %v2392_v22 }
  0x7f   :  { %931 = vmatpush.bf16.msrb.mxu1 %v2395_v26 }
  0x80   :  { %944 = vmatpush.bf16.msrb.mxu2 %v2398_v32 }
  0x81   :  { %957 = vmatpush.bf16.msrb.mxu3 %v2402_v33 }
  0x82   :  { %919 = vmatpush.bf16.msrb.mxu0 %v2404_v34 }
  0x83   :  { %932 = vmatpush.bf16.msrb.mxu1 %v2407_v35 }
  0x84   :  { %945 = vmatpush.bf16.msrb.mxu2 %v2419_v52 }
  0x85   :  { %958 = vmatpush.bf16.msrb.mxu3 %v2412_v43 }
  0x86   :  { %920 = vmatpush.bf16.msrb.mxu0 %v2414_v44 }
  0x87   :  { %933 = vmatpush.bf16.msrb.mxu1 %v2417_v51 }
  0x88   :  { %946 = vmatpush.bf16.msrb.mxu2 %v2428_v4 }
  0x89   :  { %959 = vmatpush.bf16.msrb.mxu3 %v2424_v2 }
  0x8a   :  { %921 = vmatpush.bf16.msrb.mxu0 %v2426_v3 }
  0x8b   :  { %934 = vmatpush.bf16.msrb.mxu1 %v2431_v10 }
  0x8c   :  { %947 = vmatpush.bf16.msrb.mxu2 %v2437_v15 }
  0x8d   :  { %960 = vmatpush.bf16.msrb.mxu3 %v2441_v16 }
  0xaa   :  { %v309_v23 = vpop.f32.mrf.mxu0 }
  0xab   :  { %v338_v24 = vpop.f32.mrf.mxu1 }
  0xb2   :  { %v2519_v28 = vpop.f32.mrf.mxu2  ;;  %v311_v31 = vpop.f32.mrf.mxu0 }
  0xb3   :  { %v2521_v30 = vpop.f32.mrf.mxu3  ;;  %v2523_v36 = vadd.f32 %v311_v31, %v108_v27  ;;  %v340_v38 = vpop.f32.mrf.mxu1 }
  0xb4   :  { %v2525_v39 = vadd.f32 %v340_v38, %v109_v29 }
  0xba   :  { %v369_v45 = vpop.f32.mrf.mxu2  ;;  %v314_v54 = vpop.f32.mrf.mxu0 }
  0xbb   :  { %v2532_v46 = vadd.f32 %v369_v45, %v2527_v40  ;;  %v398_v50 = vpop.f32.mrf.mxu3  ;;  %v2537_v56 = vadd.f32 %v314_v54, %v108_v27  ;;  %v343_v57 = vpop.f32.mrf.mxu1 }
  0xbc   :  { %v2535_v55 = vadd.f32 %v398_v50, %v2529_v42  ;;  %v2539_v58 = vadd.f32 %v343_v57, %v109_v29 }
  0xc2   :  { %v372_v62 = vpop.f32.mrf.mxu2  ;;  %v316_v5 = vpop.f32.mrf.mxu0 }
  0xc3   :  { %v2542_v63 = vadd.f32 %v372_v62, %v2527_v40  ;;  %v401_v0 = vpop.f32.mrf.mxu3  ;;  %v2547_v11 = vadd.f32 %v316_v5, %v108_v27  ;;  %v345_v12 = vpop.f32.mrf.mxu1 }
  0xc4   :  { %v2545_v6 = vadd.f32 %v401_v0, %v2529_v42  ;;  %v2549_v14 = vadd.f32 %v345_v12, %v109_v29 }
  0xc5   :  { %2859 = vst [vmem:[#allocation11_spill] sm:$0xff] %v2547_v11 }
  0xc6   :  { %2860 = vst [vmem:[#allocation12_spill] sm:$0xff] %v2549_v14 }
  0xca   :  { %v374_v17 = vpop.f32.mrf.mxu2  ;;  %v319_v25 = vpop.f32.mrf.mxu0 }
  0xcb   :  { %v2552_v18 = vadd.f32 %v374_v17, %v2527_v40  ;;  %v403_v19 = vpop.f32.mrf.mxu3  ;;  %v2557_v38 = vadd.f32 %v319_v25, %v108_v27  ;;  %v348_v45 = vpop.f32.mrf.mxu1 }
  0xcc   :  { %v2555_v31 = vadd.f32 %v403_v19, %v2529_v42  ;;  %v2559_v50 = vadd.f32 %v348_v45, %v109_v29 }
  0xcd   :  { %2861 = vst [vmem:[#allocation13_spill] sm:$0xff] %v2552_v18 }
  0xce   :  { %2862 = vst [vmem:[#allocation14_spill] sm:$0xff] %v2555_v31 }
  0xcf   :  { %2863 = vst [vmem:[#allocation15_spill] sm:$0xff] %v2557_v38 }
  0xd0   :  { %2864 = vst [vmem:[#allocation16_spill] sm:$0xff] %v2559_v50 }
  0xd2   :  { %v377_v54 = vpop.f32.mrf.mxu2  ;;  %v321_v0 = vpop.f32.mrf.mxu0 }
  0xd3   :  { %v2562_v57 = vadd.f32 %v377_v54, %v2527_v40  ;;  %v406_v62 = vpop.f32.mrf.mxu3  ;;  %v2567_v12 = vadd.f32 %v321_v0, %v108_v27  ;;  %v350_v17 = vpop.f32.mrf.mxu1 }
  0xd4   :  { %v2565_v5 = vadd.f32 %v406_v62, %v2529_v42  ;;  %v2569_v18 = vadd.f32 %v350_v17, %v109_v29 }
  0xd5   :  { %2865 = vst [vmem:[#allocation17_spill] sm:$0xff] %v2562_v57 }
  0xd6   :  { %2866 = vst [vmem:[#allocation18_spill] sm:$0xff] %v2565_v5 }
  0xd7   :  { %2867 = vst [vmem:[#allocation19_spill] sm:$0xff] %v2567_v12 }
  0xd8   :  { %2868 = vst [vmem:[#allocation20_spill] sm:$0xff] %v2569_v18 }
  0xda   :  { %v379_v19 = vpop.f32.mrf.mxu2  ;;  %v324_v50 = vpop.f32.mrf.mxu0 }
  0xdb   :  { %v2572_v25 = vadd.f32 %v379_v19, %v2527_v40  ;;  %v408_v45 = vpop.f32.mrf.mxu3  ;;  %v2577_v54 = vadd.f32 %v324_v50, %v108_v27  ;;  %v353_v57 = vpop.f32.mrf.mxu1 }
  0xdc   :  { %v2575_v38 = vadd.f32 %v408_v45, %v2529_v42  ;;  %v2579_v31 = vadd.f32 %v353_v57, %v109_v29  ;;  %v310_v45 = vadd.f32 %v309_v23, %v108_v27  ;;  %v397_v23 = vadd.f32 %v2521_v30, %v2529_v42 }
  0xdd   :  { %2869 = vst [vmem:[#allocation21_spill] sm:$0xff] %v2572_v25 }
  0xde   :  { %2870 = vst [vmem:[#allocation22_spill] sm:$0xff] %v2575_v38 }
  0xdf   :  { %2871 = vst [vmem:[#allocation23_spill] sm:$0xff] %v2577_v54  ;;  %v339_v54 = vadd.f32 %v338_v24, %v109_v29 }
  0xe0   :  { %2872 = vst [vmem:[#allocation24_spill] sm:$0xff] %v2579_v31 }
  0xe2   :  { %v382_v62 = vpop.f32.mrf.mxu2  ;;  %v326_v18 = vpop.f32.mrf.mxu0 }
  0xe3   :  { %v2582_v0 = vadd.f32 %v382_v62, %v2527_v40  ;;  %v411_v17 = vpop.f32.mrf.mxu3  ;;  %v2587_v19 = vadd.f32 %v326_v18, %v108_v27  ;;  %v355_v25 = vpop.f32.mrf.mxu1 }
  0xe4   :  { %v2585_v12 = vadd.f32 %v411_v17, %v2529_v42  ;;  %v2589_v5 = vadd.f32 %v355_v25, %v109_v29 }
  0xe5   :  { %2873 = vst [vmem:[#allocation25_spill] sm:$0xff] %v2582_v0 }
  0xe6   :  { %2874 = vst [vmem:[#allocation26_spill] sm:$0xff] %v2585_v12 }
  0xe7   :  { %2875 = vst [vmem:[#allocation27_spill] sm:$0xff] %v2587_v19 }
  0xe8   :  { %2876 = vst [vmem:[#allocation28_spill] sm:$0xff] %v2589_v5 }
  0xea   :  { %v384_v50 = vpop.f32.mrf.mxu2  ;;  %v658_v38 = vpop.f32.mrf.mxu0 }
  0xeb   :  { %v2592_v57 = vadd.f32 %v384_v50, %v2527_v40  ;;  %v413_v31 = vpop.f32.mrf.mxu3  ;;  %v701_v0 = vadd.f32 %v658_v38, %v310_v45  ;;  %v671_v14 = vpop.f32.mrf.mxu1 }
  0xec   :  { %v2595_v62 = vadd.f32 %v413_v31, %v2529_v42  ;;  %v702_v17 = vadd.f32 %v671_v14, %v339_v54 }
  0xed   :  { %2877 = vst [vmem:[#allocation29_spill] sm:$0xff] %v2592_v57  ;;  %v2003_v12 = vmul.f32 -1.442695, %v701_v0 }
  0xee   :  { %2878 = vst [vmem:[#allocation30_spill] sm:$0xff] %v2595_v62  ;;  %v2004_v18 = vmul.f32 -1.442695, %v702_v17 }
  0xef   :  { %2106 = vpow2.f32 %v2003_v12  ;;  %v368_v12 = vadd.f32 %v2519_v28, %v2527_v40 }
  0xf0   :  { %2108 = vpow2.f32 %v2004_v18 }
  0xf2   :  { %v684_v27 = vpop.f32.mrf.mxu2  ;;  %v660_v29 = vpop.f32.mrf.mxu0 }
  0xf3   :  { %v697_v24 = vpop.f32.mrf.mxu3  ;;  %v673_v50 = vpop.f32.mrf.mxu1  ;;  %v703_v42 = vadd.f32 %v684_v27, %v368_v12  ;;  %v64_v12 = vld [vmem:[%s2855_s5] sm:$0xff] }
  0xf4   :  { %v704_v25 = vadd.f32 %v697_v24, %v397_v23 }
  0xf5   :  { %v2107_v57 = vpop.eup %2106 }
  0xf6   :  { %v2005_v5 = vmul.f32 -1.442695, %v704_v25  ;;  %v2109_v19 = vpop.eup %2108  ;;  %v708_v31 = vadd.f32 1.0, %v2107_v57 }
  0xf7   :  { %v727_v62 = vadd.f32 1.0, %v2109_v19 }
  0xf8   :  { %2110 = vpow2.f32 %v2005_v5  ;;  %v720_v57 = vand.u32 2147483648, %v708_v31  ;;  %v718_v29 = vand.u32 2147483647, %v708_v31  ;;  %vm714_vm2 = vweird.f32 %v708_v31 }
  0xf9   :  { %2112 = vrcp.f32 %v708_v31  ;;  %v739_v5 = vand.u32 2147483648, %v727_v62  ;;  %v737_v50 = vand.u32 2147483647, %v727_v62  ;;  %vm733_vm3 = vweird.f32 %v727_v62 }
  0xfa   :  { %2114 = vrcp.f32 %v727_v62  ;;  %v686_v14 = vpop.f32.mrf.mxu2  ;;  %v721_v27 = vor.u32 1.1754944e-38, %v720_v57  ;;  %vm719_vm6 = vcmp.eq.f32.partialorder %v718_v29, 8.507059e+37 }
  0xfb   :  { %v699_v38 = vpop.f32.mrf.mxu3  ;;  %vm738_vm7 = vcmp.eq.f32.partialorder %v737_v50, 8.507059e+37 }
  0xfc   :  { %v740_v38 = vor.u32 1.1754944e-38, %v739_v5 }
  0xfe   :  { %v2111_v54 = vpop.eup %2110 }
  0xff   :  { %v2113_v30 = vpop.eup %2112  ;;  %v747_v0 = vadd.f32 1.0, %v2111_v54 }
 0x100   :  { %v2115_v45 = vpop.eup %2114  ;;  %v710_v17 = vmul.f32 %v2113_v30, %v708_v31  ;;  %vm715_vm0 = vweird.f32 %v2113_v30 }
 0x101   :  { %v729_v18 = vmul.f32 %v2115_v45, %v727_v62  ;;  %2116 = vrcp.f32 %v747_v0  ;;  %vm734_vm1 = vweird.f32 %v2115_v45  ;;  %vm716_vm4 = vmor %vm714_vm2, %vm715_vm0  ;;  %v759_v5 = vand.u32 2147483648, %v747_v0 }
 0x102   :  { %v711_v23 = vsub.f32 1.0, %v710_v17  ;;  %2118 = vtanh.f32 %v703_v42  ;;  %vm735_vm5 = vmor %vm733_vm3, %vm734_vm1  ;;  %vm753_vm9 = vweird.f32 %v747_v0 }
 0x103   :  { %v730_v24 = vsub.f32 1.0, %v729_v18 }
 0x104   :  { %v712_v19 = vmul.f32 %v2113_v30, %v711_v23 }
 0x105   :  { %v731_v25 = vmul.f32 %v2115_v45, %v730_v24 }
 0x106   :  { %v713_v28 = vadd.f32 %v2113_v30, %v712_v19 }
 0x107   :  { %v2117_v40 = vpop.eup %2116  ;;  %v732_v14 = vadd.f32 %v2115_v45, %v731_v25 }
 0x108   :  { %v717_v54 = vsel %vm716_vm4, %v2113_v30, %v713_v28  ;;  %v749_v42 = vmul.f32 %v2117_v40, %v747_v0  ;;  %v2119_v17 = vpop.eup %2118  ;;  %vm754_vm8 = vweird.f32 %v2117_v40  ;;  %v757_v30 = vand.u32 2147483647, %v747_v0 }
 0x109   :  { %v722_v18 = vsel %vm719_vm6, %v721_v27, %v717_v54  ;;  %v736_v23 = vsel %vm735_vm5, %v2115_v45, %v732_v14  ;;  %vm755_vm10 = vmor %vm753_vm9, %vm754_vm8  ;;  %v760_v28 = vor.u32 1.1754944e-38, %v759_v5 }
 0x10a   :  { %v741_v24 = vsel %vm738_vm7, %v740_v38, %v736_v23  ;;  %v764_v31 = vmul.f32 %v2119_v17, %v722_v18  ;;  %v750_v19 = vsub.f32 1.0, %v749_v42  ;;  %vm758_vm11 = vcmp.eq.f32.partialorder %v757_v30, 8.507059e+37 }
 0x10b   :  { %v763_v62 = vmul.f32 %v741_v24, %v64_v12 }
 0x10c   :  { %v751_v11 = vmul.f32 %v2117_v40, %v750_v19 }
 0x10d   :  { %v2604_v57 = vadd.f32 %v764_v31, %v763_v62 }
 0x10e   :  { %v752_v25 = vadd.f32 %v2117_v40, %v751_v11 }
 0x10f   :  { %2120 = vtanh.f32 %v2604_v57 }
 0x110   :  { %v756_v29 = vsel %vm755_vm10, %v2117_v40, %v752_v25 }
 0x111   :  { %v761_v50 = vsel %vm758_vm11, %v760_v28, %v756_v29 }
 0x115   :  { %v2121_v45 = vpop.eup %2120 }
 0x116   :  { %v767_v27 = vmul.f32 %v2121_v45, %v761_v50 }
 0x118   :  { %v768_v14 = vpack.c.bf16 %v767_v27, %v767_v27 }
 0x11a   :  { %769 = vst [vmem:[#allocation2] sm:$0xf] %v768_v14 }
 0x11b   :  { %771 = vst [vmem:[%s2856_s6] sm:$0xf] %v768_v14 }
 0x121   :  { %v772_v11 = vld [vmem:[#allocation2] sm:$0xf] }
 0x122   :  { %789 = vmatmul.bf16.vlgmr.msra.gmra.mxu0 %v772_v11  ;;  %802 = vmatmul.bf16.vlgmr.msra.gmra.mxu1 %v772_v11 }
 0x123   :  { %815 = vmatmul.bf16.vlgmr.msra.gmra.mxu2 %v772_v11  ;;  %828 = vmatmul.bf16.vlgmr.msra.gmra.mxu3 %v772_v11 }
 0x124   :  { %1047 = vmatpush.bf16.msra.mxu0 %v2344_v37  ;;  %1060 = vmatpush.bf16.msra.mxu1 %v2346_v41 }
 0x125   :  { %1073 = vmatpush.bf16.msra.mxu2 %v2348_v47  ;;  %1086 = vmatpush.bf16.msra.mxu3 %v2351_v48 }
 0x128   :  { %1048 = vmatpush.bf16.msra.mxu0 %v2353_v49  ;;  %1061 = vmatpush.bf16.msra.mxu1 %v2356_v53 }
 0x129   :  { %1074 = vmatpush.bf16.msra.mxu2 %v2359_v59  ;;  %1087 = vmatpush.bf16.msra.mxu3 %v2363_v60 }
 0x12c   :  { %1049 = vmatpush.bf16.msra.mxu0 %v2365_v61  ;;  %1062 = vmatpush.bf16.msra.mxu1 %v2368_v1 }
 0x12d   :  { %1075 = vmatpush.bf16.msra.mxu2 %v2371_v7  ;;  %1088 = vmatpush.bf16.msra.mxu3 %v2375_v8 }
 0x130   :  { %1050 = vmatpush.bf16.msra.mxu0 %v2377_v9  ;;  %1063 = vmatpush.bf16.msra.mxu1 %v2380_v13 }
 0x131   :  { %1076 = vmatpush.bf16.msra.mxu2 %v2386_v20  ;;  %1089 = vmatpush.bf16.msra.mxu3 %v2390_v21 }
 0x134   :  { %1051 = vmatpush.bf16.msra.mxu0 %v2392_v22  ;;  %1064 = vmatpush.bf16.msra.mxu1 %v2395_v26 }
 0x135   :  { %1077 = vmatpush.bf16.msra.mxu2 %v2398_v32  ;;  %1090 = vmatpush.bf16.msra.mxu3 %v2402_v33 }
 0x138   :  { %1052 = vmatpush.bf16.msra.mxu0 %v2404_v34  ;;  %1065 = vmatpush.bf16.msra.mxu1 %v2407_v35 }
 0x139   :  { %1078 = vmatpush.bf16.msra.mxu2 %v2419_v52  ;;  %1091 = vmatpush.bf16.msra.mxu3 %v2412_v43 }
 0x13c   :  { %1053 = vmatpush.bf16.msra.mxu0 %v2414_v44  ;;  %1066 = vmatpush.bf16.msra.mxu1 %v2417_v51 }
 0x13d   :  { %1079 = vmatpush.bf16.msra.mxu2 %v2428_v4  ;;  %1092 = vmatpush.bf16.msra.mxu3 %v2424_v2 }
 0x140   :  { %1054 = vmatpush.bf16.msra.mxu0 %v2426_v3  ;;  %1067 = vmatpush.bf16.msra.mxu1 %v2431_v10 }
 0x141   :  { %1080 = vmatpush.bf16.msra.mxu2 %v2437_v15  ;;  %1093 = vmatpush.bf16.msra.mxu3 %v2441_v16 }
 0x19f   :  { %v790_v0 = vpop.f32.mrf.mxu0  ;;  %v803_v40 = vpop.f32.mrf.mxu1 }
 0x1a0   :  { %v833_v38 = vadd.f32 %v790_v0, %v2523_v36  ;;  %v834_v12 = vadd.f32 %v803_v40, %v2525_v39 }
 0x1a2   :  { %v2006_v54 = vmul.f32 -1.442695, %v833_v38  ;;  %v2007_v42 = vmul.f32 -1.442695, %v834_v12 }
 0x1a4   :  { %2122 = vpow2.f32 %v2006_v54 }
 0x1a5   :  { %2124 = vpow2.f32 %v2007_v42 }
 0x1a6   :  { %v816_v17 = vpop.f32.mrf.mxu2  ;;  %v829_v18 = vpop.f32.mrf.mxu3 }
 0x1a7   :  { %v836_v23 = vadd.f32 %v829_v18, %v2535_v55  ;;  %v792_v24 = vpop.f32.mrf.mxu0  ;;  %v805_v31 = vpop.f32.mrf.mxu1  ;;  %v835_v50 = vadd.f32 %v816_v17, %v2532_v46 }
 0x1a9   :  { %v2008_v19 = vmul.f32 -1.442695, %v836_v23 }
 0x1aa   :  { %v2123_v62 = vpop.eup %2122 }
 0x1ab   :  { %v2125_v25 = vpop.eup %2124  ;;  %v840_v5 = vadd.f32 1.0, %v2123_v62  ;;  %2126 = vpow2.f32 %v2008_v19 }
 0x1ac   :  { %v859_v30 = vadd.f32 1.0, %v2125_v25 }
 0x1ad   :  { %2128 = vrcp.f32 %v840_v5  ;;  %v852_v40 = vand.u32 2147483648, %v840_v5  ;;  %v850_v54 = vand.u32 2147483647, %v840_v5  ;;  %vm846_vm14 = vweird.f32 %v840_v5 }
 0x1ae   :  { %2130 = vrcp.f32 %v859_v30  ;;  %v818_v36 = vpop.f32.mrf.mxu2  ;;  %v831_v39 = vpop.f32.mrf.mxu3  ;;  %v871_v38 = vand.u32 2147483648, %v859_v30  ;;  %v869_v18 = vand.u32 2147483647, %v859_v30  ;;  %vm865_vm15 = vweird.f32 %v859_v30 }
 0x1af   :  { %v853_v46 = vor.u32 1.1754944e-38, %v852_v40  ;;  %vm851_vm2 = vcmp.eq.f32.partialorder %v850_v54, 8.507059e+37 }
 0x1b0   :  { %v872_v19 = vor.u32 1.1754944e-38, %v871_v38  ;;  %vm870_vm3 = vcmp.eq.f32.partialorder %v869_v18, 8.507059e+37 }
 0x1b1   :  { %v2127_v29 = vpop.eup %2126 }
 0x1b2   :  { %v879_v28 = vadd.f32 1.0, %v2127_v29 }
 0x1b3   :  { %v2129_v45 = vpop.eup %2128 }
 0x1b4   :  { %v2131_v27 = vpop.eup %2130  ;;  %v842_v14 = vmul.f32 %v2129_v45, %v840_v5  ;;  %2132 = vrcp.f32 %v879_v28  ;;  %vm847_vm12 = vweird.f32 %v2129_v45  ;;  %vm885_vm5 = vweird.f32 %v879_v28 }
 0x1b5   :  { %v861_v55 = vmul.f32 %v2131_v27, %v859_v30  ;;  %2134 = vtanh.f32 %v835_v50  ;;  %vm866_vm13 = vweird.f32 %v2131_v27  ;;  %vm848_vm0 = vmor %vm846_vm14, %vm847_vm12 }
 0x1b6   :  { %v843_v11 = vsub.f32 1.0, %v842_v14  ;;  %vm867_vm1 = vmor %vm865_vm15, %vm866_vm13 }
 0x1b7   :  { %v862_v0 = vsub.f32 1.0, %v861_v55 }
 0x1b8   :  { %v844_v12 = vmul.f32 %v2129_v45, %v843_v11 }
 0x1b9   :  { %v863_v42 = vmul.f32 %v2131_v27, %v862_v0  ;;  %v891_v0 = vand.u32 2147483648, %v879_v28 }
 0x1ba   :  { %v2133_v23 = vpop.eup %2132  ;;  %v845_v24 = vadd.f32 %v2129_v45, %v844_v12 }
 0x1bb   :  { %v864_v17 = vadd.f32 %v2131_v27, %v863_v42  ;;  %v881_v31 = vmul.f32 %v2133_v23, %v879_v28  ;;  %v2135_v25 = vpop.eup %2134  ;;  %vm886_vm4 = vweird.f32 %v2133_v23  ;;  %v892_v38 = vor.u32 1.1754944e-38, %v891_v0 }
 0x1bc   :  { %v849_v62 = vsel %vm848_vm0, %v2129_v45, %v845_v24  ;;  %v889_v45 = vand.u32 2147483647, %v879_v28  ;;  %vm887_vm6 = vmor %vm885_vm5, %vm886_vm4 }
 0x1bd   :  { %v854_v36 = vsel %vm851_vm2, %v853_v46, %v849_v62  ;;  %v868_v39 = vsel %vm867_vm1, %v2131_v27, %v864_v17  ;;  %v882_v29 = vsub.f32 1.0, %v881_v31 }
 0x1be   :  { %v873_v50 = vsel %vm870_vm3, %v872_v19, %v868_v39  ;;  %v896_v14 = vmul.f32 %v2135_v25, %v854_v36  ;;  %vm890_vm7 = vcmp.eq.f32.partialorder %v889_v45, 8.507059e+37 }
 0x1bf   :  { %v895_v55 = vmul.f32 %v873_v50, %v2604_v57  ;;  %v883_v11 = vmul.f32 %v2133_v23, %v882_v29 }
 0x1c1   :  { %v2647_v5 = vadd.f32 %v896_v14, %v895_v55  ;;  %v884_v30 = vadd.f32 %v2133_v23, %v883_v11 }
 0x1c3   :  { %2136 = vtanh.f32 %v2647_v5  ;;  %v888_v40 = vsel %vm887_vm6, %v2133_v23, %v884_v30 }
 0x1c4   :  { %v893_v12 = vsel %vm890_vm7, %v892_v38, %v888_v40 }
 0x1c9   :  { %v2137_v27 = vpop.eup %2136 }
 0x1ca   :  { %v899_v54 = vmul.f32 %v2137_v27, %v893_v12 }
 0x1cc   :  { %v900_v42 = vpack.c.bf16 %v899_v54, %v899_v54 }
 0x1ce   :  { %901 = vst [vmem:[#allocation2] sm:$0xf] %v900_v42 }
 0x1cf   :  { %2009 = vst [vmem:[%s2856_s6 + $0x4] sm:$0xf] %v900_v42 }
 0x1d5   :  { %v905_v57 = vld [vmem:[#allocation2] sm:$0xf] }
 0x1d6   :  { %922 = vmatmul.bf16.vlgmr.msrb.gmra.mxu0 %v905_v57  ;;  %935 = vmatmul.bf16.vlgmr.msrb.gmra.mxu1 %v905_v57 }
 0x1d7   :  { %948 = vmatmul.bf16.vlgmr.msrb.gmra.mxu2 %v905_v57  ;;  %961 = vmatmul.bf16.vlgmr.msrb.gmra.mxu3 %v905_v57 }
 0x1d8   :  { %1180 = vmatpush.bf16.msrb.mxu0 %v2344_v37  ;;  %1193 = vmatpush.bf16.msrb.mxu1 %v2346_v41 }
 0x1d9   :  { %1206 = vmatpush.bf16.msrb.mxu2 %v2348_v47  ;;  %1219 = vmatpush.bf16.msrb.mxu3 %v2351_v48 }
 0x1dc   :  { %1181 = vmatpush.bf16.msrb.mxu0 %v2353_v49  ;;  %1194 = vmatpush.bf16.msrb.mxu1 %v2356_v53 }
 0x1dd   :  { %1207 = vmatpush.bf16.msrb.mxu2 %v2359_v59  ;;  %1220 = vmatpush.bf16.msrb.mxu3 %v2363_v60 }
 0x1e0   :  { %1182 = vmatpush.bf16.msrb.mxu0 %v2365_v61  ;;  %1195 = vmatpush.bf16.msrb.mxu1 %v2368_v1 }
 0x1e1   :  { %1208 = vmatpush.bf16.msrb.mxu2 %v2371_v7  ;;  %1221 = vmatpush.bf16.msrb.mxu3 %v2375_v8 }
 0x1e4   :  { %1183 = vmatpush.bf16.msrb.mxu0 %v2377_v9  ;;  %1196 = vmatpush.bf16.msrb.mxu1 %v2380_v13 }
 0x1e5   :  { %1209 = vmatpush.bf16.msrb.mxu2 %v2386_v20  ;;  %1222 = vmatpush.bf16.msrb.mxu3 %v2390_v21 }
 0x1e8   :  { %1184 = vmatpush.bf16.msrb.mxu0 %v2392_v22  ;;  %1197 = vmatpush.bf16.msrb.mxu1 %v2395_v26 }
 0x1e9   :  { %1210 = vmatpush.bf16.msrb.mxu2 %v2398_v32  ;;  %1223 = vmatpush.bf16.msrb.mxu3 %v2402_v33 }
 0x1ec   :  { %1185 = vmatpush.bf16.msrb.mxu0 %v2404_v34  ;;  %1198 = vmatpush.bf16.msrb.mxu1 %v2407_v35 }
 0x1ed   :  { %1211 = vmatpush.bf16.msrb.mxu2 %v2419_v52  ;;  %1224 = vmatpush.bf16.msrb.mxu3 %v2412_v43 }
 0x1f0   :  { %1186 = vmatpush.bf16.msrb.mxu0 %v2414_v44  ;;  %1199 = vmatpush.bf16.msrb.mxu1 %v2417_v51 }
 0x1f1   :  { %1212 = vmatpush.bf16.msrb.mxu2 %v2428_v4  ;;  %1225 = vmatpush.bf16.msrb.mxu3 %v2424_v2 }
 0x1f4   :  { %1187 = vmatpush.bf16.msrb.mxu0 %v2426_v3  ;;  %1200 = vmatpush.bf16.msrb.mxu1 %v2431_v10 }
 0x1f5   :  { %1213 = vmatpush.bf16.msrb.mxu2 %v2437_v15  ;;  %1226 = vmatpush.bf16.msrb.mxu3 %v2441_v16 }
 0x253   :  { %v923_v28 = vpop.f32.mrf.mxu0  ;;  %v936_v18 = vpop.f32.mrf.mxu1 }
 0x254   :  { %v966_v23 = vadd.f32 %v923_v28, %v2537_v56  ;;  %v967_v24 = vadd.f32 %v936_v18, %v2539_v58 }
 0x256   :  { %v2010_v46 = vmul.f32 -1.442695, %v966_v23  ;;  %v2011_v17 = vmul.f32 -1.442695, %v967_v24 }
 0x258   :  { %2138 = vpow2.f32 %v2010_v46 }
 0x259   :  { %2140 = vpow2.f32 %v2011_v17 }
 0x25a   :  { %v949_v31 = vpop.f32.mrf.mxu2  ;;  %v962_v19 = vpop.f32.mrf.mxu3 }
 0x25b   :  { %v969_v62 = vadd.f32 %v962_v19, %v2545_v6  ;;  %v925_v25 = vpop.f32.mrf.mxu0  ;;  %v938_v36 = vpop.f32.mrf.mxu1  ;;  %v968_v45 = vadd.f32 %v949_v31, %v2542_v63 }
 0x25d   :  { %v2012_v39 = vmul.f32 -1.442695, %v969_v62 }
 0x25e   :  { %v2139_v29 = vpop.eup %2138 }
 0x25f   :  { %v2141_v50 = vpop.eup %2140  ;;  %v973_v14 = vadd.f32 1.0, %v2139_v29  ;;  %2142 = vpow2.f32 %v2012_v39 }
 0x260   :  { %v992_v55 = vadd.f32 1.0, %v2141_v50 }
 0x261   :  { %2144 = vrcp.f32 %v973_v14  ;;  %v985_v54 = vand.u32 2147483648, %v973_v14  ;;  %v983_v28 = vand.u32 2147483647, %v973_v14  ;;  %vm979_vm10 = vweird.f32 %v973_v14 }
 0x262   :  { %2146 = vrcp.f32 %v992_v55  ;;  %v951_v56 = vpop.f32.mrf.mxu2  ;;  %v964_v58 = vpop.f32.mrf.mxu3  ;;  %v1004_v42 = vand.u32 2147483648, %v992_v55  ;;  %v1002_v23 = vand.u32 2147483647, %v992_v55  ;;  %vm998_vm11 = vweird.f32 %v992_v55 }
 0x263   :  { %v986_v63 = vor.u32 1.1754944e-38, %v985_v54  ;;  %vm984_vm14 = vcmp.eq.f32.partialorder %v983_v28, 8.507059e+37 }
 0x264   :  { %v1005_v19 = vor.u32 1.1754944e-38, %v1004_v42  ;;  %vm1003_vm15 = vcmp.eq.f32.partialorder %v1002_v23, 8.507059e+37 }
 0x265   :  { %v2143_v11 = vpop.eup %2142 }
 0x266   :  { %v1012_v30 = vadd.f32 1.0, %v2143_v11 }
 0x267   :  { %v2145_v0 = vpop.eup %2144 }
 0x268   :  { %v2147_v40 = vpop.eup %2146  ;;  %v975_v38 = vmul.f32 %v2145_v0, %v973_v14  ;;  %2148 = vrcp.f32 %v1012_v30  ;;  %vm980_vm8 = vweird.f32 %v2145_v0  ;;  %vm1018_vm1 = vweird.f32 %v1012_v30 }
 0x269   :  { %v994_v6 = vmul.f32 %v2147_v40, %v992_v55  ;;  %2150 = vtanh.f32 %v968_v45  ;;  %vm999_vm9 = vweird.f32 %v2147_v40  ;;  %vm981_vm12 = vmor %vm979_vm10, %vm980_vm8  ;;  %v1024_v45 = vand.u32 2147483648, %v1012_v30 }
 0x26a   :  { %v976_v27 = vsub.f32 1.0, %v975_v38  ;;  %vm1000_vm13 = vmor %vm998_vm11, %vm999_vm9 }
 0x26b   :  { %v995_v12 = vsub.f32 1.0, %v994_v6  ;;  %v1025_v6 = vor.u32 1.1754944e-38, %v1024_v45 }
 0x26c   :  { %v977_v57 = vmul.f32 %v2145_v0, %v976_v27 }
 0x26d   :  { %v996_v18 = vmul.f32 %v2147_v40, %v995_v12 }
 0x26e   :  { %v2149_v24 = vpop.eup %2148  ;;  %v978_v46 = vadd.f32 %v2145_v0, %v977_v57  ;;  %v2879_v57 = vld [vmem:[#allocation11_spill] sm:$0xff] }
 0x26f   :  { %v997_v17 = vadd.f32 %v2147_v40, %v996_v18  ;;  %v1014_v31 = vmul.f32 %v2149_v24, %v1012_v30  ;;  %v2151_v25 = vpop.eup %2150  ;;  %vm1019_vm0 = vweird.f32 %v2149_v24  ;;  %v2880_v18 = vld [vmem:[#allocation12_spill] sm:$0xff] }
 0x270   :  { %v982_v62 = vsel %vm981_vm12, %v2145_v0, %v978_v46  ;;  %v1022_v0 = vand.u32 2147483647, %v1012_v30  ;;  %vm1020_vm2 = vmor %vm1018_vm1, %vm1019_vm0 }
 0x271   :  { %v987_v36 = vsel %vm984_vm14, %v986_v63, %v982_v62  ;;  %v1001_v39 = vsel %vm1000_vm13, %v2147_v40, %v997_v17  ;;  %v1015_v29 = vsub.f32 1.0, %v1014_v31  ;;  %v2881_v31 = vld [vmem:[#allocation14_spill] sm:$0xff] }
 0x272   :  { %v1006_v50 = vsel %vm1003_vm15, %v1005_v19, %v1001_v39  ;;  %v1029_v56 = vmul.f32 %v2151_v25, %v987_v36  ;;  %vm1023_vm3 = vcmp.eq.f32.partialorder %v1022_v0, 8.507059e+37 }
 0x273   :  { %v1028_v58 = vmul.f32 %v1006_v50, %v2647_v5  ;;  %v1016_v11 = vmul.f32 %v2149_v24, %v1015_v29 }
 0x275   :  { %v2690_v14 = vadd.f32 %v1029_v56, %v1028_v58  ;;  %v1017_v55 = vadd.f32 %v2149_v24, %v1016_v11 }
 0x277   :  { %2152 = vtanh.f32 %v2690_v14  ;;  %v1021_v38 = vsel %vm1020_vm2, %v2149_v24, %v1017_v55 }
 0x278   :  { %v1026_v27 = vsel %vm1023_vm3, %v1025_v6, %v1021_v38  ;;  %v2882_v38 = vld [vmem:[#allocation13_spill] sm:$0xff] }
 0x27d   :  { %v2153_v40 = vpop.eup %2152 }
 0x27e   :  { %v1032_v12 = vmul.f32 %v2153_v40, %v1026_v27 }
 0x280   :  { %v1033_v54 = vpack.c.bf16 %v1032_v12, %v1032_v12 }
 0x282   :  { %1034 = vst [vmem:[#allocation2] sm:$0xf] %v1033_v54 }
 0x283   :  { %2013 = vst [vmem:[%s2856_s6 + $0x8] sm:$0xf] %v1033_v54 }
 0x289   :  { %v1038_v5 = vld [vmem:[#allocation2] sm:$0xf] }
 0x28a   :  { %1055 = vmatmul.bf16.vlgmr.msra.gmra.mxu0 %v1038_v5  ;;  %1068 = vmatmul.bf16.vlgmr.msra.gmra.mxu1 %v1038_v5 }
 0x28b   :  { %1081 = vmatmul.bf16.vlgmr.msra.gmra.mxu2 %v1038_v5  ;;  %1094 = vmatmul.bf16.vlgmr.msra.gmra.mxu3 %v1038_v5 }
 0x28c   :  { %1313 = vmatpush.bf16.msra.mxu0 %v2344_v37  ;;  %1326 = vmatpush.bf16.msra.mxu1 %v2346_v41 }
 0x28d   :  { %1339 = vmatpush.bf16.msra.mxu2 %v2348_v47  ;;  %1352 = vmatpush.bf16.msra.mxu3 %v2351_v48 }
 0x290   :  { %1314 = vmatpush.bf16.msra.mxu0 %v2353_v49  ;;  %1327 = vmatpush.bf16.msra.mxu1 %v2356_v53 }
 0x291   :  { %1340 = vmatpush.bf16.msra.mxu2 %v2359_v59  ;;  %1353 = vmatpush.bf16.msra.mxu3 %v2363_v60 }
 0x294   :  { %1315 = vmatpush.bf16.msra.mxu0 %v2365_v61  ;;  %1328 = vmatpush.bf16.msra.mxu1 %v2368_v1 }
 0x295   :  { %1341 = vmatpush.bf16.msra.mxu2 %v2371_v7  ;;  %1354 = vmatpush.bf16.msra.mxu3 %v2375_v8 }
 0x298   :  { %1316 = vmatpush.bf16.msra.mxu0 %v2377_v9  ;;  %1329 = vmatpush.bf16.msra.mxu1 %v2380_v13 }
 0x299   :  { %1342 = vmatpush.bf16.msra.mxu2 %v2386_v20  ;;  %1355 = vmatpush.bf16.msra.mxu3 %v2390_v21 }
 0x29c   :  { %1317 = vmatpush.bf16.msra.mxu0 %v2392_v22  ;;  %1330 = vmatpush.bf16.msra.mxu1 %v2395_v26 }
 0x29d   :  { %1343 = vmatpush.bf16.msra.mxu2 %v2398_v32  ;;  %1356 = vmatpush.bf16.msra.mxu3 %v2402_v33 }
 0x2a0   :  { %1318 = vmatpush.bf16.msra.mxu0 %v2404_v34  ;;  %1331 = vmatpush.bf16.msra.mxu1 %v2407_v35 }
 0x2a1   :  { %1344 = vmatpush.bf16.msra.mxu2 %v2419_v52  ;;  %1357 = vmatpush.bf16.msra.mxu3 %v2412_v43 }
 0x2a4   :  { %1319 = vmatpush.bf16.msra.mxu0 %v2414_v44  ;;  %1332 = vmatpush.bf16.msra.mxu1 %v2417_v51 }
 0x2a5   :  { %1345 = vmatpush.bf16.msra.mxu2 %v2428_v4  ;;  %1358 = vmatpush.bf16.msra.mxu3 %v2424_v2 }
 0x2a8   :  { %1320 = vmatpush.bf16.msra.mxu0 %v2426_v3  ;;  %1333 = vmatpush.bf16.msra.mxu1 %v2431_v10 }
 0x2a9   :  { %1346 = vmatpush.bf16.msra.mxu2 %v2437_v15  ;;  %1359 = vmatpush.bf16.msra.mxu3 %v2441_v16 }
 0x307   :  { %v1056_v30 = vpop.f32.mrf.mxu0  ;;  %v1069_v42 = vpop.f32.mrf.mxu1 }
 0x308   :  { %v1099_v28 = vadd.f32 %v1056_v30, %v2879_v57  ;;  %v1100_v23 = vadd.f32 %v1069_v42, %v2880_v18 }
 0x30a   :  { %v2014_v24 = vmul.f32 -1.442695, %v1099_v28  ;;  %v2015_v46 = vmul.f32 -1.442695, %v1100_v23 }
 0x30c   :  { %2154 = vpow2.f32 %v2014_v24 }
 0x30d   :  { %2156 = vpow2.f32 %v2015_v46 }
 0x30e   :  { %v1082_v63 = vpop.f32.mrf.mxu2  ;;  %v1095_v17 = vpop.f32.mrf.mxu3 }
 0x30f   :  { %v1102_v19 = vadd.f32 %v1095_v17, %v2881_v31  ;;  %v1058_v62 = vpop.f32.mrf.mxu0  ;;  %v1071_v25 = vpop.f32.mrf.mxu1  ;;  %v1101_v6 = vadd.f32 %v1082_v63, %v2882_v38 }
 0x311   :  { %v2016_v36 = vmul.f32 -1.442695, %v1102_v19 }
 0x312   :  { %v2155_v39 = vpop.eup %2154 }
 0x313   :  { %v2157_v29 = vpop.eup %2156  ;;  %v1106_v50 = vadd.f32 1.0, %v2155_v39  ;;  %2158 = vpow2.f32 %v2016_v36 }
 0x314   :  { %v1125_v56 = vadd.f32 1.0, %v2157_v29 }
 0x315   :  { %2160 = vrcp.f32 %v1106_v50  ;;  %v1118_v30 = vand.u32 2147483648, %v1106_v50  ;;  %v1116_v28 = vand.u32 2147483647, %v1106_v50  ;;  %vm1112_vm6 = vweird.f32 %v1106_v50 }
 0x316   :  { %2162 = vrcp.f32 %v1125_v56  ;;  %v1084_v58 = vpop.f32.mrf.mxu2  ;;  %v1097_v11 = vpop.f32.mrf.mxu3  ;;  %v1137_v42 = vand.u32 2147483648, %v1125_v56  ;;  %v1135_v23 = vand.u32 2147483647, %v1125_v56  ;;  %vm1131_vm7 = vweird.f32 %v1125_v56 }
 0x317   :  { %v1119_v63 = vor.u32 1.1754944e-38, %v1118_v30  ;;  %vm1117_vm10 = vcmp.eq.f32.partialorder %v1116_v28, 8.507059e+37 }
 0x318   :  { %v1138_v19 = vor.u32 1.1754944e-38, %v1137_v42  ;;  %vm1136_vm11 = vcmp.eq.f32.partialorder %v1135_v23, 8.507059e+37 }
 0x319   :  { %v2159_v55 = vpop.eup %2158 }
 0x31a   :  { %v1145_v45 = vadd.f32 1.0, %v2159_v55 }
 0x31b   :  { %v2161_v0 = vpop.eup %2160 }
 0x31c   :  { %v2163_v40 = vpop.eup %2162  ;;  %v1108_v27 = vmul.f32 %v2161_v0, %v1106_v50  ;;  %2164 = vrcp.f32 %v1145_v45  ;;  %vm1113_vm4 = vweird.f32 %v2161_v0  ;;  %vm1151_vm13 = vweird.f32 %v1145_v45 }
 0x31d   :  { %v1127_v12 = vmul.f32 %v2163_v40, %v1125_v56  ;;  %2166 = vtanh.f32 %v1101_v6  ;;  %vm1132_vm5 = vweird.f32 %v2163_v40  ;;  %vm1114_vm8 = vmor %vm1112_vm6, %vm1113_vm4  ;;  %v1157_v6 = vand.u32 2147483648, %v1145_v45 }
 0x31e   :  { %v1109_v54 = vsub.f32 1.0, %v1108_v27  ;;  %vm1133_vm9 = vmor %vm1131_vm7, %vm1132_vm5 }
 0x31f   :  { %v1128_v5 = vsub.f32 1.0, %v1127_v12  ;;  %v1158_v12 = vor.u32 1.1754944e-38, %v1157_v6 }
 0x320   :  { %v1110_v57 = vmul.f32 %v2161_v0, %v1109_v54 }
 0x321   :  { %v1129_v18 = vmul.f32 %v2163_v40, %v1128_v5 }
 0x322   :  { %v2165_v24 = vpop.eup %2164  ;;  %v1111_v46 = vadd.f32 %v2161_v0, %v1110_v57  ;;  %v2883_v57 = vld [vmem:[#allocation15_spill] sm:$0xff] }
 0x323   :  { %v1130_v17 = vadd.f32 %v2163_v40, %v1129_v18  ;;  %v1147_v31 = vmul.f32 %v2165_v24, %v1145_v45  ;;  %v2167_v25 = vpop.eup %2166  ;;  %vm1152_vm12 = vweird.f32 %v2165_v24  ;;  %v2884_v18 = vld [vmem:[#allocation16_spill] sm:$0xff] }
 0x324   :  { %v1115_v62 = vsel %vm1114_vm8, %v2161_v0, %v1111_v46  ;;  %v1155_v0 = vand.u32 2147483647, %v1145_v45  ;;  %vm1153_vm14 = vmor %vm1151_vm13, %vm1152_vm12 }
 0x325   :  { %v1120_v36 = vsel %vm1117_vm10, %v1119_v63, %v1115_v62  ;;  %v1134_v39 = vsel %vm1133_vm9, %v2163_v40, %v1130_v17  ;;  %v1148_v29 = vsub.f32 1.0, %v1147_v31  ;;  %v2885_v31 = vld [vmem:[#allocation18_spill] sm:$0xff] }
 0x326   :  { %v1139_v58 = vsel %vm1136_vm11, %v1138_v19, %v1134_v39  ;;  %v1162_v11 = vmul.f32 %v2167_v25, %v1120_v36  ;;  %vm1156_vm15 = vcmp.eq.f32.partialorder %v1155_v0, 8.507059e+37 }
 0x327   :  { %v1161_v55 = vmul.f32 %v1139_v58, %v2690_v14  ;;  %v1149_v38 = vmul.f32 %v2165_v24, %v1148_v29 }
 0x329   :  { %v2733_v50 = vadd.f32 %v1162_v11, %v1161_v55  ;;  %v1150_v56 = vadd.f32 %v2165_v24, %v1149_v38 }
 0x32b   :  { %2168 = vtanh.f32 %v2733_v50  ;;  %v1154_v27 = vsel %vm1153_vm14, %v2165_v24, %v1150_v56 }
 0x32c   :  { %v1159_v54 = vsel %vm1156_vm15, %v1158_v12, %v1154_v27  ;;  %v2886_v27 = vld [vmem:[#allocation17_spill] sm:$0xff] }
 0x331   :  { %v2169_v40 = vpop.eup %2168 }
 0x332   :  { %v1165_v5 = vmul.f32 %v2169_v40, %v1159_v54 }
 0x334   :  { %v1166_v30 = vpack.c.bf16 %v1165_v5, %v1165_v5 }
 0x336   :  { %1167 = vst [vmem:[#allocation2] sm:$0xf] %v1166_v30 }
 0x337   :  { %2017 = vst [vmem:[%s2856_s6 + $0xc] sm:$0xf] %v1166_v30 }
 0x33d   :  { %v1171_v14 = vld [vmem:[#allocation2] sm:$0xf] }
 0x33e   :  { %1188 = vmatmul.bf16.vlgmr.msrb.gmra.mxu0 %v1171_v14  ;;  %1201 = vmatmul.bf16.vlgmr.msrb.gmra.mxu1 %v1171_v14 }
 0x33f   :  { %1214 = vmatmul.bf16.vlgmr.msrb.gmra.mxu2 %v1171_v14  ;;  %1227 = vmatmul.bf16.vlgmr.msrb.gmra.mxu3 %v1171_v14 }
 0x340   :  { %1446 = vmatpush.bf16.msrb.mxu0 %v2344_v37  ;;  %1459 = vmatpush.bf16.msrb.mxu1 %v2346_v41 }
 0x341   :  { %1472 = vmatpush.bf16.msrb.mxu2 %v2348_v47  ;;  %1485 = vmatpush.bf16.msrb.mxu3 %v2351_v48 }
 0x344   :  { %1447 = vmatpush.bf16.msrb.mxu0 %v2353_v49  ;;  %1460 = vmatpush.bf16.msrb.mxu1 %v2356_v53 }
 0x345   :  { %1473 = vmatpush.bf16.msrb.mxu2 %v2359_v59  ;;  %1486 = vmatpush.bf16.msrb.mxu3 %v2363_v60 }
 0x348   :  { %1448 = vmatpush.bf16.msrb.mxu0 %v2365_v61  ;;  %1461 = vmatpush.bf16.msrb.mxu1 %v2368_v1 }
 0x349   :  { %1474 = vmatpush.bf16.msrb.mxu2 %v2371_v7  ;;  %1487 = vmatpush.bf16.msrb.mxu3 %v2375_v8 }
 0x34c   :  { %1449 = vmatpush.bf16.msrb.mxu0 %v2377_v9  ;;  %1462 = vmatpush.bf16.msrb.mxu1 %v2380_v13 }
 0x34d   :  { %1475 = vmatpush.bf16.msrb.mxu2 %v2386_v20  ;;  %1488 = vmatpush.bf16.msrb.mxu3 %v2390_v21 }
 0x350   :  { %1450 = vmatpush.bf16.msrb.mxu0 %v2392_v22  ;;  %1463 = vmatpush.bf16.msrb.mxu1 %v2395_v26 }
 0x351   :  { %1476 = vmatpush.bf16.msrb.mxu2 %v2398_v32  ;;  %1489 = vmatpush.bf16.msrb.mxu3 %v2402_v33 }
 0x354   :  { %1451 = vmatpush.bf16.msrb.mxu0 %v2404_v34  ;;  %1464 = vmatpush.bf16.msrb.mxu1 %v2407_v35 }
 0x355   :  { %1477 = vmatpush.bf16.msrb.mxu2 %v2419_v52  ;;  %1490 = vmatpush.bf16.msrb.mxu3 %v2412_v43 }
 0x358   :  { %1452 = vmatpush.bf16.msrb.mxu0 %v2414_v44  ;;  %1465 = vmatpush.bf16.msrb.mxu1 %v2417_v51 }
 0x359   :  { %1478 = vmatpush.bf16.msrb.mxu2 %v2428_v4  ;;  %1491 = vmatpush.bf16.msrb.mxu3 %v2424_v2 }
 0x35c   :  { %1453 = vmatpush.bf16.msrb.mxu0 %v2426_v3  ;;  %1466 = vmatpush.bf16.msrb.mxu1 %v2431_v10 }
 0x35d   :  { %1479 = vmatpush.bf16.msrb.mxu2 %v2437_v15  ;;  %1492 = vmatpush.bf16.msrb.mxu3 %v2441_v16 }
 0x3bb   :  { %v1189_v45 = vpop.f32.mrf.mxu0  ;;  %v1202_v42 = vpop.f32.mrf.mxu1 }
 0x3bc   :  { %v1232_v28 = vadd.f32 %v1189_v45, %v2883_v57  ;;  %v1233_v23 = vadd.f32 %v1202_v42, %v2884_v18 }
 0x3be   :  { %v2018_v24 = vmul.f32 -1.442695, %v1232_v28  ;;  %v2019_v46 = vmul.f32 -1.442695, %v1233_v23 }
 0x3c0   :  { %2170 = vpow2.f32 %v2018_v24 }
 0x3c1   :  { %2172 = vpow2.f32 %v2019_v46 }
 0x3c2   :  { %v1215_v63 = vpop.f32.mrf.mxu2  ;;  %v1228_v17 = vpop.f32.mrf.mxu3 }
 0x3c3   :  { %v1235_v19 = vadd.f32 %v1228_v17, %v2885_v31  ;;  %v1191_v62 = vpop.f32.mrf.mxu0  ;;  %v1204_v25 = vpop.f32.mrf.mxu1  ;;  %v1234_v12 = vadd.f32 %v1215_v63, %v2886_v27 }
 0x3c5   :  { %v2020_v36 = vmul.f32 -1.442695, %v1235_v19 }
 0x3c6   :  { %v2171_v39 = vpop.eup %2170 }
 0x3c7   :  { %v2173_v29 = vpop.eup %2172  ;;  %v1239_v58 = vadd.f32 1.0, %v2171_v39  ;;  %2174 = vpow2.f32 %v2020_v36 }
 0x3c8   :  { %v1258_v11 = vadd.f32 1.0, %v2173_v29 }
 0x3c9   :  { %2176 = vrcp.f32 %v1239_v58  ;;  %v1251_v45 = vand.u32 2147483648, %v1239_v58  ;;  %v1249_v28 = vand.u32 2147483647, %v1239_v58  ;;  %vm1245_vm2 = vweird.f32 %v1239_v58 }
 0x3ca   :  { %2178 = vrcp.f32 %v1258_v11  ;;  %v1217_v55 = vpop.f32.mrf.mxu2  ;;  %v1230_v38 = vpop.f32.mrf.mxu3  ;;  %v1270_v42 = vand.u32 2147483648, %v1258_v11  ;;  %v1268_v23 = vand.u32 2147483647, %v1258_v11  ;;  %vm1264_vm3 = vweird.f32 %v1258_v11 }
 0x3cb   :  { %v1252_v63 = vor.u32 1.1754944e-38, %v1251_v45  ;;  %vm1250_vm6 = vcmp.eq.f32.partialorder %v1249_v28, 8.507059e+37 }
 0x3cc   :  { %v1271_v19 = vor.u32 1.1754944e-38, %v1270_v42  ;;  %vm1269_vm7 = vcmp.eq.f32.partialorder %v1268_v23, 8.507059e+37 }
 0x3cd   :  { %v2175_v56 = vpop.eup %2174 }
 0x3ce   :  { %v1278_v6 = vadd.f32 1.0, %v2175_v56 }
 0x3cf   :  { %v2177_v0 = vpop.eup %2176 }
 0x3d0   :  { %v2179_v40 = vpop.eup %2178  ;;  %v1241_v54 = vmul.f32 %v2177_v0, %v1239_v58  ;;  %2180 = vrcp.f32 %v1278_v6  ;;  %vm1246_vm0 = vweird.f32 %v2177_v0  ;;  %vm1284_vm9 = vweird.f32 %v1278_v6 }
 0x3d1   :  { %v1260_v5 = vmul.f32 %v2179_v40, %v1258_v11  ;;  %2182 = vtanh.f32 %v1234_v12  ;;  %vm1265_vm1 = vweird.f32 %v2179_v40  ;;  %vm1247_vm4 = vmor %vm1245_vm2, %vm1246_vm0  ;;  %v1290_v12 = vand.u32 2147483648, %v1278_v6 }
 0x3d2   :  { %v1242_v30 = vsub.f32 1.0, %v1241_v54  ;;  %vm1266_vm5 = vmor %vm1264_vm3, %vm1265_vm1 }
 0x3d3   :  { %v1261_v14 = vsub.f32 1.0, %v1260_v5  ;;  %v1291_v5 = vor.u32 1.1754944e-38, %v1290_v12 }
 0x3d4   :  { %v1243_v57 = vmul.f32 %v2177_v0, %v1242_v30 }
 0x3d5   :  { %v1262_v18 = vmul.f32 %v2179_v40, %v1261_v14 }
 0x3d6   :  { %v2181_v24 = vpop.eup %2180  ;;  %v1244_v46 = vadd.f32 %v2177_v0, %v1243_v57 }
 0x3d7   :  { %v1263_v17 = vadd.f32 %v2179_v40, %v1262_v18  ;;  %v1280_v31 = vmul.f32 %v2181_v24, %v1278_v6  ;;  %v2183_v25 = vpop.eup %2182  ;;  %vm1285_vm8 = vweird.f32 %v2181_v24 }
 0x3d8   :  { %v1248_v62 = vsel %vm1247_vm4, %v2177_v0, %v1244_v46  ;;  %v1288_v0 = vand.u32 2147483647, %v1278_v6  ;;  %vm1286_vm10 = vmor %vm1284_vm9, %vm1285_vm8 }
 0x3d9   :  { %v1253_v36 = vsel %vm1250_vm6, %v1252_v63, %v1248_v62  ;;  %v1267_v39 = vsel %vm1266_vm5, %v2179_v40, %v1263_v17  ;;  %v1281_v29 = vsub.f32 1.0, %v1280_v31 }
 0x3da   :  { %v1272_v55 = vsel %vm1269_vm7, %v1271_v19, %v1267_v39  ;;  %v1295_v38 = vmul.f32 %v2183_v25, %v1253_v36  ;;  %vm1289_vm11 = vcmp.eq.f32.partialorder %v1288_v0, 8.507059e+37 }
 0x3db   :  { %v1294_v56 = vmul.f32 %v1272_v55, %v2733_v50  ;;  %v1282_v27 = vmul.f32 %v2181_v24, %v1281_v29 }
 0x3dd   :  { %v2776_v58 = vadd.f32 %v1295_v38, %v1294_v56  ;;  %v1283_v11 = vadd.f32 %v2181_v24, %v1282_v27 }
 0x3df   :  { %2184 = vtanh.f32 %v2776_v58  ;;  %v1287_v54 = vsel %vm1286_vm10, %v2181_v24, %v1283_v11 }
 0x3e0   :  { %v1292_v30 = vsel %vm1289_vm11, %v1291_v5, %v1287_v54 }
 0x3e5   :  { %v2185_v40 = vpop.eup %2184 }
 0x3e6   :  { %v1298_v14 = vmul.f32 %v2185_v40, %v1292_v30 }
 0x3e8   :  { %v1299_v45 = vpack.c.bf16 %v1298_v14, %v1298_v14 }
 0x3ea   :  { %2021 = vst [vmem:[%s2856_s6 + $0x10] sm:$0xf] %v1299_v45 }
 0x3eb   :  { %1300 = vst [vmem:[#allocation2] sm:$0xf] %v1299_v45 }
 0x3f2   :  { %v1304_v50 = vld [vmem:[#allocation2] sm:$0xf] }
 0x3f3   :  { %1321 = vmatmul.bf16.vlgmr.msra.gmra.mxu0 %v1304_v50  ;;  %1334 = vmatmul.bf16.vlgmr.msra.gmra.mxu1 %v1304_v50 }
 0x3f4   :  { %1347 = vmatmul.bf16.vlgmr.msra.gmra.mxu2 %v1304_v50  ;;  %1360 = vmatmul.bf16.vlgmr.msra.gmra.mxu3 %v1304_v50 }
 0x3f5   :  { %1579 = vmatpush.bf16.msra.mxu0 %v2344_v37  ;;  %1592 = vmatpush.bf16.msra.mxu1 %v2346_v41 }
 0x3f6   :  { %1605 = vmatpush.bf16.msra.mxu2 %v2348_v47  ;;  %1618 = vmatpush.bf16.msra.mxu3 %v2351_v48  ;;  %v2887_v47 = vld [vmem:[#allocation19_spill] sm:$0xff] }
 0x3f9   :  { %1580 = vmatpush.bf16.msra.mxu0 %v2353_v49  ;;  %1593 = vmatpush.bf16.msra.mxu1 %v2356_v53  ;;  %v2888_v49 = vld [vmem:[#allocation20_spill] sm:$0xff] }
 0x3fa   :  { %1606 = vmatpush.bf16.msra.mxu2 %v2359_v59  ;;  %1619 = vmatpush.bf16.msra.mxu3 %v2363_v60 }
 0x3fd   :  { %1581 = vmatpush.bf16.msra.mxu0 %v2365_v61  ;;  %1594 = vmatpush.bf16.msra.mxu1 %v2368_v1 }
 0x3fe   :  { %1607 = vmatpush.bf16.msra.mxu2 %v2371_v7  ;;  %1620 = vmatpush.bf16.msra.mxu3 %v2375_v8  ;;  %v2889_v7 = vld [vmem:[#allocation22_spill] sm:$0xff] }
 0x401   :  { %1582 = vmatpush.bf16.msra.mxu0 %v2377_v9  ;;  %1595 = vmatpush.bf16.msra.mxu1 %v2380_v13 }
 0x402   :  { %1608 = vmatpush.bf16.msra.mxu2 %v2386_v20  ;;  %1621 = vmatpush.bf16.msra.mxu3 %v2390_v21 }
 0x405   :  { %1583 = vmatpush.bf16.msra.mxu0 %v2392_v22  ;;  %1596 = vmatpush.bf16.msra.mxu1 %v2395_v26 }
 0x406   :  { %1609 = vmatpush.bf16.msra.mxu2 %v2398_v32  ;;  %1622 = vmatpush.bf16.msra.mxu3 %v2402_v33 }
 0x409   :  { %1584 = vmatpush.bf16.msra.mxu0 %v2404_v34  ;;  %1597 = vmatpush.bf16.msra.mxu1 %v2407_v35 }
 0x40a   :  { %1610 = vmatpush.bf16.msra.mxu2 %v2419_v52  ;;  %1623 = vmatpush.bf16.msra.mxu3 %v2412_v43 }
 0x40d   :  { %1585 = vmatpush.bf16.msra.mxu0 %v2414_v44  ;;  %1598 = vmatpush.bf16.msra.mxu1 %v2417_v51  ;;  %v2890_v51 = vld [vmem:[#allocation21_spill] sm:$0xff] }
 0x40e   :  { %1611 = vmatpush.bf16.msra.mxu2 %v2428_v4  ;;  %1624 = vmatpush.bf16.msra.mxu3 %v2424_v2 }
 0x411   :  { %1586 = vmatpush.bf16.msra.mxu0 %v2426_v3  ;;  %1599 = vmatpush.bf16.msra.mxu1 %v2431_v10 }
 0x412   :  { %1612 = vmatpush.bf16.msra.mxu2 %v2437_v15  ;;  %1625 = vmatpush.bf16.msra.mxu3 %v2441_v16 }
 0x470   :  { %v1322_v37 = vpop.f32.mrf.mxu0  ;;  %v1335_v41 = vpop.f32.mrf.mxu1 }
 0x471   :  { %v1365_v48 = vadd.f32 %v1322_v37, %v2887_v47  ;;  %v1366_v53 = vadd.f32 %v1335_v41, %v2888_v49  ;;  %v2891_v41 = vld [vmem:[#allocation23_spill] sm:$0xff] }
 0x473   :  { %v2022_v59 = vmul.f32 -1.442695, %v1365_v48  ;;  %v2023_v60 = vmul.f32 -1.442695, %v1366_v53  ;;  %v2892_v48 = vld [vmem:[#allocation24_spill] sm:$0xff] }
 0x475   :  { %2186 = vpow2.f32 %v2022_v59 }
 0x476   :  { %2188 = vpow2.f32 %v2023_v60 }
 0x477   :  { %v1348_v61 = vpop.f32.mrf.mxu2  ;;  %v1361_v1 = vpop.f32.mrf.mxu3 }
 0x478   :  { %v1368_v8 = vadd.f32 %v1361_v1, %v2889_v7  ;;  %v1324_v9 = vpop.f32.mrf.mxu0  ;;  %v1337_v13 = vpop.f32.mrf.mxu1  ;;  %v1367_v52 = vadd.f32 %v1348_v61, %v2890_v51  ;;  %v2893_v1 = vld [vmem:[#allocation26_spill] sm:$0xff] }
 0x47a   :  { %v2024_v20 = vmul.f32 -1.442695, %v1368_v8 }
 0x47b   :  { %v2187_v21 = vpop.eup %2186 }
 0x47c   :  { %v2189_v22 = vpop.eup %2188  ;;  %v1372_v26 = vadd.f32 1.0, %v2187_v21  ;;  %2190 = vpow2.f32 %v2024_v20 }
 0x47d   :  { %v1391_v32 = vadd.f32 1.0, %v2189_v22 }
 0x47e   :  { %2192 = vrcp.f32 %v1372_v26  ;;  %v1384_v16 = vand.u32 2147483648, %v1372_v26  ;;  %v1382_v57 = vand.u32 2147483647, %v1372_v26  ;;  %vm1378_vm14 = vweird.f32 %v1372_v26 }
 0x47f   :  { %2194 = vrcp.f32 %v1391_v32  ;;  %v1350_v33 = vpop.f32.mrf.mxu2  ;;  %v1363_v34 = vpop.f32.mrf.mxu3  ;;  %v1403_v6 = vand.u32 2147483648, %v1391_v32  ;;  %v1401_v18 = vand.u32 2147483647, %v1391_v32  ;;  %vm1397_vm15 = vweird.f32 %v1391_v32 }
 0x480   :  { %v1385_v46 = vor.u32 1.1754944e-38, %v1384_v16  ;;  %vm1383_vm2 = vcmp.eq.f32.partialorder %v1382_v57, 8.507059e+37 }
 0x481   :  { %v1404_v31 = vor.u32 1.1754944e-38, %v1403_v6  ;;  %vm1402_vm3 = vcmp.eq.f32.partialorder %v1401_v18, 8.507059e+37 }
 0x482   :  { %v2191_v35 = vpop.eup %2190 }
 0x483   :  { %v1411_v43 = vadd.f32 1.0, %v2191_v35 }
 0x484   :  { %v2193_v44 = vpop.eup %2192 }
 0x485   :  { %v2195_v2 = vpop.eup %2194  ;;  %v1374_v3 = vmul.f32 %v2193_v44, %v1372_v26  ;;  %2196 = vrcp.f32 %v1411_v43  ;;  %vm1379_vm12 = vweird.f32 %v2193_v44  ;;  %v1423_v12 = vand.u32 2147483648, %v1411_v43 }
 0x486   :  { %v1393_v4 = vmul.f32 %v2195_v2, %v1391_v32  ;;  %2198 = vtanh.f32 %v1367_v52  ;;  %vm1398_vm13 = vweird.f32 %v2195_v2  ;;  %vm1380_vm0 = vmor %vm1378_vm14, %vm1379_vm12  ;;  %vm1417_vm5 = vweird.f32 %v1411_v43 }
 0x487   :  { %v1375_v10 = vsub.f32 1.0, %v1374_v3  ;;  %vm1399_vm1 = vmor %vm1397_vm15, %vm1398_vm13  ;;  %v1421_v0 = vand.u32 2147483647, %v1411_v43  ;;  %v1424_v5 = vor.u32 1.1754944e-38, %v1423_v12 }
 0x488   :  { %v1394_v15 = vsub.f32 1.0, %v1393_v4 }
 0x489   :  { %v1376_v42 = vmul.f32 %v2193_v44, %v1375_v10  ;;  %vm1422_vm7 = vcmp.eq.f32.partialorder %v1421_v0, 8.507059e+37 }
 0x48a   :  { %v1395_v28 = vmul.f32 %v2195_v2, %v1394_v15 }
 0x48b   :  { %v2197_v23 = vpop.eup %2196  ;;  %v1377_v24 = vadd.f32 %v2193_v44, %v1376_v42 }
 0x48c   :  { %v1396_v63 = vadd.f32 %v2195_v2, %v1395_v28  ;;  %v1413_v17 = vmul.f32 %v2197_v23, %v1411_v43  ;;  %v2199_v62 = vpop.eup %2198  ;;  %vm1418_vm4 = vweird.f32 %v2197_v23 }
 0x48d   :  { %v1381_v19 = vsel %vm1380_vm0, %v2193_v44, %v1377_v24  ;;  %vm1419_vm6 = vmor %vm1417_vm5, %vm1418_vm4  ;;  %v2894_v44 = vld [vmem:[#allocation25_spill] sm:$0xff] }
 0x48e   :  { %v1386_v25 = vsel %vm1383_vm2, %v1385_v46, %v1381_v19  ;;  %v1400_v36 = vsel %vm1399_vm1, %v2195_v2, %v1396_v63  ;;  %v1414_v39 = vsub.f32 1.0, %v1413_v17 }
 0x48f   :  { %v1405_v29 = vsel %vm1402_vm3, %v1404_v31, %v1400_v36  ;;  %v1428_v55 = vmul.f32 %v2199_v62, %v1386_v25 }
 0x490   :  { %v1427_v38 = vmul.f32 %v1405_v29, %v2776_v58  ;;  %v1415_v56 = vmul.f32 %v2197_v23, %v1414_v39 }
 0x492   :  { %v2819_v27 = vadd.f32 %v1428_v55, %v1427_v38  ;;  %v1416_v11 = vadd.f32 %v2197_v23, %v1415_v56 }
 0x494   :  { %2200 = vtanh.f32 %v2819_v27  ;;  %v1420_v54 = vsel %vm1419_vm6, %v2197_v23, %v1416_v11 }
 0x495   :  { %v1425_v30 = vsel %vm1422_vm7, %v1424_v5, %v1420_v54 }
 0x49a   :  { %v2201_v40 = vpop.eup %2200 }
 0x49b   :  { %v1431_v14 = vmul.f32 %v2201_v40, %v1425_v30 }
 0x49d   :  { %v1432_v45 = vpack.c.bf16 %v1431_v14, %v1431_v14 }
 0x49f   :  { %2025 = vst [vmem:[%s2856_s6 + $0x14] sm:$0xf] %v1432_v45 }
 0x4a0   :  { %1433 = vst [vmem:[#allocation2] sm:$0xf] %v1432_v45 }
 0x4a7   :  { %v1437_v58 = vld [vmem:[#allocation2] sm:$0xf] }
 0x4a8   :  { %1454 = vmatmul.bf16.vlgmr.msrb.gmra.mxu0 %v1437_v58  ;;  %1467 = vmatmul.bf16.vlgmr.msrb.gmra.mxu1 %v1437_v58 }
 0x4a9   :  { %1480 = vmatmul.bf16.vlgmr.msrb.gmra.mxu2 %v1437_v58  ;;  %1493 = vmatmul.bf16.vlgmr.msrb.gmra.mxu3 %v1437_v58 }
 0x525   :  { %v1455_v50 = vpop.f32.mrf.mxu0  ;;  %v1468_v37 = vpop.f32.mrf.mxu1 }
 0x526   :  { %v1498_v47 = vadd.f32 %v1455_v50, %v2891_v41  ;;  %v1499_v49 = vadd.f32 %v1468_v37, %v2892_v48  ;;  %v2895_v37 = vld [vmem:[#allocation27_spill] sm:$0xff] }
 0x528   :  { %v2026_v53 = vmul.f32 -1.442695, %v1498_v47  ;;  %v2027_v59 = vmul.f32 -1.442695, %v1499_v49  ;;  %v2896_v47 = vld [vmem:[#allocation28_spill] sm:$0xff] }
 0x52a   :  { %2202 = vpow2.f32 %v2026_v53 }
 0x52b   :  { %2204 = vpow2.f32 %v2027_v59 }
 0x52c   :  { %v1481_v60 = vpop.f32.mrf.mxu2  ;;  %v1494_v61 = vpop.f32.mrf.mxu3 }
 0x52d   :  { %v1501_v7 = vadd.f32 %v1494_v61, %v2893_v1  ;;  %v1457_v8 = vpop.f32.mrf.mxu0  ;;  %v1470_v9 = vpop.f32.mrf.mxu1  ;;  %v1500_v51 = vadd.f32 %v1481_v60, %v2894_v44  ;;  %v2897_v61 = vld [vmem:[#allocation30_spill] sm:$0xff] }
 0x52f   :  { %v2028_v13 = vmul.f32 -1.442695, %v1501_v7 }
 0x530   :  { %v2203_v20 = vpop.eup %2202 }
 0x531   :  { %v2205_v21 = vpop.eup %2204  ;;  %v1505_v22 = vadd.f32 1.0, %v2203_v20  ;;  %2206 = vpow2.f32 %v2028_v13 }
 0x532   :  { %v1524_v26 = vadd.f32 1.0, %v2205_v21 }
 0x533   :  { %2208 = vrcp.f32 %v1505_v22  ;;  %v1517_v15 = vand.u32 2147483648, %v1505_v22  ;;  %v1515_v42 = vand.u32 2147483647, %v1505_v22  ;;  %vm1511_vm10 = vweird.f32 %v1505_v22 }
 0x534   :  { %2210 = vrcp.f32 %v1524_v26  ;;  %v1483_v32 = vpop.f32.mrf.mxu2  ;;  %v1496_v33 = vpop.f32.mrf.mxu3  ;;  %v1536_v16 = vand.u32 2147483648, %v1524_v26  ;;  %v1534_v28 = vand.u32 2147483647, %v1524_v26  ;;  %vm1530_vm11 = vweird.f32 %v1524_v26 }
 0x535   :  { %v1518_v24 = vor.u32 1.1754944e-38, %v1517_v15  ;;  %vm1516_vm14 = vcmp.eq.f32.partialorder %v1515_v42, 8.507059e+37 }
 0x536   :  { %v1537_v17 = vor.u32 1.1754944e-38, %v1536_v16  ;;  %vm1535_vm15 = vcmp.eq.f32.partialorder %v1534_v28, 8.507059e+37 }
 0x537   :  { %v2207_v34 = vpop.eup %2206 }
 0x538   :  { %v1544_v35 = vadd.f32 1.0, %v2207_v34 }
 0x539   :  { %v2209_v43 = vpop.eup %2208 }
 0x53a   :  { %v2211_v52 = vpop.eup %2210  ;;  %v1507_v2 = vmul.f32 %v2209_v43, %v1505_v22  ;;  %2212 = vrcp.f32 %v1544_v35  ;;  %vm1512_vm8 = vweird.f32 %v2209_v43  ;;  %v1556_v12 = vand.u32 2147483648, %v1544_v35 }
 0x53b   :  { %v1526_v3 = vmul.f32 %v2211_v52, %v1524_v26  ;;  %2214 = vtanh.f32 %v1500_v51  ;;  %vm1531_vm9 = vweird.f32 %v2211_v52  ;;  %vm1513_vm12 = vmor %vm1511_vm10, %vm1512_vm8  ;;  %vm1550_vm1 = vweird.f32 %v1544_v35 }
 0x53c   :  { %v1508_v4 = vsub.f32 1.0, %v1507_v2  ;;  %vm1532_vm13 = vmor %vm1530_vm11, %vm1531_vm9  ;;  %v1554_v0 = vand.u32 2147483647, %v1544_v35  ;;  %v1557_v5 = vor.u32 1.1754944e-38, %v1556_v12 }
 0x53d   :  { %v1527_v10 = vsub.f32 1.0, %v1526_v3 }
 0x53e   :  { %v1509_v6 = vmul.f32 %v2209_v43, %v1508_v4  ;;  %vm1555_vm3 = vcmp.eq.f32.partialorder %v1554_v0, 8.507059e+37 }
 0x53f   :  { %v1528_v57 = vmul.f32 %v2211_v52, %v1527_v10 }
 0x540   :  { %v2213_v18 = vpop.eup %2212  ;;  %v1510_v23 = vadd.f32 %v2209_v43, %v1509_v6 }
 0x541   :  { %v1529_v46 = vadd.f32 %v2211_v52, %v1528_v57  ;;  %v1546_v63 = vmul.f32 %v2213_v18, %v1544_v35  ;;  %v2215_v19 = vpop.eup %2214  ;;  %vm1551_vm0 = vweird.f32 %v2213_v18 }
 0x542   :  { %v1514_v31 = vsel %vm1513_vm12, %v2209_v43, %v1510_v23  ;;  %vm1552_vm2 = vmor %vm1550_vm1, %vm1551_vm0  ;;  %v2898_v43 = vld [vmem:[#allocation29_spill] sm:$0xff] }
 0x543   :  { %v1519_v62 = vsel %vm1516_vm14, %v1518_v24, %v1514_v31  ;;  %v1533_v25 = vsel %vm1532_vm13, %v2211_v52, %v1529_v46  ;;  %v1547_v36 = vsub.f32 1.0, %v1546_v63 }
 0x544   :  { %v1538_v39 = vsel %vm1535_vm15, %v1537_v17, %v1533_v25  ;;  %v1561_v29 = vmul.f32 %v2215_v19, %v1519_v62 }
 0x545   :  { %v1560_v55 = vmul.f32 %v1538_v39, %v2819_v27  ;;  %v1548_v38 = vmul.f32 %v2213_v18, %v1547_v36 }
 0x547   :  { %v2830_v56 = vadd.f32 %v1561_v29, %v1560_v55  ;;  %v1549_v11 = vadd.f32 %v2213_v18, %v1548_v38 }
 0x549   :  { %2216 = vtanh.f32 %v2830_v56  ;;  %v1553_v54 = vsel %vm1552_vm2, %v2213_v18, %v1549_v11 }
 0x54a   :  { %v1558_v30 = vsel %vm1555_vm3, %v1557_v5, %v1553_v54 }
 0x54f   :  { %v2217_v40 = vpop.eup %2216 }
 0x550   :  { %v1564_v14 = vmul.f32 %v2217_v40, %v1558_v30 }
 0x552   :  { %v1565_v45 = vpack.c.bf16 %v1564_v14, %v1564_v14 }
 0x554   :  { %2029 = vst [vmem:[%s2856_s6 + $0x18] sm:$0xf] %v1565_v45 }
 0x555   :  { %1566 = vst [vmem:[#allocation2] sm:$0xf] %v1565_v45 }
 0x55c   :  { %v1570_v27 = vld [vmem:[#allocation2] sm:$0xf] }
 0x55d   :  { %1587 = vmatmul.bf16.vlgmr.msra.gmra.mxu0 %v1570_v27  ;;  %1600 = vmatmul.bf16.vlgmr.msra.gmra.mxu1 %v1570_v27 }
 0x55e   :  { %1613 = vmatmul.bf16.vlgmr.msra.gmra.mxu2 %v1570_v27  ;;  %1626 = vmatmul.bf16.vlgmr.msra.gmra.mxu3 %v1570_v27 }
 0x5da   :  { %v1588_v58 = vpop.f32.mrf.mxu0  ;;  %v1601_v50 = vpop.f32.mrf.mxu1 }
 0x5db   :  { %v1631_v41 = vadd.f32 %v1588_v58, %v2895_v37  ;;  %v1632_v48 = vadd.f32 %v1601_v50, %v2896_v47 }
 0x5dd   :  { %v2030_v49 = vmul.f32 -1.442695, %v1631_v41  ;;  %v2031_v53 = vmul.f32 -1.442695, %v1632_v48 }
 0x5df   :  { %2218 = vpow2.f32 %v2030_v49 }
 0x5e0   :  { %2220 = vpow2.f32 %v2031_v53 }
 0x5e1   :  { %v1614_v59 = vpop.f32.mrf.mxu2  ;;  %v1627_v60 = vpop.f32.mrf.mxu3 }
 0x5e2   :  { %v1634_v1 = vadd.f32 %v1627_v60, %v2897_v61  ;;  %v1590_v7 = vpop.f32.mrf.mxu0  ;;  %v1603_v8 = vpop.f32.mrf.mxu1  ;;  %v1633_v44 = vadd.f32 %v1614_v59, %v2898_v43 }
 0x5e4   :  { %v2032_v9 = vmul.f32 -1.442695, %v1634_v1 }
 0x5e5   :  { %v2219_v13 = vpop.eup %2218 }
 0x5e6   :  { %v2221_v20 = vpop.eup %2220  ;;  %v1638_v21 = vadd.f32 1.0, %v2219_v13  ;;  %2222 = vpow2.f32 %v2032_v9 }
 0x5e7   :  { %v1657_v22 = vadd.f32 1.0, %v2221_v20 }
 0x5e8   :  { %2224 = vrcp.f32 %v1638_v21  ;;  %v1650_v10 = vand.u32 2147483648, %v1638_v21  ;;  %v1648_v6 = vand.u32 2147483647, %v1638_v21  ;;  %vm1644_vm6 = vweird.f32 %v1638_v21 }
 0x5e9   :  { %2226 = vrcp.f32 %v1657_v22  ;;  %v1616_v26 = vpop.f32.mrf.mxu2  ;;  %v1629_v32 = vpop.f32.mrf.mxu3  ;;  %v1669_v15 = vand.u32 2147483648, %v1657_v22  ;;  %v1667_v57 = vand.u32 2147483647, %v1657_v22  ;;  %vm1663_vm7 = vweird.f32 %v1657_v22 }
 0x5ea   :  { %v1651_v23 = vor.u32 1.1754944e-38, %v1650_v10  ;;  %vm1649_vm10 = vcmp.eq.f32.partialorder %v1648_v6, 8.507059e+37 }
 0x5eb   :  { %v1670_v63 = vor.u32 1.1754944e-38, %v1669_v15  ;;  %vm1668_vm11 = vcmp.eq.f32.partialorder %v1667_v57, 8.507059e+37 }
 0x5ec   :  { %v2223_v33 = vpop.eup %2222 }
 0x5ed   :  { %v1677_v34 = vadd.f32 1.0, %v2223_v33 }
 0x5ee   :  { %v2225_v35 = vpop.eup %2224 }
 0x5ef   :  { %v2227_v51 = vpop.eup %2226  ;;  %v1640_v52 = vmul.f32 %v2225_v35, %v1638_v21  ;;  %2228 = vrcp.f32 %v1677_v34  ;;  %vm1645_vm4 = vweird.f32 %v2225_v35  ;;  %v1689_v12 = vand.u32 2147483648, %v1677_v34 }
 0x5f0   :  { %v1659_v2 = vmul.f32 %v2227_v51, %v1657_v22  ;;  %2230 = vtanh.f32 %v1633_v44  ;;  %vm1664_vm5 = vweird.f32 %v2227_v51  ;;  %vm1646_vm8 = vmor %vm1644_vm6, %vm1645_vm4  ;;  %vm1683_vm13 = vweird.f32 %v1677_v34 }
 0x5f1   :  { %v1641_v3 = vsub.f32 1.0, %v1640_v52  ;;  %vm1665_vm9 = vmor %vm1663_vm7, %vm1664_vm5  ;;  %v1687_v0 = vand.u32 2147483647, %v1677_v34  ;;  %v1690_v5 = vor.u32 1.1754944e-38, %v1689_v12 }
 0x5f2   :  { %v1660_v4 = vsub.f32 1.0, %v1659_v2 }
 0x5f3   :  { %v1642_v16 = vmul.f32 %v2225_v35, %v1641_v3  ;;  %vm1688_vm15 = vcmp.eq.f32.partialorder %v1687_v0, 8.507059e+37 }
 0x5f4   :  { %v1661_v42 = vmul.f32 %v2227_v51, %v1660_v4 }
 0x5f5   :  { %v2229_v28 = vpop.eup %2228  ;;  %v1643_v18 = vadd.f32 %v2225_v35, %v1642_v16 }
 0x5f6   :  { %v1662_v24 = vadd.f32 %v2227_v51, %v1661_v42  ;;  %v1679_v46 = vmul.f32 %v2229_v28, %v1677_v34  ;;  %v2231_v31 = vpop.eup %2230  ;;  %vm1684_vm12 = vweird.f32 %v2229_v28 }
 0x5f7   :  { %v1647_v17 = vsel %vm1646_vm8, %v2225_v35, %v1643_v18  ;;  %vm1685_vm14 = vmor %vm1683_vm13, %vm1684_vm12 }
 0x5f8   :  { %v1652_v19 = vsel %vm1649_vm10, %v1651_v23, %v1647_v17  ;;  %v1666_v62 = vsel %vm1665_vm9, %v2227_v51, %v1662_v24  ;;  %v1680_v25 = vsub.f32 1.0, %v1679_v46 }
 0x5f9   :  { %v1671_v36 = vsel %vm1668_vm11, %v1670_v63, %v1666_v62  ;;  %v1694_v39 = vmul.f32 %v2231_v31, %v1652_v19 }
 0x5fa   :  { %v1693_v29 = vmul.f32 %v1671_v36, %v2830_v56  ;;  %v1681_v55 = vmul.f32 %v2229_v28, %v1680_v25 }
 0x5fc   :  { %v1695_v38 = vadd.f32 %v1694_v39, %v1693_v29  ;;  %v1682_v11 = vadd.f32 %v2229_v28, %v1681_v55 }
 0x5fe   :  { %2232 = vtanh.f32 %v1695_v38  ;;  %1709 = vst [vmem:[%s2858_s8] sm:$0xff] %v1695_v38  ;;  %v1686_v54 = vsel %vm1685_vm14, %v2229_v28, %v1682_v11 }
 0x5ff   :  { %v1691_v30 = vsel %vm1688_vm15, %v1690_v5, %v1686_v54 }
 0x604   :  { %v2233_v40 = vpop.eup %2232 }
 0x605   :  { %v1697_v14 = vmul.f32 %v2233_v40, %v1691_v30 }
 0x607   :  { %v1698_v56 = vpack.c.bf16 %v1697_v14, %v1697_v14 }
 0x609   :  { %1699 = vst [vmem:[#allocation2] sm:$0xf] %v1698_v56 }
 0x60a   :  { %2033 = vst [vmem:[%s2856_s6 + $0x1c] sm:$0xf] %v1698_v56 }
 0x610   :  { %v1706_v45 = vld [vmem:[#allocation2] sm:$0xf] }
 0x611   :  { %1707 = vst [vmem:[%s2857_s7] sm:$0xf] %v1706_v45 }
 0x612   :  { %1722 = vsyncpa [#allocation6], 1 }
 0x613   :  { %1723 = vsyncpa [#allocation8], 1 }

</bundles_post_ra>
